<compile_context>
chip_gen: v5e
topology: v5e:2x2
jax: 0.10.0
libtpu: 0.0.40
codegen_flags: <defaults>
</compile_context>

<pallas_src>
import math
import jax
import jax.numpy as jnp
from jax.experimental import pallas as pl
from jax.experimental.pallas import tpu as pltpu

# ---- model dimensions (small, deterministic, consistent with the module) ----
B, S = 2, 8                 # batch, seq
D_IN = 768                  # G_Encoder input feature dim (nn.Linear(768, d_model))
D = 32                      # d_model
H = 4                       # attention heads
DH = D // H                 # per-head dim
DFF = 64                    # feed-forward hidden dim
N_LAYERS = 2                # Encoder(layer, N) with N = 2
EPS = 1e-6                  # LayerNorm eps (matches torch module)

# ---- packed small-parameter layout: one (N_LAYERS*8 + 3, 128) f32 array ----
LANES = 128
ROWS_PER_LAYER = 8
# per-layer rows (base = layer * 8):
R_BQKV, R_BO, R_G1, R_B1, R_G2, R_B2, R_C1, R_C2 = range(ROWS_PER_LAYER)
GBASE = N_LAYERS * ROWS_PER_LAYER
R_BIN, R_GF, R_BF = GBASE + 0, GBASE + 1, GBASE + 2
SM_ROWS = GBASE + 3


def _layernorm_ref(x, gamma, beta, eps=EPS):
    # Reference (pure-JAX) LayerNorm, matching torch exactly:
    #   mean over last dim, *unbiased* std (ddof=1), eps added to std (not var).
    mean = jnp.mean(x, axis=-1, keepdims=True)
    var = jnp.sum((x - mean) ** 2, axis=-1, keepdims=True) / (x.shape[-1] - 1)
    std = jnp.sqrt(var)
    return gamma * (x - mean) / (std + eps) + beta


def _layernorm_knl(x, gamma, beta, eps=EPS):
    # In-kernel LayerNorm: same math, but divide -> exact reciprocal + multiply so
    # the reciprocal lands on the EUP slot instead of the VALU.
    mean = jnp.mean(x, axis=-1, keepdims=True)
    var = jnp.sum((x - mean) ** 2, axis=-1, keepdims=True) * (1.0 / (x.shape[-1] - 1))
    inv = pl.reciprocal(jnp.sqrt(var) + eps, approx=False)
    return gamma * (x - mean) * inv + beta


# =============================== Pallas kernel ================================

def encoder_kernel(x_ref, mask_ref, w_in_ref, wqkv_ref, wo_ref, w1_ref, w2_ref,
                   sm_ref, o_ref):
    """Full G_Encoder forward: input linear + N_LAYERS encoder layers + final norm."""
    sm = sm_ref[...]                                    # (19, 128) packed small params

    def row(r, width):                                  # static sublane/lane slice
        return sm[r:r + 1, 0:width]                     # -> (1, width)

    # ---- input projection: (B*S, 768) @ (768, D) ----
    x = jnp.dot(x_ref[...], w_in_ref[...],
                preferred_element_type=jnp.float32) + row(R_BIN, D)      # (B*S, D)

    # Additive attention bias, broadcast ONCE (mask 1 -> 0, mask 0 -> -1e9).
    bias_b = jnp.broadcast_to((mask_ref[...] - 1.0) * 1e9, (B, S, S))    # (B, S, S)
    scale = 1.0 / math.sqrt(DH)

    # Statically unrolled layer loop; all weights stay resident in VMEM throughout.
    for l in range(N_LAYERS):
        base = l * ROWS_PER_LAYER

        # ---- sublayer 1: x + SelfAttn(LayerNorm(x)) --------------------------
        xn = _layernorm_knl(x, row(base + R_G1, D), row(base + R_B1, D))  # (B*S, D)
        # Fused QKV projection: ONE MXU push per layer, 96-lane-dense result.
        qkv = jnp.dot(xn, wqkv_ref[l],
                      preferred_element_type=jnp.float32) + row(base + R_BQKV, 3 * D)
        q3 = (qkv[:, 0:D] * scale).reshape(B, S, D)      # pre-scale q once per layer
        k3 = qkv[:, D:2 * D].reshape(B, S, D)
        v3 = qkv[:, 2 * D:3 * D].reshape(B, S, D)

        heads = []
        for h in range(H):                  # static unroll, batched 3-D einsum over B
            sl = slice(h * DH, (h + 1) * DH)
            s = jnp.einsum('bqd,bkd->bqk', q3[:, :, sl], k3[:, :, sl],
                           preferred_element_type=jnp.float32) + bias_b
            s = s - jnp.max(s, axis=-1, keepdims=True)
            p = jnp.exp(s)
            p = p * pl.reciprocal(jnp.sum(p, axis=-1, keepdims=True), approx=False)
            heads.append(jnp.einsum('bqk,bkd->bqd', p, v3[:, :, sl],
                                    preferred_element_type=jnp.float32))
        # concat heads along lanes -> single output projection (one MXU push)
        attn = jnp.concatenate(heads, axis=-1).reshape(B * S, D)
        attn = jnp.dot(attn, wo_ref[l],
                       preferred_element_type=jnp.float32) + row(base + R_BO, D)
        x = x + attn                        # residual (dropout = identity in eval)

        # ---- sublayer 2: x + FFN(LayerNorm(x)) -------------------------------
        xn2 = _layernorm_knl(x, row(base + R_G2, D), row(base + R_B2, D))
        hdn = jnp.maximum(
            jnp.dot(xn2, w1_ref[l],
                    preferred_element_type=jnp.float32) + row(base + R_C1, DFF), 0.0)
        ff = jnp.dot(hdn, w2_ref[l],
                     preferred_element_type=jnp.float32) + row(base + R_C2, D)
        x = x + ff

    # ---- final Encoder LayerNorm ----
    o_ref[...] = _layernorm_knl(x, row(R_GF, D), row(R_BF, D))


# ================================ wrapper =====================================

def _pad_row(a):
    """(1, n) or (n,) parameter -> (LANES,) lane-padded row."""
    a = a.reshape(-1)
    return jnp.pad(a, (0, LANES - a.shape[0]))


def g_encoder_forward(x, mask, params):
    """x: (B, S, 768) float32, mask: (B, S) float32 (1 = attend, 0 = masked)."""
    (w_in, b_in, wq, bq, wk, bk, wv, bv, wo, bo,
     g1, b1, g2, b2, w1, c1, w2, c2, gf, bf) = params

    x2d = x.reshape(B * S, D_IN)                       # lane-dense (16, 768) matmul input
    mask3 = mask.reshape(B, 1, S).astype(jnp.float32)  # broadcastable additive-bias shape

    # Fused QKV weights/biases (host-side, once).
    wqkv = jnp.concatenate([wq, wk, wv], axis=-1)      # (N_LAYERS, D, 3D)
    bqkv = jnp.concatenate([bq, bk, bv], axis=-1)      # (N_LAYERS, 1, 3D)

    # Pack every tiny parameter into ONE (19, 128) operand -> one DMA instead of 15.
    rows = []
    for l in range(N_LAYERS):
        rows += [_pad_row(bqkv[l]), _pad_row(bo[l]),
                 _pad_row(g1[l]), _pad_row(b1[l]),
                 _pad_row(g2[l]), _pad_row(b2[l]),
                 _pad_row(c1[l]), _pad_row(c2[l])]
    rows += [_pad_row(b_in), _pad_row(gf), _pad_row(bf)]
    smalls = jnp.stack(rows, axis=0)                   # (SM_ROWS, 128)
    assert smalls.shape == (SM_ROWS, LANES)

    operands = (x2d, mask3, w_in, wqkv, wo, w1, w2, smalls)

    out2d = pl.pallas_call(
        encoder_kernel,
        out_shape=jax.ShapeDtypeStruct((B * S, D), jnp.float32),
        # No grid: single invocation, every operand lives as one full block in VMEM
        # (total footprint < 300 KiB, far under even v7x's 64 MiB per-TC VMEM and
        # v5e's 16 MiB scoped default, so no vmem_limit_bytes override is needed).
        in_specs=[pl.BlockSpec(memory_space=pltpu.MemorySpace.VMEM) for _ in operands],
        out_specs=pl.BlockSpec(memory_space=pltpu.MemorySpace.VMEM),
    )(*operands)
    return out2d.reshape(B, S, D)


# ============================ pure-JAX reference ==============================

_RP = jax.lax.Precision.HIGHEST  # keep the XLA reference at f32 matmul precision


def _ref_forward(x, mask, params):
    (w_in, b_in, wq, bq, wk, bk, wv, bv, wo, bo,
     g1, b1, g2, b2, w1, c1, w2, c2, gf, bf) = params

    h = jnp.dot(x, w_in, precision=_RP) + b_in                          # (B, S, D)
    for l in range(N_LAYERS):
        xn = _layernorm_ref(h, g1[l], b1[l])
        q = jnp.dot(xn, wq[l], precision=_RP) + bq[l]
        k = jnp.dot(xn, wk[l], precision=_RP) + bk[l]
        v = jnp.dot(xn, wv[l], precision=_RP) + bv[l]

        def split(t):  # (B,S,D) -> (B,H,S,DH)
            return t.reshape(B, S, H, DH).transpose(0, 2, 1, 3)

        qh, kh, vh = split(q), split(k), split(v)
        scores = jnp.einsum('bhqd,bhkd->bhqk', qh, kh, precision=_RP) / math.sqrt(DH)
        scores = jnp.where(mask[:, None, None, :] == 0.0, -1e9, scores)
        p_attn = jax.nn.softmax(scores, axis=-1)
        oh = jnp.einsum('bhqk,bhkd->bhqd', p_attn, vh, precision=_RP)
        attn = jnp.dot(oh.transpose(0, 2, 1, 3).reshape(B, S, D), wo[l],
                       precision=_RP) + bo[l]
        h = h + attn

        xn2 = _layernorm_ref(h, g2[l], b2[l])
        ff = jnp.dot(jnp.maximum(jnp.dot(xn2, w1[l], precision=_RP) + c1[l], 0.0),
                     w2[l], precision=_RP) + c2[l]
        h = h + ff
    return _layernorm_ref(h, gf, bf)


# ================================== setup =====================================

def _init_params(key):
    ks = jax.random.split(key, 12)
    scale = 0.05
    # nn.Linear(768, d_model) with kaiming_normal_ weight, zero bias
    w_in = jnp.sqrt(2.0 / D_IN) * jax.random.normal(ks[0], (D_IN, D), jnp.float32)
    b_in = jnp.zeros((1, D), jnp.float32)
    # Per-layer params stacked along a leading layer axis.
    wq = scale * jax.random.normal(ks[1], (N_LAYERS, D, D), jnp.float32)
    wk = scale * jax.random.normal(ks[2], (N_LAYERS, D, D), jnp.float32)
    wv = scale * jax.random.normal(ks[3], (N_LAYERS, D, D), jnp.float32)
    wo = scale * jax.random.normal(ks[4], (N_LAYERS, D, D), jnp.float32)
    bq = scale * jax.random.normal(ks[5], (N_LAYERS, 1, D), jnp.float32)
    bk = jnp.zeros((N_LAYERS, 1, D), jnp.float32)
    bv = jnp.zeros((N_LAYERS, 1, D), jnp.float32)
    bo = scale * jax.random.normal(ks[6], (N_LAYERS, 1, D), jnp.float32)
    g1 = jnp.ones((N_LAYERS, 1, D), jnp.float32)
    b1 = jnp.zeros((N_LAYERS, 1, D), jnp.float32)
    g2 = jnp.ones((N_LAYERS, 1, D), jnp.float32)
    b2 = jnp.zeros((N_LAYERS, 1, D), jnp.float32)
    w1 = scale * jax.random.normal(ks[7], (N_LAYERS, D, DFF), jnp.float32)
    c1 = scale * jax.random.normal(ks[8], (N_LAYERS, 1, DFF), jnp.float32)
    w2 = scale * jax.random.normal(ks[9], (N_LAYERS, DFF, D), jnp.float32)
    c2 = jnp.zeros((N_LAYERS, 1, D), jnp.float32)
    gf = jnp.ones((1, D), jnp.float32)
    bf = jnp.zeros((1, D), jnp.float32)
    return (w_in, b_in, wq, bq, wk, bk, wv, bv, wo, bo,
            g1, b1, g2, b2, w1, c1, w2, c2, gf, bf)


if __name__ == "__main__":
    key = jax.random.PRNGKey(0)
    kx, kp = jax.random.split(key)

    x = jax.random.normal(kx, (B, S, D_IN), jnp.float32)
    # mask: batch 0 attends to all 8 keys, batch 1 only to the first 5.
    lengths = jnp.array([8, 5], jnp.int32)
    mask = (jnp.arange(S)[None, :] < lengths[:, None]).astype(jnp.float32)  # (B, S)

    params = _init_params(kp)

    out = g_encoder_forward(x, mask, params)
    out = jax.block_until_ready(out)

    ref = _ref_forward(x, mask, params)
    assert out.shape == (B, S, D)
    err = jnp.max(jnp.abs(out - ref))
    assert jnp.allclose(out, ref, atol=2e-4, rtol=2e-4), \
        f"Pallas output mismatch vs reference (max abs err = {err})"

    print("KERNEL_OK")
</pallas_src>

<mosaic_0001>
module attributes {stable_mosaic.version = 11 : i64} {
  func.func @encoder_kernel(%arg0: memref<16x768xf32, #tpu.memory_space<vmem>>, %arg1: memref<2x1x8xf32, #tpu.memory_space<vmem>>, %arg2: memref<768x32xf32, #tpu.memory_space<vmem>>, %arg3: memref<2x32x96xf32, #tpu.memory_space<vmem>>, %arg4: memref<2x32x32xf32, #tpu.memory_space<vmem>>, %arg5: memref<2x32x64xf32, #tpu.memory_space<vmem>>, %arg6: memref<2x64x32xf32, #tpu.memory_space<vmem>>, %arg7: memref<19x128xf32, #tpu.memory_space<vmem>>, %arg8: memref<16x32xf32, #tpu.memory_space<vmem>>) attributes {dimension_semantics = [], scalar_prefetch = 0 : i64, scratch_operands = 0 : i64, tpu.core_type = #tpu.core_type<tc>} {
    %c0 = arith.constant 0 : index
    %c0_0 = arith.constant 0 : index
    %0 = vector.load %arg7[%c0, %c0_0] : memref<19x128xf32, #tpu.memory_space<vmem>>, vector<19x128xf32>
    %c0_1 = arith.constant 0 : index
    %c0_2 = arith.constant 0 : index
    %1 = vector.load %arg0[%c0_1, %c0_2] : memref<16x768xf32, #tpu.memory_space<vmem>>, vector<16x768xf32>
    %c0_3 = arith.constant 0 : index
    %c0_4 = arith.constant 0 : index
    %2 = vector.load %arg2[%c0_3, %c0_4] : memref<768x32xf32, #tpu.memory_space<vmem>>, vector<768x32xf32>
    %cst = arith.constant dense<0.000000e+00> : vector<16x32xf32>
    %3 = tpu.matmul %1, %2, %cst {dimension_numbers = #tpu.dot_dimension_numbers<[1], [0], [0], [1], [0, 0, 1, 1], [], []>} : vector<16x768xf32>, vector<768x32xf32>, vector<16x32xf32> -> vector<16x32xf32>
    %4 = vector.extract_strided_slice %0 {offsets = [16, 0], sizes = [1, 32], strides = [1, 1]} : vector<19x128xf32> to vector<1x32xf32>
    %5 = vector.broadcast %4 : vector<1x32xf32> to vector<16x32xf32>
    %6 = arith.addf %3, %5 : vector<16x32xf32>
    %c0_5 = arith.constant 0 : index
    %c0_6 = arith.constant 0 : index
    %c0_7 = arith.constant 0 : index
    %7 = vector.load %arg1[%c0_5, %c0_6, %c0_7] : memref<2x1x8xf32, #tpu.memory_space<vmem>>, vector<2x1x8xf32>
    %cst_8 = arith.constant 1.000000e+00 : f32
    %8 = vector.broadcast %cst_8 : f32 to vector<2x1x8xf32>
    %9 = arith.subf %7, %8 : vector<2x1x8xf32>
    %cst_9 = arith.constant 1.000000e+09 : f32
    %10 = vector.broadcast %cst_9 : f32 to vector<2x1x8xf32>
    %11 = arith.mulf %9, %10 : vector<2x1x8xf32>
    %12 = vector.shape_cast %11 : vector<2x1x8xf32> to vector<2x1x8xf32>
    %13 = vector.broadcast %12 : vector<2x1x8xf32> to vector<2x8x8xf32>
    %14 = vector.extract_strided_slice %0 {offsets = [2, 0], sizes = [1, 32], strides = [1, 1]} : vector<19x128xf32> to vector<1x32xf32>
    %15 = vector.extract_strided_slice %0 {offsets = [3, 0], sizes = [1, 32], strides = [1, 1]} : vector<19x128xf32> to vector<1x32xf32>
    %cst_10 = arith.constant dense<0.000000e+00> : vector<16xf32>
    %16 = vector.multi_reduction <add>, %6, %cst_10 [1] : vector<16x32xf32> to vector<16xf32>
    %17 = vector.shape_cast %16 : vector<16xf32> to vector<16x1xf32>
    %cst_11 = arith.constant 3.200000e+01 : f32
    %18 = vector.broadcast %cst_11 : f32 to vector<16x1xf32>
    %19 = arith.divf %17, %18 : vector<16x1xf32>
    %20 = vector.broadcast %19 : vector<16x1xf32> to vector<16x32xf32>
    %21 = arith.subf %6, %20 : vector<16x32xf32>
    %22 = arith.mulf %21, %21 : vector<16x32xf32>
    %cst_12 = arith.constant dense<0.000000e+00> : vector<16xf32>
    %23 = vector.multi_reduction <add>, %22, %cst_12 [1] : vector<16x32xf32> to vector<16xf32>
    %24 = vector.shape_cast %23 : vector<16xf32> to vector<16x1xf32>
    %cst_13 = arith.constant 0.0322580636 : f32
    %25 = vector.broadcast %cst_13 : f32 to vector<16x1xf32>
    %26 = arith.mulf %24, %25 : vector<16x1xf32>
    %27 = math.sqrt %26 : vector<16x1xf32>
    %cst_14 = arith.constant 9.99999997E-7 : f32
    %28 = vector.broadcast %cst_14 : f32 to vector<16x1xf32>
    %29 = arith.addf %27, %28 : vector<16x1xf32>
    %30 = tpu.reciprocal %29 : vector<16x1xf32> -> vector<16x1xf32>
    %31 = vector.broadcast %19 : vector<16x1xf32> to vector<16x32xf32>
    %32 = arith.subf %6, %31 : vector<16x32xf32>
    %33 = vector.broadcast %14 : vector<1x32xf32> to vector<16x32xf32>
    %34 = arith.mulf %33, %32 : vector<16x32xf32>
    %35 = vector.broadcast %30 : vector<16x1xf32> to vector<16x32xf32>
    %36 = arith.mulf %34, %35 : vector<16x32xf32>
    %37 = vector.broadcast %15 : vector<1x32xf32> to vector<16x32xf32>
    %38 = arith.addf %36, %37 : vector<16x32xf32>
    %c0_15 = arith.constant 0 : index
    %c0_16 = arith.constant 0 : index
    %c0_17 = arith.constant 0 : index
    %39 = vector.load %arg3[%c0_15, %c0_16, %c0_17] : memref<2x32x96xf32, #tpu.memory_space<vmem>>, vector<1x32x96xf32>
    %40 = vector.shape_cast %39 : vector<1x32x96xf32> to vector<32x96xf32>
    %cst_18 = arith.constant dense<0.000000e+00> : vector<16x96xf32>
    %41 = tpu.matmul %38, %40, %cst_18 {dimension_numbers = #tpu.dot_dimension_numbers<[1], [0], [0], [1], [0, 0, 1, 1], [], []>} : vector<16x32xf32>, vector<32x96xf32>, vector<16x96xf32> -> vector<16x96xf32>
    %42 = vector.extract_strided_slice %0 {offsets = [0, 0], sizes = [1, 96], strides = [1, 1]} : vector<19x128xf32> to vector<1x96xf32>
    %43 = vector.broadcast %42 : vector<1x96xf32> to vector<16x96xf32>
    %44 = arith.addf %41, %43 : vector<16x96xf32>
    %45 = vector.extract_strided_slice %44 {offsets = [0, 0], sizes = [16, 32], strides = [1, 1]} : vector<16x96xf32> to vector<16x32xf32>
    %cst_19 = arith.constant 0.353553385 : f32
    %46 = vector.broadcast %cst_19 : f32 to vector<16x32xf32>
    %47 = arith.mulf %45, %46 : vector<16x32xf32>
    %48 = vector.shape_cast %47 : vector<16x32xf32> to vector<2x8x32xf32>
    %49 = vector.extract_strided_slice %44 {offsets = [0, 32], sizes = [16, 32], strides = [1, 1]} : vector<16x96xf32> to vector<16x32xf32>
    %50 = vector.shape_cast %49 : vector<16x32xf32> to vector<2x8x32xf32>
    %51 = vector.extract_strided_slice %44 {offsets = [0, 64], sizes = [16, 32], strides = [1, 1]} : vector<16x96xf32> to vector<16x32xf32>
    %52 = vector.shape_cast %51 : vector<16x32xf32> to vector<2x8x32xf32>
    %53 = vector.extract_strided_slice %48 {offsets = [0, 0, 0], sizes = [2, 8, 8], strides = [1, 1, 1]} : vector<2x8x32xf32> to vector<2x8x8xf32>
    %54 = vector.extract_strided_slice %50 {offsets = [0, 0, 0], sizes = [2, 8, 8], strides = [1, 1, 1]} : vector<2x8x32xf32> to vector<2x8x8xf32>
    "tpu.trace_start"() <{level = 10 : i32, message = "bqd,bkd->bqk"}> : () -> ()
    %cst_20 = arith.constant dense<0.000000e+00> : vector<2x8x8xf32>
    %55 = tpu.matmul %53, %54, %cst_20 {dimension_numbers = #tpu.dot_dimension_numbers<[2], [2], [1], [1], [0, 0, 0, 1, 1, 1], [0], [0]>} : vector<2x8x8xf32>, vector<2x8x8xf32>, vector<2x8x8xf32> -> vector<2x8x8xf32>
    "tpu.trace_stop"() : () -> ()
    %56 = arith.addf %55, %13 : vector<2x8x8xf32>
    %cst_21 = arith.constant dense<0xFF800000> : vector<2x8xf32>
    %57 = vector.multi_reduction <maximumf>, %56, %cst_21 [2] : vector<2x8x8xf32> to vector<2x8xf32>
    %58 = vector.shape_cast %57 : vector<2x8xf32> to vector<2x8x1xf32>
    %59 = vector.broadcast %58 : vector<2x8x1xf32> to vector<2x8x8xf32>
    %60 = arith.subf %56, %59 : vector<2x8x8xf32>
    %61 = math.exp %60 : vector<2x8x8xf32>
    %cst_22 = arith.constant dense<0.000000e+00> : vector<2x8xf32>
    %62 = vector.multi_reduction <add>, %61, %cst_22 [2] : vector<2x8x8xf32> to vector<2x8xf32>
    %63 = vector.shape_cast %62 : vector<2x8xf32> to vector<2x8x1xf32>
    %64 = tpu.reciprocal %63 : vector<2x8x1xf32> -> vector<2x8x1xf32>
    %65 = vector.broadcast %64 : vector<2x8x1xf32> to vector<2x8x8xf32>
    %66 = arith.mulf %61, %65 : vector<2x8x8xf32>
    %67 = vector.extract_strided_slice %52 {offsets = [0, 0, 0], sizes = [2, 8, 8], strides = [1, 1, 1]} : vector<2x8x32xf32> to vector<2x8x8xf32>
    "tpu.trace_start"() <{level = 10 : i32, message = "bqk,bkd->bqd"}> : () -> ()
    %cst_23 = arith.constant dense<0.000000e+00> : vector<2x8x8xf32>
    %68 = tpu.matmul %66, %67, %cst_23 {dimension_numbers = #tpu.dot_dimension_numbers<[2], [1], [1], [2], [0, 0, 0, 1, 1, 2], [0], [0]>} : vector<2x8x8xf32>, vector<2x8x8xf32>, vector<2x8x8xf32> -> vector<2x8x8xf32>
    "tpu.trace_stop"() : () -> ()
    %69 = vector.extract_strided_slice %48 {offsets = [0, 0, 8], sizes = [2, 8, 8], strides = [1, 1, 1]} : vector<2x8x32xf32> to vector<2x8x8xf32>
    %70 = vector.extract_strided_slice %50 {offsets = [0, 0, 8], sizes = [2, 8, 8], strides = [1, 1, 1]} : vector<2x8x32xf32> to vector<2x8x8xf32>
    "tpu.trace_start"() <{level = 10 : i32, message = "bqd,bkd->bqk"}> : () -> ()
    %cst_24 = arith.constant dense<0.000000e+00> : vector<2x8x8xf32>
    %71 = tpu.matmul %69, %70, %cst_24 {dimension_numbers = #tpu.dot_dimension_numbers<[2], [2], [1], [1], [0, 0, 0, 1, 1, 1], [0], [0]>} : vector<2x8x8xf32>, vector<2x8x8xf32>, vector<2x8x8xf32> -> vector<2x8x8xf32>
    "tpu.trace_stop"() : () -> ()
    %72 = arith.addf %71, %13 : vector<2x8x8xf32>
    %cst_25 = arith.constant dense<0xFF800000> : vector<2x8xf32>
    %73 = vector.multi_reduction <maximumf>, %72, %cst_25 [2] : vector<2x8x8xf32> to vector<2x8xf32>
    %74 = vector.shape_cast %73 : vector<2x8xf32> to vector<2x8x1xf32>
    %75 = vector.broadcast %74 : vector<2x8x1xf32> to vector<2x8x8xf32>
    %76 = arith.subf %72, %75 : vector<2x8x8xf32>
    %77 = math.exp %76 : vector<2x8x8xf32>
    %cst_26 = arith.constant dense<0.000000e+00> : vector<2x8xf32>
    %78 = vector.multi_reduction <add>, %77, %cst_26 [2] : vector<2x8x8xf32> to vector<2x8xf32>
    %79 = vector.shape_cast %78 : vector<2x8xf32> to vector<2x8x1xf32>
    %80 = tpu.reciprocal %79 : vector<2x8x1xf32> -> vector<2x8x1xf32>
    %81 = vector.broadcast %80 : vector<2x8x1xf32> to vector<2x8x8xf32>
    %82 = arith.mulf %77, %81 : vector<2x8x8xf32>
    %83 = vector.extract_strided_slice %52 {offsets = [0, 0, 8], sizes = [2, 8, 8], strides = [1, 1, 1]} : vector<2x8x32xf32> to vector<2x8x8xf32>
    "tpu.trace_start"() <{level = 10 : i32, message = "bqk,bkd->bqd"}> : () -> ()
    %cst_27 = arith.constant dense<0.000000e+00> : vector<2x8x8xf32>
    %84 = tpu.matmul %82, %83, %cst_27 {dimension_numbers = #tpu.dot_dimension_numbers<[2], [1], [1], [2], [0, 0, 0, 1, 1, 2], [0], [0]>} : vector<2x8x8xf32>, vector<2x8x8xf32>, vector<2x8x8xf32> -> vector<2x8x8xf32>
    "tpu.trace_stop"() : () -> ()
    %85 = vector.extract_strided_slice %48 {offsets = [0, 0, 16], sizes = [2, 8, 8], strides = [1, 1, 1]} : vector<2x8x32xf32> to vector<2x8x8xf32>
    %86 = vector.extract_strided_slice %50 {offsets = [0, 0, 16], sizes = [2, 8, 8], strides = [1, 1, 1]} : vector<2x8x32xf32> to vector<2x8x8xf32>
    "tpu.trace_start"() <{level = 10 : i32, message = "bqd,bkd->bqk"}> : () -> ()
    %cst_28 = arith.constant dense<0.000000e+00> : vector<2x8x8xf32>
    %87 = tpu.matmul %85, %86, %cst_28 {dimension_numbers = #tpu.dot_dimension_numbers<[2], [2], [1], [1], [0, 0, 0, 1, 1, 1], [0], [0]>} : vector<2x8x8xf32>, vector<2x8x8xf32>, vector<2x8x8xf32> -> vector<2x8x8xf32>
    "tpu.trace_stop"() : () -> ()
    %88 = arith.addf %87, %13 : vector<2x8x8xf32>
    %cst_29 = arith.constant dense<0xFF800000> : vector<2x8xf32>
    %89 = vector.multi_reduction <maximumf>, %88, %cst_29 [2] : vector<2x8x8xf32> to vector<2x8xf32>
    %90 = vector.shape_cast %89 : vector<2x8xf32> to vector<2x8x1xf32>
    %91 = vector.broadcast %90 : vector<2x8x1xf32> to vector<2x8x8xf32>
    %92 = arith.subf %88, %91 : vector<2x8x8xf32>
    %93 = math.exp %92 : vector<2x8x8xf32>
    %cst_30 = arith.constant dense<0.000000e+00> : vector<2x8xf32>
    %94 = vector.multi_reduction <add>, %93, %cst_30 [2] : vector<2x8x8xf32> to vector<2x8xf32>
    %95 = vector.shape_cast %94 : vector<2x8xf32> to vector<2x8x1xf32>
    %96 = tpu.reciprocal %95 : vector<2x8x1xf32> -> vector<2x8x1xf32>
    %97 = vector.broadcast %96 : vector<2x8x1xf32> to vector<2x8x8xf32>
    %98 = arith.mulf %93, %97 : vector<2x8x8xf32>
    %99 = vector.extract_strided_slice %52 {offsets = [0, 0, 16], sizes = [2, 8, 8], strides = [1, 1, 1]} : vector<2x8x32xf32> to vector<2x8x8xf32>
    "tpu.trace_start"() <{level = 10 : i32, message = "bqk,bkd->bqd"}> : () -> ()
    %cst_31 = arith.constant dense<0.000000e+00> : vector<2x8x8xf32>
    %100 = tpu.matmul %98, %99, %cst_31 {dimension_numbers = #tpu.dot_dimension_numbers<[2], [1], [1], [2], [0, 0, 0, 1, 1, 2], [0], [0]>} : vector<2x8x8xf32>, vector<2x8x8xf32>, vector<2x8x8xf32> -> vector<2x8x8xf32>
    "tpu.trace_stop"() : () -> ()
    %101 = vector.extract_strided_slice %48 {offsets = [0, 0, 24], sizes = [2, 8, 8], strides = [1, 1, 1]} : vector<2x8x32xf32> to vector<2x8x8xf32>
    %102 = vector.extract_strided_slice %50 {offsets = [0, 0, 24], sizes = [2, 8, 8], strides = [1, 1, 1]} : vector<2x8x32xf32> to vector<2x8x8xf32>
    "tpu.trace_start"() <{level = 10 : i32, message = "bqd,bkd->bqk"}> : () -> ()
    %cst_32 = arith.constant dense<0.000000e+00> : vector<2x8x8xf32>
    %103 = tpu.matmul %101, %102, %cst_32 {dimension_numbers = #tpu.dot_dimension_numbers<[2], [2], [1], [1], [0, 0, 0, 1, 1, 1], [0], [0]>} : vector<2x8x8xf32>, vector<2x8x8xf32>, vector<2x8x8xf32> -> vector<2x8x8xf32>
    "tpu.trace_stop"() : () -> ()
    %104 = arith.addf %103, %13 : vector<2x8x8xf32>
    %cst_33 = arith.constant dense<0xFF800000> : vector<2x8xf32>
    %105 = vector.multi_reduction <maximumf>, %104, %cst_33 [2] : vector<2x8x8xf32> to vector<2x8xf32>
    %106 = vector.shape_cast %105 : vector<2x8xf32> to vector<2x8x1xf32>
    %107 = vector.broadcast %106 : vector<2x8x1xf32> to vector<2x8x8xf32>
    %108 = arith.subf %104, %107 : vector<2x8x8xf32>
    %109 = math.exp %108 : vector<2x8x8xf32>
    %cst_34 = arith.constant dense<0.000000e+00> : vector<2x8xf32>
    %110 = vector.multi_reduction <add>, %109, %cst_34 [2] : vector<2x8x8xf32> to vector<2x8xf32>
    %111 = vector.shape_cast %110 : vector<2x8xf32> to vector<2x8x1xf32>
    %112 = tpu.reciprocal %111 : vector<2x8x1xf32> -> vector<2x8x1xf32>
    %113 = vector.broadcast %112 : vector<2x8x1xf32> to vector<2x8x8xf32>
    %114 = arith.mulf %109, %113 : vector<2x8x8xf32>
    %115 = vector.extract_strided_slice %52 {offsets = [0, 0, 24], sizes = [2, 8, 8], strides = [1, 1, 1]} : vector<2x8x32xf32> to vector<2x8x8xf32>
    "tpu.trace_start"() <{level = 10 : i32, message = "bqk,bkd->bqd"}> : () -> ()
    %cst_35 = arith.constant dense<0.000000e+00> : vector<2x8x8xf32>
    %116 = tpu.matmul %114, %115, %cst_35 {dimension_numbers = #tpu.dot_dimension_numbers<[2], [1], [1], [2], [0, 0, 0, 1, 1, 2], [0], [0]>} : vector<2x8x8xf32>, vector<2x8x8xf32>, vector<2x8x8xf32> -> vector<2x8x8xf32>
    "tpu.trace_stop"() : () -> ()
    %117 = tpu.concatenate %68, %84, %100, %116 in 2 : vector<2x8x8xf32>, vector<2x8x8xf32>, vector<2x8x8xf32>, vector<2x8x8xf32> -> vector<2x8x32xf32>
    %118 = vector.shape_cast %117 : vector<2x8x32xf32> to vector<16x32xf32>
    %c0_36 = arith.constant 0 : index
    %c0_37 = arith.constant 0 : index
    %c0_38 = arith.constant 0 : index
    %119 = vector.load %arg4[%c0_36, %c0_37, %c0_38] : memref<2x32x32xf32, #tpu.memory_space<vmem>>, vector<1x32x32xf32>
    %120 = vector.shape_cast %119 : vector<1x32x32xf32> to vector<32x32xf32>
    %cst_39 = arith.constant dense<0.000000e+00> : vector<16x32xf32>
    %121 = tpu.matmul %118, %120, %cst_39 {dimension_numbers = #tpu.dot_dimension_numbers<[1], [0], [0], [1], [0, 0, 1, 1], [], []>} : vector<16x32xf32>, vector<32x32xf32>, vector<16x32xf32> -> vector<16x32xf32>
    %122 = vector.extract_strided_slice %0 {offsets = [1, 0], sizes = [1, 32], strides = [1, 1]} : vector<19x128xf32> to vector<1x32xf32>
    %123 = vector.broadcast %122 : vector<1x32xf32> to vector<16x32xf32>
    %124 = arith.addf %121, %123 : vector<16x32xf32>
    %125 = arith.addf %6, %124 : vector<16x32xf32>
    %126 = vector.extract_strided_slice %0 {offsets = [4, 0], sizes = [1, 32], strides = [1, 1]} : vector<19x128xf32> to vector<1x32xf32>
    %127 = vector.extract_strided_slice %0 {offsets = [5, 0], sizes = [1, 32], strides = [1, 1]} : vector<19x128xf32> to vector<1x32xf32>
    %cst_40 = arith.constant dense<0.000000e+00> : vector<16xf32>
    %128 = vector.multi_reduction <add>, %125, %cst_40 [1] : vector<16x32xf32> to vector<16xf32>
    %129 = vector.shape_cast %128 : vector<16xf32> to vector<16x1xf32>
    %cst_41 = arith.constant 3.200000e+01 : f32
    %130 = vector.broadcast %cst_41 : f32 to vector<16x1xf32>
    %131 = arith.divf %129, %130 : vector<16x1xf32>
    %132 = vector.broadcast %131 : vector<16x1xf32> to vector<16x32xf32>
    %133 = arith.subf %125, %132 : vector<16x32xf32>
    %134 = arith.mulf %133, %133 : vector<16x32xf32>
    %cst_42 = arith.constant dense<0.000000e+00> : vector<16xf32>
    %135 = vector.multi_reduction <add>, %134, %cst_42 [1] : vector<16x32xf32> to vector<16xf32>
    %136 = vector.shape_cast %135 : vector<16xf32> to vector<16x1xf32>
    %cst_43 = arith.constant 0.0322580636 : f32
    %137 = vector.broadcast %cst_43 : f32 to vector<16x1xf32>
    %138 = arith.mulf %136, %137 : vector<16x1xf32>
    %139 = math.sqrt %138 : vector<16x1xf32>
    %cst_44 = arith.constant 9.99999997E-7 : f32
    %140 = vector.broadcast %cst_44 : f32 to vector<16x1xf32>
    %141 = arith.addf %139, %140 : vector<16x1xf32>
    %142 = tpu.reciprocal %141 : vector<16x1xf32> -> vector<16x1xf32>
    %143 = vector.broadcast %131 : vector<16x1xf32> to vector<16x32xf32>
    %144 = arith.subf %125, %143 : vector<16x32xf32>
    %145 = vector.broadcast %126 : vector<1x32xf32> to vector<16x32xf32>
    %146 = arith.mulf %145, %144 : vector<16x32xf32>
    %147 = vector.broadcast %142 : vector<16x1xf32> to vector<16x32xf32>
    %148 = arith.mulf %146, %147 : vector<16x32xf32>
    %149 = vector.broadcast %127 : vector<1x32xf32> to vector<16x32xf32>
    %150 = arith.addf %148, %149 : vector<16x32xf32>
    %c0_45 = arith.constant 0 : index
    %c0_46 = arith.constant 0 : index
    %c0_47 = arith.constant 0 : index
    %151 = vector.load %arg5[%c0_45, %c0_46, %c0_47] : memref<2x32x64xf32, #tpu.memory_space<vmem>>, vector<1x32x64xf32>
    %152 = vector.shape_cast %151 : vector<1x32x64xf32> to vector<32x64xf32>
    %cst_48 = arith.constant dense<0.000000e+00> : vector<16x64xf32>
    %153 = tpu.matmul %150, %152, %cst_48 {dimension_numbers = #tpu.dot_dimension_numbers<[1], [0], [0], [1], [0, 0, 1, 1], [], []>} : vector<16x32xf32>, vector<32x64xf32>, vector<16x64xf32> -> vector<16x64xf32>
    %154 = vector.extract_strided_slice %0 {offsets = [6, 0], sizes = [1, 64], strides = [1, 1]} : vector<19x128xf32> to vector<1x64xf32>
    %155 = vector.broadcast %154 : vector<1x64xf32> to vector<16x64xf32>
    %156 = arith.addf %153, %155 : vector<16x64xf32>
    %cst_49 = arith.constant 0.000000e+00 : f32
    %157 = vector.broadcast %cst_49 : f32 to vector<16x64xf32>
    %158 = arith.maximumf %156, %157 : vector<16x64xf32>
    %c0_50 = arith.constant 0 : index
    %c0_51 = arith.constant 0 : index
    %c0_52 = arith.constant 0 : index
    %159 = vector.load %arg6[%c0_50, %c0_51, %c0_52] : memref<2x64x32xf32, #tpu.memory_space<vmem>>, vector<1x64x32xf32>
    %160 = vector.shape_cast %159 : vector<1x64x32xf32> to vector<64x32xf32>
    %cst_53 = arith.constant dense<0.000000e+00> : vector<16x32xf32>
    %161 = tpu.matmul %158, %160, %cst_53 {dimension_numbers = #tpu.dot_dimension_numbers<[1], [0], [0], [1], [0, 0, 1, 1], [], []>} : vector<16x64xf32>, vector<64x32xf32>, vector<16x32xf32> -> vector<16x32xf32>
    %162 = vector.extract_strided_slice %0 {offsets = [7, 0], sizes = [1, 32], strides = [1, 1]} : vector<19x128xf32> to vector<1x32xf32>
    %163 = vector.broadcast %162 : vector<1x32xf32> to vector<16x32xf32>
    %164 = arith.addf %161, %163 : vector<16x32xf32>
    %165 = arith.addf %125, %164 : vector<16x32xf32>
    %166 = vector.extract_strided_slice %0 {offsets = [10, 0], sizes = [1, 32], strides = [1, 1]} : vector<19x128xf32> to vector<1x32xf32>
    %167 = vector.extract_strided_slice %0 {offsets = [11, 0], sizes = [1, 32], strides = [1, 1]} : vector<19x128xf32> to vector<1x32xf32>
    %cst_54 = arith.constant dense<0.000000e+00> : vector<16xf32>
    %168 = vector.multi_reduction <add>, %165, %cst_54 [1] : vector<16x32xf32> to vector<16xf32>
    %169 = vector.shape_cast %168 : vector<16xf32> to vector<16x1xf32>
    %cst_55 = arith.constant 3.200000e+01 : f32
    %170 = vector.broadcast %cst_55 : f32 to vector<16x1xf32>
    %171 = arith.divf %169, %170 : vector<16x1xf32>
    %172 = vector.broadcast %171 : vector<16x1xf32> to vector<16x32xf32>
    %173 = arith.subf %165, %172 : vector<16x32xf32>
    %174 = arith.mulf %173, %173 : vector<16x32xf32>
    %cst_56 = arith.constant dense<0.000000e+00> : vector<16xf32>
    %175 = vector.multi_reduction <add>, %174, %cst_56 [1] : vector<16x32xf32> to vector<16xf32>
    %176 = vector.shape_cast %175 : vector<16xf32> to vector<16x1xf32>
    %cst_57 = arith.constant 0.0322580636 : f32
    %177 = vector.broadcast %cst_57 : f32 to vector<16x1xf32>
    %178 = arith.mulf %176, %177 : vector<16x1xf32>
    %179 = math.sqrt %178 : vector<16x1xf32>
    %cst_58 = arith.constant 9.99999997E-7 : f32
    %180 = vector.broadcast %cst_58 : f32 to vector<16x1xf32>
    %181 = arith.addf %179, %180 : vector<16x1xf32>
    %182 = tpu.reciprocal %181 : vector<16x1xf32> -> vector<16x1xf32>
    %183 = vector.broadcast %171 : vector<16x1xf32> to vector<16x32xf32>
    %184 = arith.subf %165, %183 : vector<16x32xf32>
    %185 = vector.broadcast %166 : vector<1x32xf32> to vector<16x32xf32>
    %186 = arith.mulf %185, %184 : vector<16x32xf32>
    %187 = vector.broadcast %182 : vector<16x1xf32> to vector<16x32xf32>
    %188 = arith.mulf %186, %187 : vector<16x32xf32>
    %189 = vector.broadcast %167 : vector<1x32xf32> to vector<16x32xf32>
    %190 = arith.addf %188, %189 : vector<16x32xf32>
    %c1 = arith.constant 1 : index
    %c0_59 = arith.constant 0 : index
    %c0_60 = arith.constant 0 : index
    %191 = vector.load %arg3[%c1, %c0_59, %c0_60] : memref<2x32x96xf32, #tpu.memory_space<vmem>>, vector<1x32x96xf32>
    %192 = vector.shape_cast %191 : vector<1x32x96xf32> to vector<32x96xf32>
    %cst_61 = arith.constant dense<0.000000e+00> : vector<16x96xf32>
    %193 = tpu.matmul %190, %192, %cst_61 {dimension_numbers = #tpu.dot_dimension_numbers<[1], [0], [0], [1], [0, 0, 1, 1], [], []>} : vector<16x32xf32>, vector<32x96xf32>, vector<16x96xf32> -> vector<16x96xf32>
    %194 = vector.extract_strided_slice %0 {offsets = [8, 0], sizes = [1, 96], strides = [1, 1]} : vector<19x128xf32> to vector<1x96xf32>
    %195 = vector.broadcast %194 : vector<1x96xf32> to vector<16x96xf32>
    %196 = arith.addf %193, %195 : vector<16x96xf32>
    %197 = vector.extract_strided_slice %196 {offsets = [0, 0], sizes = [16, 32], strides = [1, 1]} : vector<16x96xf32> to vector<16x32xf32>
    %cst_62 = arith.constant 0.353553385 : f32
    %198 = vector.broadcast %cst_62 : f32 to vector<16x32xf32>
    %199 = arith.mulf %197, %198 : vector<16x32xf32>
    %200 = vector.shape_cast %199 : vector<16x32xf32> to vector<2x8x32xf32>
    %201 = vector.extract_strided_slice %196 {offsets = [0, 32], sizes = [16, 32], strides = [1, 1]} : vector<16x96xf32> to vector<16x32xf32>
    %202 = vector.shape_cast %201 : vector<16x32xf32> to vector<2x8x32xf32>
    %203 = vector.extract_strided_slice %196 {offsets = [0, 64], sizes = [16, 32], strides = [1, 1]} : vector<16x96xf32> to vector<16x32xf32>
    %204 = vector.shape_cast %203 : vector<16x32xf32> to vector<2x8x32xf32>
    %205 = vector.extract_strided_slice %200 {offsets = [0, 0, 0], sizes = [2, 8, 8], strides = [1, 1, 1]} : vector<2x8x32xf32> to vector<2x8x8xf32>
    %206 = vector.extract_strided_slice %202 {offsets = [0, 0, 0], sizes = [2, 8, 8], strides = [1, 1, 1]} : vector<2x8x32xf32> to vector<2x8x8xf32>
    "tpu.trace_start"() <{level = 10 : i32, message = "bqd,bkd->bqk"}> : () -> ()
    %cst_63 = arith.constant dense<0.000000e+00> : vector<2x8x8xf32>
    %207 = tpu.matmul %205, %206, %cst_63 {dimension_numbers = #tpu.dot_dimension_numbers<[2], [2], [1], [1], [0, 0, 0, 1, 1, 1], [0], [0]>} : vector<2x8x8xf32>, vector<2x8x8xf32>, vector<2x8x8xf32> -> vector<2x8x8xf32>
    "tpu.trace_stop"() : () -> ()
    %208 = arith.addf %207, %13 : vector<2x8x8xf32>
    %cst_64 = arith.constant dense<0xFF800000> : vector<2x8xf32>
    %209 = vector.multi_reduction <maximumf>, %208, %cst_64 [2] : vector<2x8x8xf32> to vector<2x8xf32>
    %210 = vector.shape_cast %209 : vector<2x8xf32> to vector<2x8x1xf32>
    %211 = vector.broadcast %210 : vector<2x8x1xf32> to vector<2x8x8xf32>
    %212 = arith.subf %208, %211 : vector<2x8x8xf32>
    %213 = math.exp %212 : vector<2x8x8xf32>
    %cst_65 = arith.constant dense<0.000000e+00> : vector<2x8xf32>
    %214 = vector.multi_reduction <add>, %213, %cst_65 [2] : vector<2x8x8xf32> to vector<2x8xf32>
    %215 = vector.shape_cast %214 : vector<2x8xf32> to vector<2x8x1xf32>
    %216 = tpu.reciprocal %215 : vector<2x8x1xf32> -> vector<2x8x1xf32>
    %217 = vector.broadcast %216 : vector<2x8x1xf32> to vector<2x8x8xf32>
    %218 = arith.mulf %213, %217 : vector<2x8x8xf32>
    %219 = vector.extract_strided_slice %204 {offsets = [0, 0, 0], sizes = [2, 8, 8], strides = [1, 1, 1]} : vector<2x8x32xf32> to vector<2x8x8xf32>
    "tpu.trace_start"() <{level = 10 : i32, message = "bqk,bkd->bqd"}> : () -> ()
    %cst_66 = arith.constant dense<0.000000e+00> : vector<2x8x8xf32>
    %220 = tpu.matmul %218, %219, %cst_66 {dimension_numbers = #tpu.dot_dimension_numbers<[2], [1], [1], [2], [0, 0, 0, 1, 1, 2], [0], [0]>} : vector<2x8x8xf32>, vector<2x8x8xf32>, vector<2x8x8xf32> -> vector<2x8x8xf32>
    "tpu.trace_stop"() : () -> ()
    %221 = vector.extract_strided_slice %200 {offsets = [0, 0, 8], sizes = [2, 8, 8], strides = [1, 1, 1]} : vector<2x8x32xf32> to vector<2x8x8xf32>
    %222 = vector.extract_strided_slice %202 {offsets = [0, 0, 8], sizes = [2, 8, 8], strides = [1, 1, 1]} : vector<2x8x32xf32> to vector<2x8x8xf32>
    "tpu.trace_start"() <{level = 10 : i32, message = "bqd,bkd->bqk"}> : () -> ()
    %cst_67 = arith.constant dense<0.000000e+00> : vector<2x8x8xf32>
    %223 = tpu.matmul %221, %222, %cst_67 {dimension_numbers = #tpu.dot_dimension_numbers<[2], [2], [1], [1], [0, 0, 0, 1, 1, 1], [0], [0]>} : vector<2x8x8xf32>, vector<2x8x8xf32>, vector<2x8x8xf32> -> vector<2x8x8xf32>
    "tpu.trace_stop"() : () -> ()
    %224 = arith.addf %223, %13 : vector<2x8x8xf32>
    %cst_68 = arith.constant dense<0xFF800000> : vector<2x8xf32>
    %225 = vector.multi_reduction <maximumf>, %224, %cst_68 [2] : vector<2x8x8xf32> to vector<2x8xf32>
    %226 = vector.shape_cast %225 : vector<2x8xf32> to vector<2x8x1xf32>
    %227 = vector.broadcast %226 : vector<2x8x1xf32> to vector<2x8x8xf32>
    %228 = arith.subf %224, %227 : vector<2x8x8xf32>
    %229 = math.exp %228 : vector<2x8x8xf32>
    %cst_69 = arith.constant dense<0.000000e+00> : vector<2x8xf32>
    %230 = vector.multi_reduction <add>, %229, %cst_69 [2] : vector<2x8x8xf32> to vector<2x8xf32>
    %231 = vector.shape_cast %230 : vector<2x8xf32> to vector<2x8x1xf32>
    %232 = tpu.reciprocal %231 : vector<2x8x1xf32> -> vector<2x8x1xf32>
    %233 = vector.broadcast %232 : vector<2x8x1xf32> to vector<2x8x8xf32>
    %234 = arith.mulf %229, %233 : vector<2x8x8xf32>
    %235 = vector.extract_strided_slice %204 {offsets = [0, 0, 8], sizes = [2, 8, 8], strides = [1, 1, 1]} : vector<2x8x32xf32> to vector<2x8x8xf32>
    "tpu.trace_start"() <{level = 10 : i32, message = "bqk,bkd->bqd"}> : () -> ()
    %cst_70 = arith.constant dense<0.000000e+00> : vector<2x8x8xf32>
    %236 = tpu.matmul %234, %235, %cst_70 {dimension_numbers = #tpu.dot_dimension_numbers<[2], [1], [1], [2], [0, 0, 0, 1, 1, 2], [0], [0]>} : vector<2x8x8xf32>, vector<2x8x8xf32>, vector<2x8x8xf32> -> vector<2x8x8xf32>
    "tpu.trace_stop"() : () -> ()
    %237 = vector.extract_strided_slice %200 {offsets = [0, 0, 16], sizes = [2, 8, 8], strides = [1, 1, 1]} : vector<2x8x32xf32> to vector<2x8x8xf32>
    %238 = vector.extract_strided_slice %202 {offsets = [0, 0, 16], sizes = [2, 8, 8], strides = [1, 1, 1]} : vector<2x8x32xf32> to vector<2x8x8xf32>
    "tpu.trace_start"() <{level = 10 : i32, message = "bqd,bkd->bqk"}> : () -> ()
    %cst_71 = arith.constant dense<0.000000e+00> : vector<2x8x8xf32>
    %239 = tpu.matmul %237, %238, %cst_71 {dimension_numbers = #tpu.dot_dimension_numbers<[2], [2], [1], [1], [0, 0, 0, 1, 1, 1], [0], [0]>} : vector<2x8x8xf32>, vector<2x8x8xf32>, vector<2x8x8xf32> -> vector<2x8x8xf32>
    "tpu.trace_stop"() : () -> ()
    %240 = arith.addf %239, %13 : vector<2x8x8xf32>
    %cst_72 = arith.constant dense<0xFF800000> : vector<2x8xf32>
    %241 = vector.multi_reduction <maximumf>, %240, %cst_72 [2] : vector<2x8x8xf32> to vector<2x8xf32>
    %242 = vector.shape_cast %241 : vector<2x8xf32> to vector<2x8x1xf32>
    %243 = vector.broadcast %242 : vector<2x8x1xf32> to vector<2x8x8xf32>
    %244 = arith.subf %240, %243 : vector<2x8x8xf32>
    %245 = math.exp %244 : vector<2x8x8xf32>
    %cst_73 = arith.constant dense<0.000000e+00> : vector<2x8xf32>
    %246 = vector.multi_reduction <add>, %245, %cst_73 [2] : vector<2x8x8xf32> to vector<2x8xf32>
    %247 = vector.shape_cast %246 : vector<2x8xf32> to vector<2x8x1xf32>
    %248 = tpu.reciprocal %247 : vector<2x8x1xf32> -> vector<2x8x1xf32>
    %249 = vector.broadcast %248 : vector<2x8x1xf32> to vector<2x8x8xf32>
    %250 = arith.mulf %245, %249 : vector<2x8x8xf32>
    %251 = vector.extract_strided_slice %204 {offsets = [0, 0, 16], sizes = [2, 8, 8], strides = [1, 1, 1]} : vector<2x8x32xf32> to vector<2x8x8xf32>
    "tpu.trace_start"() <{level = 10 : i32, message = "bqk,bkd->bqd"}> : () -> ()
    %cst_74 = arith.constant dense<0.000000e+00> : vector<2x8x8xf32>
    %252 = tpu.matmul %250, %251, %cst_74 {dimension_numbers = #tpu.dot_dimension_numbers<[2], [1], [1], [2], [0, 0, 0, 1, 1, 2], [0], [0]>} : vector<2x8x8xf32>, vector<2x8x8xf32>, vector<2x8x8xf32> -> vector<2x8x8xf32>
    "tpu.trace_stop"() : () -> ()
    %253 = vector.extract_strided_slice %200 {offsets = [0, 0, 24], sizes = [2, 8, 8], strides = [1, 1, 1]} : vector<2x8x32xf32> to vector<2x8x8xf32>
    %254 = vector.extract_strided_slice %202 {offsets = [0, 0, 24], sizes = [2, 8, 8], strides = [1, 1, 1]} : vector<2x8x32xf32> to vector<2x8x8xf32>
    "tpu.trace_start"() <{level = 10 : i32, message = "bqd,bkd->bqk"}> : () -> ()
    %cst_75 = arith.constant dense<0.000000e+00> : vector<2x8x8xf32>
    %255 = tpu.matmul %253, %254, %cst_75 {dimension_numbers = #tpu.dot_dimension_numbers<[2], [2], [1], [1], [0, 0, 0, 1, 1, 1], [0], [0]>} : vector<2x8x8xf32>, vector<2x8x8xf32>, vector<2x8x8xf32> -> vector<2x8x8xf32>
    "tpu.trace_stop"() : () -> ()
    %256 = arith.addf %255, %13 : vector<2x8x8xf32>
    %cst_76 = arith.constant dense<0xFF800000> : vector<2x8xf32>
    %257 = vector.multi_reduction <maximumf>, %256, %cst_76 [2] : vector<2x8x8xf32> to vector<2x8xf32>
    %258 = vector.shape_cast %257 : vector<2x8xf32> to vector<2x8x1xf32>
    %259 = vector.broadcast %258 : vector<2x8x1xf32> to vector<2x8x8xf32>
    %260 = arith.subf %256, %259 : vector<2x8x8xf32>
    %261 = math.exp %260 : vector<2x8x8xf32>
    %cst_77 = arith.constant dense<0.000000e+00> : vector<2x8xf32>
    %262 = vector.multi_reduction <add>, %261, %cst_77 [2] : vector<2x8x8xf32> to vector<2x8xf32>
    %263 = vector.shape_cast %262 : vector<2x8xf32> to vector<2x8x1xf32>
    %264 = tpu.reciprocal %263 : vector<2x8x1xf32> -> vector<2x8x1xf32>
    %265 = vector.broadcast %264 : vector<2x8x1xf32> to vector<2x8x8xf32>
    %266 = arith.mulf %261, %265 : vector<2x8x8xf32>
    %267 = vector.extract_strided_slice %204 {offsets = [0, 0, 24], sizes = [2, 8, 8], strides = [1, 1, 1]} : vector<2x8x32xf32> to vector<2x8x8xf32>
    "tpu.trace_start"() <{level = 10 : i32, message = "bqk,bkd->bqd"}> : () -> ()
    %cst_78 = arith.constant dense<0.000000e+00> : vector<2x8x8xf32>
    %268 = tpu.matmul %266, %267, %cst_78 {dimension_numbers = #tpu.dot_dimension_numbers<[2], [1], [1], [2], [0, 0, 0, 1, 1, 2], [0], [0]>} : vector<2x8x8xf32>, vector<2x8x8xf32>, vector<2x8x8xf32> -> vector<2x8x8xf32>
    "tpu.trace_stop"() : () -> ()
    %269 = tpu.concatenate %220, %236, %252, %268 in 2 : vector<2x8x8xf32>, vector<2x8x8xf32>, vector<2x8x8xf32>, vector<2x8x8xf32> -> vector<2x8x32xf32>
    %270 = vector.shape_cast %269 : vector<2x8x32xf32> to vector<16x32xf32>
    %c1_79 = arith.constant 1 : index
    %c0_80 = arith.constant 0 : index
    %c0_81 = arith.constant 0 : index
    %271 = vector.load %arg4[%c1_79, %c0_80, %c0_81] : memref<2x32x32xf32, #tpu.memory_space<vmem>>, vector<1x32x32xf32>
    %272 = vector.shape_cast %271 : vector<1x32x32xf32> to vector<32x32xf32>
    %cst_82 = arith.constant dense<0.000000e+00> : vector<16x32xf32>
    %273 = tpu.matmul %270, %272, %cst_82 {dimension_numbers = #tpu.dot_dimension_numbers<[1], [0], [0], [1], [0, 0, 1, 1], [], []>} : vector<16x32xf32>, vector<32x32xf32>, vector<16x32xf32> -> vector<16x32xf32>
    %274 = vector.extract_strided_slice %0 {offsets = [9, 0], sizes = [1, 32], strides = [1, 1]} : vector<19x128xf32> to vector<1x32xf32>
    %275 = vector.broadcast %274 : vector<1x32xf32> to vector<16x32xf32>
    %276 = arith.addf %273, %275 : vector<16x32xf32>
    %277 = arith.addf %165, %276 : vector<16x32xf32>
    %278 = vector.extract_strided_slice %0 {offsets = [12, 0], sizes = [1, 32], strides = [1, 1]} : vector<19x128xf32> to vector<1x32xf32>
    %279 = vector.extract_strided_slice %0 {offsets = [13, 0], sizes = [1, 32], strides = [1, 1]} : vector<19x128xf32> to vector<1x32xf32>
    %cst_83 = arith.constant dense<0.000000e+00> : vector<16xf32>
    %280 = vector.multi_reduction <add>, %277, %cst_83 [1] : vector<16x32xf32> to vector<16xf32>
    %281 = vector.shape_cast %280 : vector<16xf32> to vector<16x1xf32>
    %cst_84 = arith.constant 3.200000e+01 : f32
    %282 = vector.broadcast %cst_84 : f32 to vector<16x1xf32>
    %283 = arith.divf %281, %282 : vector<16x1xf32>
    %284 = vector.broadcast %283 : vector<16x1xf32> to vector<16x32xf32>
    %285 = arith.subf %277, %284 : vector<16x32xf32>
    %286 = arith.mulf %285, %285 : vector<16x32xf32>
    %cst_85 = arith.constant dense<0.000000e+00> : vector<16xf32>
    %287 = vector.multi_reduction <add>, %286, %cst_85 [1] : vector<16x32xf32> to vector<16xf32>
    %288 = vector.shape_cast %287 : vector<16xf32> to vector<16x1xf32>
    %cst_86 = arith.constant 0.0322580636 : f32
    %289 = vector.broadcast %cst_86 : f32 to vector<16x1xf32>
    %290 = arith.mulf %288, %289 : vector<16x1xf32>
    %291 = math.sqrt %290 : vector<16x1xf32>
    %cst_87 = arith.constant 9.99999997E-7 : f32
    %292 = vector.broadcast %cst_87 : f32 to vector<16x1xf32>
    %293 = arith.addf %291, %292 : vector<16x1xf32>
    %294 = tpu.reciprocal %293 : vector<16x1xf32> -> vector<16x1xf32>
    %295 = vector.broadcast %283 : vector<16x1xf32> to vector<16x32xf32>
    %296 = arith.subf %277, %295 : vector<16x32xf32>
    %297 = vector.broadcast %278 : vector<1x32xf32> to vector<16x32xf32>
    %298 = arith.mulf %297, %296 : vector<16x32xf32>
    %299 = vector.broadcast %294 : vector<16x1xf32> to vector<16x32xf32>
    %300 = arith.mulf %298, %299 : vector<16x32xf32>
    %301 = vector.broadcast %279 : vector<1x32xf32> to vector<16x32xf32>
    %302 = arith.addf %300, %301 : vector<16x32xf32>
    %c1_88 = arith.constant 1 : index
    %c0_89 = arith.constant 0 : index
    %c0_90 = arith.constant 0 : index
    %303 = vector.load %arg5[%c1_88, %c0_89, %c0_90] : memref<2x32x64xf32, #tpu.memory_space<vmem>>, vector<1x32x64xf32>
    %304 = vector.shape_cast %303 : vector<1x32x64xf32> to vector<32x64xf32>
    %cst_91 = arith.constant dense<0.000000e+00> : vector<16x64xf32>
    %305 = tpu.matmul %302, %304, %cst_91 {dimension_numbers = #tpu.dot_dimension_numbers<[1], [0], [0], [1], [0, 0, 1, 1], [], []>} : vector<16x32xf32>, vector<32x64xf32>, vector<16x64xf32> -> vector<16x64xf32>
    %306 = vector.extract_strided_slice %0 {offsets = [14, 0], sizes = [1, 64], strides = [1, 1]} : vector<19x128xf32> to vector<1x64xf32>
    %307 = vector.broadcast %306 : vector<1x64xf32> to vector<16x64xf32>
    %308 = arith.addf %305, %307 : vector<16x64xf32>
    %cst_92 = arith.constant 0.000000e+00 : f32
    %309 = vector.broadcast %cst_92 : f32 to vector<16x64xf32>
    %310 = arith.maximumf %308, %309 : vector<16x64xf32>
    %c1_93 = arith.constant 1 : index
    %c0_94 = arith.constant 0 : index
    %c0_95 = arith.constant 0 : index
    %311 = vector.load %arg6[%c1_93, %c0_94, %c0_95] : memref<2x64x32xf32, #tpu.memory_space<vmem>>, vector<1x64x32xf32>
    %312 = vector.shape_cast %311 : vector<1x64x32xf32> to vector<64x32xf32>
    %cst_96 = arith.constant dense<0.000000e+00> : vector<16x32xf32>
    %313 = tpu.matmul %310, %312, %cst_96 {dimension_numbers = #tpu.dot_dimension_numbers<[1], [0], [0], [1], [0, 0, 1, 1], [], []>} : vector<16x64xf32>, vector<64x32xf32>, vector<16x32xf32> -> vector<16x32xf32>
    %314 = vector.extract_strided_slice %0 {offsets = [15, 0], sizes = [1, 32], strides = [1, 1]} : vector<19x128xf32> to vector<1x32xf32>
    %315 = vector.broadcast %314 : vector<1x32xf32> to vector<16x32xf32>
    %316 = arith.addf %313, %315 : vector<16x32xf32>
    %317 = arith.addf %277, %316 : vector<16x32xf32>
    %318 = vector.extract_strided_slice %0 {offsets = [17, 0], sizes = [1, 32], strides = [1, 1]} : vector<19x128xf32> to vector<1x32xf32>
    %319 = vector.extract_strided_slice %0 {offsets = [18, 0], sizes = [1, 32], strides = [1, 1]} : vector<19x128xf32> to vector<1x32xf32>
    %cst_97 = arith.constant dense<0.000000e+00> : vector<16xf32>
    %320 = vector.multi_reduction <add>, %317, %cst_97 [1] : vector<16x32xf32> to vector<16xf32>
    %321 = vector.shape_cast %320 : vector<16xf32> to vector<16x1xf32>
    %cst_98 = arith.constant 3.200000e+01 : f32
    %322 = vector.broadcast %cst_98 : f32 to vector<16x1xf32>
    %323 = arith.divf %321, %322 : vector<16x1xf32>
    %324 = vector.broadcast %323 : vector<16x1xf32> to vector<16x32xf32>
    %325 = arith.subf %317, %324 : vector<16x32xf32>
    %326 = arith.mulf %325, %325 : vector<16x32xf32>
    %cst_99 = arith.constant dense<0.000000e+00> : vector<16xf32>
    %327 = vector.multi_reduction <add>, %326, %cst_99 [1] : vector<16x32xf32> to vector<16xf32>
    %328 = vector.shape_cast %327 : vector<16xf32> to vector<16x1xf32>
    %cst_100 = arith.constant 0.0322580636 : f32
    %329 = vector.broadcast %cst_100 : f32 to vector<16x1xf32>
    %330 = arith.mulf %328, %329 : vector<16x1xf32>
    %331 = math.sqrt %330 : vector<16x1xf32>
    %cst_101 = arith.constant 9.99999997E-7 : f32
    %332 = vector.broadcast %cst_101 : f32 to vector<16x1xf32>
    %333 = arith.addf %331, %332 : vector<16x1xf32>
    %334 = tpu.reciprocal %333 : vector<16x1xf32> -> vector<16x1xf32>
    %335 = vector.broadcast %323 : vector<16x1xf32> to vector<16x32xf32>
    %336 = arith.subf %317, %335 : vector<16x32xf32>
    %337 = vector.broadcast %318 : vector<1x32xf32> to vector<16x32xf32>
    %338 = arith.mulf %337, %336 : vector<16x32xf32>
    %339 = vector.broadcast %334 : vector<16x1xf32> to vector<16x32xf32>
    %340 = arith.mulf %338, %339 : vector<16x32xf32>
    %341 = vector.broadcast %319 : vector<1x32xf32> to vector<16x32xf32>
    %342 = arith.addf %340, %341 : vector<16x32xf32>
    %c0_102 = arith.constant 0 : index
    %c0_103 = arith.constant 0 : index
    %343 = vector.load %arg8[%c0_102, %c0_103] : memref<16x32xf32, #tpu.memory_space<vmem>>, vector<16x32xf32>
    tpu.vector_store %arg8[%c0_102, %c0_103], %342 {strides = array<i32>} : memref<16x32xf32, #tpu.memory_space<vmem>>, vector<16x32xf32>,
    return
  }
}

</mosaic_0001>

<bundles_post_ra>
// kernel: tpu_custom_call.1
= control target key start
LH: loop header
LB: loop body
LE: loop exit
PB: predicated region body
PF: predicated region fallthrough
CT: control target
= control target key end

     0   :  { %s3627_s0 = inlined_call_operand.vmem [shape: f32[16,768], index: 0, kind: input, shape index: {}]   ;;  %s3628_s1 = inlined_call_operand.vmem [shape: f32[2,1,8], index: 1, kind: input, shape index: {}]   ;;  %s3629_s2 = inlined_call_operand.vmem [shape: f32[768,32], index: 2, kind: input, shape index: {}]   ;;  %s3630_s3 = inlined_call_operand.vmem [shape: f32[2,32,96], index: 3, kind: input, shape index: {}]   ;;  %s3631_s4 = inlined_call_operand.vmem [shape: f32[2,32,32], index: 4, kind: input, shape index: {}]   ;;  %s3632_s5 = inlined_call_operand.vmem [shape: f32[2,32,64], index: 5, kind: input, shape index: {}]   ;;  %s3633_s6 = inlined_call_operand.vmem [shape: f32[2,64,32], index: 6, kind: input, shape index: {}]   ;;  %s3634_s7 = inlined_call_operand.vmem [shape: f32[19,128], index: 7, kind: input, shape index: {}]   ;;  %s3635_s8 = inlined_call_operand.hbm [shape: f32[16,32], index: 8, kind: output, shape index: {}]  }
   0x1   :  { %v60_v0 = vld [vmem:[%s3629_s2 + $0x78] sm:$0xff]  ;;  %v59_v1 = vld [vmem:[%s3629_s2 + $0x70] sm:$0xff]  ;;  %v58_v4 = vld [vmem:[%s3629_s2 + $0x68] sm:$0xff] }
   0x2   :  { %v76_v2 = vld [vmem:[%s3629_s2 + $0xf8] sm:$0xff]  ;;  %142 = vmatpush.msra.mxu0 %v60_v0  ;;  %v75_v3 = vld [vmem:[%s3629_s2 + $0xf0] sm:$0xff]  ;;  %v74_v5 = vld [vmem:[%s3629_s2 + $0xe8] sm:$0xff] }
   0x3   :  { %165 = vmatpush.msra.mxu1 %v76_v2  ;;  %v57_v6 = vld [vmem:[%s3629_s2 + $0x60] sm:$0xff]  ;;  %v92_v8 = vld [vmem:[%s3629_s2 + $0x178] sm:$0xff]  ;;  %v91_v9 = vld [vmem:[%s3629_s2 + $0x170] sm:$0xff] }
   0x4   :  { %143 = vmatpush.msra.mxu0 %v59_v1  ;;  %v73_v7 = vld [vmem:[%s3629_s2 + $0xe0] sm:$0xff]  ;;  %v108_v10 = vld [vmem:[%s3629_s2 + $0x1f8] sm:$0xff]  ;;  %188 = vmatpush.msra.mxu2 %v92_v8  ;;  %v90_v13 = vld [vmem:[%s3629_s2 + $0x168] sm:$0xff] }
   0x5   :  { %166 = vmatpush.msra.mxu1 %v75_v3  ;;  %v56_v11 = vld [vmem:[%s3629_s2 + $0x58] sm:$0xff]  ;;  %211 = vmatpush.msra.mxu3 %v108_v10  ;;  %v107_v14 = vld [vmem:[%s3629_s2 + $0x1f0] sm:$0xff]  ;;  %v106_v17 = vld [vmem:[%s3629_s2 + $0x1e8] sm:$0xff] }
   0x6   :  { %144 = vmatpush.msra.mxu0 %v58_v4  ;;  %v72_v12 = vld [vmem:[%s3629_s2 + $0xd8] sm:$0xff]  ;;  %v55_v15 = vld [vmem:[%s3629_s2 + $0x50] sm:$0xff]  ;;  %189 = vmatpush.msra.mxu2 %v91_v9  ;;  %v89_v18 = vld [vmem:[%s3629_s2 + $0x160] sm:$0xff] }
   0x7   :  { %167 = vmatpush.msra.mxu1 %v74_v5  ;;  %v71_v16 = vld [vmem:[%s3629_s2 + $0xd0] sm:$0xff]  ;;  %212 = vmatpush.msra.mxu3 %v107_v14  ;;  %v105_v19 = vld [vmem:[%s3629_s2 + $0x1e0] sm:$0xff]  ;;  %v54_v20 = vld [vmem:[%s3629_s2 + $0x48] sm:$0xff] }
   0x8   :  { %145 = vmatpush.msra.mxu0 %v57_v6  ;;  %v70_v21 = vld [vmem:[%s3629_s2 + $0xc8] sm:$0xff]  ;;  %190 = vmatpush.msra.mxu2 %v90_v13  ;;  %v88_v22 = vld [vmem:[%s3629_s2 + $0x158] sm:$0xff]  ;;  %v53_v24 = vld [vmem:[%s3629_s2 + $0x40] sm:$0xff] }
   0x9   :  { %168 = vmatpush.msra.mxu1 %v73_v7  ;;  %213 = vmatpush.msra.mxu3 %v106_v17  ;;  %v104_v23 = vld [vmem:[%s3629_s2 + $0x1d8] sm:$0xff]  ;;  %v69_v25 = vld [vmem:[%s3629_s2 + $0xc0] sm:$0xff]  ;;  %v87_v26 = vld [vmem:[%s3629_s2 + $0x150] sm:$0xff] }
   0xa   :  { %146 = vmatpush.msra.mxu0 %v56_v11  ;;  %191 = vmatpush.msra.mxu2 %v89_v18  ;;  %v103_v27 = vld [vmem:[%s3629_s2 + $0x1d0] sm:$0xff]  ;;  %v52_v28 = vld [vmem:[%s3629_s2 + $0x38] sm:$0xff]  ;;  %v86_v30 = vld [vmem:[%s3629_s2 + $0x148] sm:$0xff] }
   0xb   :  { %169 = vmatpush.msra.mxu1 %v72_v12  ;;  %214 = vmatpush.msra.mxu3 %v105_v19  ;;  %v68_v29 = vld [vmem:[%s3629_s2 + $0xb8] sm:$0xff]  ;;  %v102_v31 = vld [vmem:[%s3629_s2 + $0x1c8] sm:$0xff]  ;;  %v51_v32 = vld [vmem:[%s3629_s2 + $0x30] sm:$0xff] }
   0xc   :  { %147 = vmatpush.msra.mxu0 %v55_v15  ;;  %192 = vmatpush.msra.mxu2 %v88_v22  ;;  %v67_v33 = vld [vmem:[%s3629_s2 + $0xb0] sm:$0xff]  ;;  %v85_v34 = vld [vmem:[%s3629_s2 + $0x140] sm:$0xff]  ;;  %v50_v36 = vld [vmem:[%s3629_s2 + $0x28] sm:$0xff] }
   0xd   :  { %170 = vmatpush.msra.mxu1 %v71_v16  ;;  %215 = vmatpush.msra.mxu3 %v104_v23  ;;  %v101_v35 = vld [vmem:[%s3629_s2 + $0x1c0] sm:$0xff]  ;;  %v66_v37 = vld [vmem:[%s3629_s2 + $0xa8] sm:$0xff]  ;;  %v84_v38 = vld [vmem:[%s3629_s2 + $0x138] sm:$0xff] }
   0xe   :  { %148 = vmatpush.msra.mxu0 %v54_v20  ;;  %193 = vmatpush.msra.mxu2 %v87_v26  ;;  %v100_v39 = vld [vmem:[%s3629_s2 + $0x1b8] sm:$0xff]  ;;  %v49_v40 = vld [vmem:[%s3629_s2 + $0x20] sm:$0xff]  ;;  %v83_v42 = vld [vmem:[%s3629_s2 + $0x130] sm:$0xff] }
   0xf   :  { %171 = vmatpush.msra.mxu1 %v70_v21  ;;  %216 = vmatpush.msra.mxu3 %v103_v27  ;;  %v65_v41 = vld [vmem:[%s3629_s2 + $0xa0] sm:$0xff]  ;;  %v99_v43 = vld [vmem:[%s3629_s2 + $0x1b0] sm:$0xff]  ;;  %v48_v44 = vld [vmem:[%s3629_s2 + $0x18] sm:$0xff] }
  0x10   :  { %149 = vmatpush.msra.mxu0 %v53_v24  ;;  %194 = vmatpush.msra.mxu2 %v86_v30  ;;  %v64_v45 = vld [vmem:[%s3629_s2 + $0x98] sm:$0xff]  ;;  %v82_v46 = vld [vmem:[%s3629_s2 + $0x128] sm:$0xff]  ;;  %v47_v48 = vld [vmem:[%s3629_s2 + $0x10] sm:$0xff] }
  0x11   :  { %172 = vmatpush.msra.mxu1 %v69_v25  ;;  %217 = vmatpush.msra.mxu3 %v102_v31  ;;  %v98_v47 = vld [vmem:[%s3629_s2 + $0x1a8] sm:$0xff]  ;;  %v63_v49 = vld [vmem:[%s3629_s2 + $0x90] sm:$0xff]  ;;  %v81_v50 = vld [vmem:[%s3629_s2 + $0x120] sm:$0xff] }
  0x12   :  { %150 = vmatpush.msra.mxu0 %v52_v28  ;;  %195 = vmatpush.msra.mxu2 %v85_v34  ;;  %v97_v51 = vld [vmem:[%s3629_s2 + $0x1a0] sm:$0xff]  ;;  %v46_v52 = vld [vmem:[%s3629_s2 + $0x8] sm:$0xff]  ;;  %v80_v54 = vld [vmem:[%s3629_s2 + $0x118] sm:$0xff] }
  0x13   :  { %173 = vmatpush.msra.mxu1 %v68_v29  ;;  %218 = vmatpush.msra.mxu3 %v101_v35  ;;  %v62_v53 = vld [vmem:[%s3629_s2 + $0x88] sm:$0xff]  ;;  %v96_v55 = vld [vmem:[%s3629_s2 + $0x198] sm:$0xff]  ;;  %v45_v56 = vld [vmem:[%s3629_s2] sm:$0xff] }
  0x14   :  { %151 = vmatpush.msra.mxu0 %v51_v32  ;;  %196 = vmatpush.msra.mxu2 %v84_v38  ;;  %v61_v57 = vld [vmem:[%s3629_s2 + $0x80] sm:$0xff]  ;;  %v124_v58 = vld [vmem:[%s3629_s2 + $0x278] sm:$0xff]  ;;  %v79_v60 = vld [vmem:[%s3629_s2 + $0x110] sm:$0xff] }
  0x15   :  { %174 = vmatpush.msra.mxu1 %v67_v33  ;;  %219 = vmatpush.msra.mxu3 %v100_v39  ;;  %v140_v59 = vld [vmem:[%s3629_s2 + $0x2f8] sm:$0xff]  ;;  %v95_v61 = vld [vmem:[%s3629_s2 + $0x190] sm:$0xff]  ;;  %v78_v0 = vld [vmem:[%s3629_s2 + $0x108] sm:$0xff] }
  0x16   :  { %152 = vmatpush.msra.mxu0 %v50_v36  ;;  %197 = vmatpush.msra.mxu2 %v83_v42  ;;  %v123_v62 = vld [vmem:[%s3629_s2 + $0x270] sm:$0xff]  ;;  %v94_v1 = vld [vmem:[%s3629_s2 + $0x188] sm:$0xff]  ;;  %v77_v4 = vld [vmem:[%s3629_s2 + $0x100] sm:$0xff] }
  0x17   :  { %175 = vmatpush.msra.mxu1 %v66_v37  ;;  %220 = vmatpush.msra.mxu3 %v99_v43  ;;  %v139_v63 = vld [vmem:[%s3629_s2 + $0x2f0] sm:$0xff]  ;;  %v122_v2 = vld [vmem:[%s3629_s2 + $0x268] sm:$0xff]  ;;  %v93_v5 = vld [vmem:[%s3629_s2 + $0x180] sm:$0xff] }
  0x18   :  { %153 = vmatpush.msra.mxu0 %v49_v40  ;;  %198 = vmatpush.msra.mxu2 %v82_v46  ;;  %v138_v3 = vld [vmem:[%s3629_s2 + $0x2e8] sm:$0xff]  ;;  %v121_v6 = vld [vmem:[%s3629_s2 + $0x260] sm:$0xff] }
  0x19   :  { %176 = vmatpush.msra.mxu1 %v65_v41  ;;  %221 = vmatpush.msra.mxu3 %v98_v47  ;;  %v137_v7 = vld [vmem:[%s3629_s2 + $0x2e0] sm:$0xff] }
  0x1a   :  { %154 = vmatpush.msra.mxu0 %v48_v44  ;;  %199 = vmatpush.msra.mxu2 %v81_v50 }
  0x1b   :  { %177 = vmatpush.msra.mxu1 %v64_v45  ;;  %222 = vmatpush.msra.mxu3 %v97_v51 }
  0x1c   :  { %155 = vmatpush.msra.mxu0 %v47_v48  ;;  %200 = vmatpush.msra.mxu2 %v80_v54 }
  0x1d   :  { %178 = vmatpush.msra.mxu1 %v63_v49  ;;  %223 = vmatpush.msra.mxu3 %v96_v55 }
  0x1e   :  { %156 = vmatpush.msra.mxu0 %v46_v52  ;;  %201 = vmatpush.msra.mxu2 %v79_v60 }
  0x1f   :  { %179 = vmatpush.msra.mxu1 %v62_v53  ;;  %224 = vmatpush.msra.mxu3 %v95_v61 }
  0x20   :  { %157 = vmatpush.msra.mxu0 %v45_v56  ;;  %202 = vmatpush.msra.mxu2 %v78_v0 }
  0x21   :  { %180 = vmatpush.msra.mxu1 %v61_v57  ;;  %225 = vmatpush.msra.mxu3 %v94_v1 }
  0x22   :  { %234 = vmatpush.msrb.mxu0 %v124_v58 }
  0x23   :  { %257 = vmatpush.msrb.mxu1 %v140_v59 }
  0x24   :  { %235 = vmatpush.msrb.mxu0 %v123_v62 }
  0x25   :  { %258 = vmatpush.msrb.mxu1 %v139_v63 }
  0x26   :  { %13 = vsyncpa [#allocation3], 0  ;;  %236 = vmatpush.msrb.mxu0 %v122_v2  ;;  %v35_v8 = vld [vmem:[%s3627_s0 + $0x10] sm:$0xff]  ;;  %v33_v9 = vld [vmem:[%s3627_s0] sm:$0xff]  ;;  %203 = vmatpush.msra.mxu2 %v77_v4  ;;  %vm292_vm0 = vcmask 261120   ;;  %s2601_s11 = smov 96  }
  0x27   :  { %259 = vmatpush.msrb.mxu1 %v138_v3  ;;  %v120_v10 = vld [vmem:[%s3629_s2 + $0x258] sm:$0xff]  ;;  %226 = vmatpush.msra.mxu3 %v93_v5  ;;  %v34_v13 = vld [vmem:[%s3627_s0 + $0x8] sm:$0xff]  ;;  %v119_v14 = vld [vmem:[%s3629_s2 + $0x250] sm:$0xff]  ;;  %s2602_s12 = smov 64   ;;  %vm421_vm14 = vcmask 64512   ;;  %s2604_s17 = smov 56  }
  0x28   :  { %v136_v11 = vld [vmem:[%s3629_s2 + $0x2d8] sm:$0xff]  ;;  %237 = vmatpush.msrb.mxu0 %v121_v6  ;;  %v135_v15 = vld [vmem:[%s3629_s2 + $0x2d0] sm:$0xff]  ;;  %204 = vmatmul.f32.vlgmr.msra.gmra.mxu2 %v35_v8  ;;  %v118_v16 = vld [vmem:[%s3629_s2 + $0x248] sm:$0xff]  ;;  %v2600_v8 = vmov 32.0   ;;  %s2605_s18 = smov 80   ;;  %s2606_s19 = smov 120  }
  0x29   :  { %260 = vmatpush.msrb.mxu1 %v137_v7  ;;  %v36_v12 = vld [vmem:[%s3627_s0 + $0x18] sm:$0xff]  ;;  %158 = vmatmul.f32.vlgmr.msra.gmra.mxu0 %v33_v9  ;;  %v134_v17 = vld [vmem:[%s3629_s2 + $0x2c8] sm:$0xff]  ;;  %v117_v18 = vld [vmem:[%s3629_s2 + $0x240] sm:$0xff]  ;;  %2465 = vrcp.f32 %v2600_v8  ;;  %s2607_s20 = smov 112   ;;  %s2608_s21 = smov 104  }
  0x2a   :  { %238 = vmatpush.msrb.mxu0 %v120_v10  ;;  %227 = vmatmul.f32.vlgmr.msra.gmra.mxu3 %v36_v12  ;;  %v133_v19 = vld [vmem:[%s3629_s2 + $0x2c0] sm:$0xff]  ;;  %v39_v21 = vld [vmem:[%s3627_s0 + $0x30] sm:$0xff]  ;;  %v116_v22 = vld [vmem:[%s3629_s2 + $0x238] sm:$0xff]  ;;  %s2610_s22 = smov 48   ;;  %s2611_s23 = smov 40  }
  0x2b   :  { %261 = vmatpush.msrb.mxu1 %v136_v11  ;;  %v41_v20 = vld [vmem:[%s3627_s0 + $0x40] sm:$0xff]  ;;  %v132_v23 = vld [vmem:[%s3629_s2 + $0x2b8] sm:$0xff]  ;;  %v42_v24 = vld [vmem:[%s3627_s0 + $0x48] sm:$0xff]  ;;  %s2613_s24 = smov 16   ;;  %s2614_s25 = smov 24  }
  0x2c   :  { %181 = vmatmul.f32.vlgmr.msra.gmra.mxu1 %v34_v13  ;;  %239 = vmatpush.msrb.mxu0 %v119_v14  ;;  %v40_v25 = vld [vmem:[%s3627_s0 + $0x38] sm:$0xff]  ;;  %v115_v26 = vld [vmem:[%s3629_s2 + $0x230] sm:$0xff]  ;;  %v114_v28 = vld [vmem:[%s3629_s2 + $0x228] sm:$0xff] }
  0x2d   :  { %262 = vmatpush.msrb.mxu1 %v135_v15  ;;  %v131_v27 = vld [vmem:[%s3629_s2 + $0x2b0] sm:$0xff]  ;;  %v130_v29 = vld [vmem:[%s3629_s2 + $0x2a8] sm:$0xff]  ;;  %v113_v30 = vld [vmem:[%s3629_s2 + $0x220] sm:$0xff] }
  0x2e   :  { %240 = vmatpush.msrb.mxu0 %v118_v16  ;;  %v129_v31 = vld [vmem:[%s3629_s2 + $0x2a0] sm:$0xff]  ;;  %v112_v32 = vld [vmem:[%s3629_s2 + $0x218] sm:$0xff]  ;;  %v111_v34 = vld [vmem:[%s3629_s2 + $0x210] sm:$0xff] }
  0x2f   :  { %263 = vmatpush.msrb.mxu1 %v134_v17  ;;  %v128_v33 = vld [vmem:[%s3629_s2 + $0x298] sm:$0xff]  ;;  %v127_v35 = vld [vmem:[%s3629_s2 + $0x290] sm:$0xff]  ;;  %v110_v36 = vld [vmem:[%s3629_s2 + $0x208] sm:$0xff]  ;;  %v2466_v9 = vpop.eup %2465 }
  0x30   :  { %241 = vmatpush.msrb.mxu0 %v117_v18  ;;  %207 = vmatmul.f32.gmra.mxu2 %v41_v20  ;;  %v126_v37 = vld [vmem:[%s3629_s2 + $0x288] sm:$0xff]  ;;  %v109_v38 = vld [vmem:[%s3629_s2 + $0x200] sm:$0xff]  ;;  %v43_v42 = vld [vmem:[%s3627_s0 + $0x50] sm:$0xff]  ;;  %v300_v10 = vmul.f32 32.0, %v2466_v9  ;;  %vm304_vm1 = vweird.f32 %v2466_v9 }
  0x31   :  { %264 = vmatpush.msrb.mxu1 %v133_v19  ;;  %161 = vmatmul.f32.gmra.mxu0 %v39_v21  ;;  %v125_v39 = vld [vmem:[%s3629_s2 + $0x280] sm:$0xff]  ;;  %v38_v41 = vld [vmem:[%s3627_s0 + $0x28] sm:$0xff]  ;;  %v44_v43 = vld [vmem:[%s3627_s0 + $0x58] sm:$0xff]  ;;  %s2609_s2 = smov 72  }
  0x32   :  { %242 = vmatpush.msrb.mxu0 %v116_v22  ;;  %230 = vmatmul.f32.gmra.mxu3 %v42_v24  ;;  %v37_v40 = vld [vmem:[%s3627_s0 + $0x20] sm:$0xff]  ;;  %v32_v44 = vld [vmem:[%s3634_s7 + $0x10] sm:$0x7]  ;;  %v301_v11 = vsub.f32 1.0, %v300_v10  ;;  %s2612_s0 = smov 8  }
  0x33   :  { %265 = vmatpush.msrb.mxu1 %v132_v23  ;;  %v141_v47 = vperm.slane %v32_v44, 0 }
  0x34   :  { %184 = vmatmul.f32.gmra.mxu1 %v40_v25  ;;  %243 = vmatpush.msrb.mxu0 %v115_v26  ;;  %v302_v12 = vmul.f32 %v2466_v9, %v301_v11  ;;  %v385_v25 = vld [vmem:[%s3630_s3 + $0x18] sm:$0xff]  ;;  %v384_v26 = vld [vmem:[%s3630_s3 + $0x10] sm:$0xff] }
  0x35   :  { %266 = vmatpush.msrb.mxu1 %v131_v27  ;;  %405 = vmatpush.msrb.mxu2 %v385_v25  ;;  %v383_v27 = vld [vmem:[%s3630_s3 + $0x8] sm:$0xff] }
  0x36   :  { %244 = vmatpush.msrb.mxu0 %v114_v28  ;;  %v303_v13 = vadd.f32 %v2466_v9, %v302_v12 }
  0x37   :  { %267 = vmatpush.msrb.mxu1 %v130_v29  ;;  %406 = vmatpush.msrb.mxu2 %v384_v26  ;;  %v382_v29 = vld [vmem:[%s3630_s3] sm:$0xff] }
  0x38   :  { %245 = vmatpush.msrb.mxu0 %v113_v30  ;;  %v2997_v14 = vsel %vm304_vm1, %v2466_v9, %v303_v13 }
  0x39   :  { %268 = vmatpush.msrb.mxu1 %v129_v31  ;;  %407 = vmatpush.msrb.mxu2 %v383_v27 }
  0x3a   :  { %246 = vmatpush.msrb.mxu0 %v112_v32 }
  0x3b   :  { %269 = vmatpush.msrb.mxu1 %v128_v33  ;;  %408 = vmatpush.msrb.mxu2 %v382_v29 }
  0x3c   :  { %247 = vmatpush.msrb.mxu0 %v111_v34 }
  0x3d   :  { %270 = vmatpush.msrb.mxu1 %v127_v35 }
  0x3e   :  { %248 = vmatpush.msrb.mxu0 %v110_v36 }
  0x3f   :  { %271 = vmatpush.msrb.mxu1 %v126_v37 }
  0x40   :  { %249 = vmatpush.msrb.mxu0 %v109_v38 }
  0x41   :  { %272 = vmatpush.msrb.mxu1 %v125_v39  ;;  %250 = vmatmul.f32.vlgmr.msrb.gmra.mxu0 %v37_v40 }
  0x42   :  { %273 = vmatmul.f32.vlgmr.msrb.gmra.mxu1 %v38_v41 }
  0x49   :  { %253 = vmatmul.f32.gmra.mxu0 %v43_v42 }
  0x4a   :  { %276 = vmatmul.f32.gmra.mxu1 %v44_v43 }
  0xa6   :  { %v159_v45 = vpop.f32.mrf.mxu0 }
  0xa7   :  { %v160_v48 = vadd.f32 %v159_v45, %v141_v47 }
  0xa9   :  { %v182_v46 = vpop.f32.mrf.mxu1 }
  0xaa   :  { %v183_v52 = vadd.f32 %v182_v46, %v160_v48 }
  0xab   :  { %v205_v49 = vpop.f32.mrf.mxu2 }
  0xac   :  { %v206_v54 = vadd.f32 %v205_v49, %v183_v52 }
  0xad   :  { %v228_v53 = vpop.f32.mrf.mxu3 }
  0xae   :  { %v162_v50 = vpop.f32.mrf.mxu0  ;;  %v229_v56 = vadd.f32 %v228_v53, %v206_v54 }
  0xaf   :  { %v163_v55 = vadd.f32 %v162_v50, %v141_v47 }
  0xb1   :  { %v185_v51 = vpop.f32.mrf.mxu1 }
  0xb2   :  { %v186_v57 = vadd.f32 %v185_v51, %v163_v55 }
  0xb3   :  { %v208_v58 = vpop.f32.mrf.mxu2 }
  0xb4   :  { %v209_v62 = vadd.f32 %v208_v58, %v186_v57 }
  0xb5   :  { %v231_v0 = vpop.f32.mrf.mxu3 }
  0xb6   :  { %v232_v2 = vadd.f32 %v231_v0, %v209_v62 }
  0xbe   :  { %v251_v59 = vpop.f32.mrf.mxu0 }
  0xbf   :  { %v274_v60 = vpop.f32.mrf.mxu1  ;;  %v252_v61 = vadd.f32 %v251_v59, %v229_v56  ;;  %v3028_v56 = vld [vmem:[%s3634_s7] sm:$0xff] }
  0xc0   :  { %v374_v59 = vperm.slane %v3028_v56, 2 }
  0xc1   :  { %v2989_v63 = vadd.f32 %v274_v60, %v252_v61 }
  0xc3   :  { %v293_v1 = vsel %vm292_vm0, %v2989_v63, 0.0 }
  0xc4   :  { %294 = vadd.xlane.f32.xlu0 %v293_v1 }
  0xc6   :  { %v254_v3 = vpop.f32.mrf.mxu0 }
  0xc7   :  { %v277_v4 = vpop.f32.mrf.mxu1  ;;  %v255_v5 = vadd.f32 %v254_v3, %v232_v2 }
  0xc9   :  { %v2993_v6 = vadd.f32 %v277_v4, %v255_v5  ;;  %v379_v5 = vperm.slane %v3028_v56, 3 }
  0xcb   :  { %v296_v7 = vsel %vm292_vm0, %v2993_v6, 0.0 }
  0xcc   :  { %297 = vadd.xlane.f32.xlu0 %v296_v7 }
 0x137   :  { %v295_v15 = vpop.xlane.xlu0 %294 }
 0x138   :  { %v306_v16 = vmul.f32 %v2997_v14, %v295_v15 }
 0x13a   :  { %v3001_v17 = vsub.f32 %v2989_v63, %v306_v16 }
 0x13c   :  { %v310_v18 = vmul.f32 %v3001_v17, %v3001_v17  ;;  %v375_v2 = vmul.f32 %v374_v59, %v3001_v17 }
 0x13e   :  { %v312_v19 = vsel %vm292_vm0, %v310_v18, 0.0 }
 0x13f   :  { %313 = vadd.xlane.f32.xlu1 %v312_v19  ;;  %v298_v20 = vpop.xlane.xlu0 %297 }
 0x140   :  { %v307_v21 = vmul.f32 %v2997_v14, %v298_v20 }
 0x142   :  { %v3008_v22 = vsub.f32 %v2993_v6, %v307_v21 }
 0x144   :  { %v311_v23 = vmul.f32 %v3008_v22, %v3008_v22  ;;  %v376_v18 = vmul.f32 %v374_v59, %v3008_v22 }
 0x146   :  { %v315_v24 = vsel %vm292_vm0, %v311_v23, 0.0 }
 0x147   :  { %316 = vadd.xlane.f32.xlu1 %v315_v24  ;;  %v386_v24 = vperm.slane %v3028_v56, 0 }
 0x1b2   :  { %v314_v28 = vpop.xlane.xlu1 %313 }
 0x1b3   :  { %v318_v30 = vmul.f32 0.032258064, %v314_v28 }
 0x1b5   :  { %2467 = vrsqrt.f32 %v318_v30  ;;  %vm327_vm2 = vcmp.eq.f32.partialorder %v318_v30, inf  ;;  %v330_v43 = vand.u32 2147483648, %v318_v30  ;;  %vm329_vm3 = vcmp.eq.f32.partialorder %v318_v30, 0.0 }
 0x1ba   :  { %v317_v31 = vpop.xlane.xlu1 %316 }
 0x1bb   :  { %v2468_v32 = vpop.eup %2467  ;;  %v319_v33 = vmul.f32 0.032258064, %v317_v31 }
 0x1bc   :  { %v321_v34 = vmul.f32 %v2468_v32, %v318_v30 }
 0x1bd   :  { %2469 = vrsqrt.f32 %v319_v33  ;;  %vm339_vm4 = vcmp.eq.f32.partialorder %v319_v33, inf  ;;  %v342_v51 = vand.u32 2147483648, %v319_v33  ;;  %vm341_vm5 = vcmp.eq.f32.partialorder %v319_v33, 0.0 }
 0x1be   :  { %v322_v35 = vmul.f32 %v2468_v32, %v321_v34 }
 0x1c0   :  { %v323_v36 = vmul.f32 0.5, %v322_v35 }
 0x1c2   :  { %v324_v37 = vsub.f32 1.5, %v323_v36  ;;  %v281_v36 = vld [vmem:[%s3628_s1 + $0x1] sm:$0x1] }
 0x1c3   :  { %v2470_v38 = vpop.eup %2469 }
 0x1c4   :  { %v325_v39 = vmul.f32 %v2468_v32, %v324_v37  ;;  %v333_v40 = vmul.f32 %v2470_v38, %v319_v33 }
 0x1c6   :  { %v326_v41 = vmul.f32 %v325_v39, %v318_v30  ;;  %v334_v42 = vmul.f32 %v2470_v38, %v333_v40 }
 0x1c8   :  { %v328_v44 = vsel %vm327_vm2, %v318_v30, %v326_v41  ;;  %v335_v45 = vmul.f32 0.5, %v334_v42 }
 0x1c9   :  { %v331_v46 = vsel %vm329_vm3, %v330_v43, %v328_v44 }
 0x1ca   :  { %v336_v47 = vsub.f32 1.5, %v335_v45  ;;  %v344_v48 = vadd.f32 1e-06, %v331_v46 }
 0x1cc   :  { %v337_v49 = vmul.f32 %v2470_v38, %v336_v47  ;;  %2471 = vrcp.f32 %v344_v48  ;;  %v357_v60 = vand.u32 2147483648, %v344_v48  ;;  %v355_v62 = vand.u32 2147483647, %v344_v48 }
 0x1cd   :  { %vm351_vm7 = vweird.f32 %v344_v48  ;;  %v2343_v38 = vadd.f32 -1.0, %v281_v36 }
 0x1ce   :  { %v338_v50 = vmul.f32 %v337_v49, %v319_v33  ;;  %v358_v3 = vor.u32 1.1754944e-38, %v357_v60  ;;  %vm356_vm9 = vcmp.eq.f32.partialorder %v355_v62, 8.507059e+37 }
 0x1cf   :  { %v285_v41 = vmul.f32 1e+09, %v2343_v38 }
 0x1d0   :  { %v340_v52 = vsel %vm339_vm4, %v319_v33, %v338_v50  ;;  %v280_v33 = vld [vmem:[%s3628_s1] sm:$0x1]  ;;  %s2603_s1 = smov 88  }
 0x1d1   :  { %v343_v53 = vsel %vm341_vm5, %v342_v51, %v340_v52  ;;  %v2342_v34 = vadd.f32 -1.0, %v280_v33  ;;  %v3066_v43 = vperm.slane %v285_v41, 0 }
 0x1d2   :  { %v2472_v54 = vpop.eup %2471  ;;  %v345_v55 = vadd.f32 1e-06, %v343_v53 }
 0x1d3   :  { %v347_v57 = vmul.f32 %v2472_v54, %v344_v48  ;;  %vm352_vm6 = vweird.f32 %v2472_v54  ;;  %v284_v35 = vmul.f32 1e+09, %v2342_v34 }
 0x1d4   :  { %2473 = vrcp.f32 %v345_v55  ;;  %vm353_vm8 = vmor %vm351_vm7, %vm352_vm6  ;;  %v371_v11 = vand.u32 2147483648, %v345_v55  ;;  %v369_v15 = vand.u32 2147483647, %v345_v55  ;;  %vm365_vm11 = vweird.f32 %v345_v55 }
 0x1d5   :  { %v348_v58 = vsub.f32 1.0, %v347_v57  ;;  %v3062_v37 = vperm.slane %v284_v35, 0 }
 0x1d6   :  { %v372_v17 = vor.u32 1.1754944e-38, %v371_v11  ;;  %vm370_vm13 = vcmp.eq.f32.partialorder %v369_v15, 8.507059e+37 }
 0x1d7   :  { %v349_v61 = vmul.f32 %v2472_v54, %v348_v58 }
 0x1d9   :  { %v350_v0 = vadd.f32 %v2472_v54, %v349_v61 }
 0x1da   :  { %v2474_v1 = vpop.eup %2473 }
 0x1db   :  { %v354_v4 = vsel %vm353_vm8, %v2472_v54, %v350_v0  ;;  %v361_v7 = vmul.f32 %v2474_v1, %v345_v55  ;;  %vm366_vm10 = vweird.f32 %v2474_v1 }
 0x1dc   :  { %v359_v8 = vsel %vm356_vm9, %v358_v3, %v354_v4  ;;  %vm367_vm12 = vmor %vm365_vm11, %vm366_vm10 }
 0x1dd   :  { %v377_v9 = vmul.f32 %v375_v2, %v359_v8  ;;  %v362_v10 = vsub.f32 1.0, %v361_v7 }
 0x1df   :  { %v380_v12 = vadd.f32 %v379_v5, %v377_v9  ;;  %v363_v13 = vmul.f32 %v2474_v1, %v362_v10 }
 0x1e1   :  { %2344 = vmatmul.msk.f32.vlgmr.msrb.gmra.mxu2 %vm292_vm0, %v380_v12  ;;  %v364_v16 = vadd.f32 %v2474_v1, %v363_v13 }
 0x1e3   :  { %v368_v19 = vsel %vm367_vm12, %v2474_v1, %v364_v16 }
 0x1e4   :  { %v373_v20 = vsel %vm370_vm13, %v372_v17, %v368_v19 }
 0x1e5   :  { %v378_v21 = vmul.f32 %v376_v18, %v373_v20 }
 0x1e7   :  { %v381_v23 = vadd.f32 %v379_v5, %v378_v21 }
 0x1e9   :  { %2345 = vmatmul.msk.f32.gmra.mxu2 %vm292_vm0, %v381_v23 }
 0x264   :  { %v410_v25 = vpop.f32.mrf.mxu2 }
 0x265   :  { %v3037_v26 = vadd.f32 %v410_v25, %v386_v24 }
 0x267   :  { %419 = vrot.lane.b32.xlu2 %v3037_v26, %s2601_s11  ;;  %v3049_v29 = vmul.f32 0.35355338, %v3037_v26 }
 0x26c   :  { %v413_v27 = vpop.f32.mrf.mxu2 }
 0x26d   :  { %v3041_v28 = vadd.f32 %v413_v27, %v386_v24 }
 0x26f   :  { %448 = vrot.lane.b32.xlu2 %v3041_v28, %s2601_s11  ;;  %v417_v31 = vmul.f32 0.35355338, %v3041_v28 }
 0x277   :  { %549 = vrot.lane.b32.xlu2 %v3041_v28, %s2602_s12 }
 0x2c1   :  { %v420_v22 = vpop.permute.xlu2 %419 }
 0x2c2   :  { %2346 = vmatpush.xpose.msk.msrb.mxu3 %vm421_vm14, %v420_v22 }
 0x2c5   :  { %2347 = vmatmul.msk.f32.vlgmr.msrb.gmra.mxu3 %vm421_vm14, %v3049_v29 }
 0x2c9   :  { %v449_v30 = vpop.permute.xlu2 %448 }
 0x2ca   :  { %2348 = vmatpush.xpose.msk.msra.mxu3 %vm421_vm14, %v449_v30 }
 0x2cd   :  { %2349 = vmatmul.msk.f32.vlgmr.msra.gmra.mxu3 %vm421_vm14, %v417_v31 }
 0x2d1   :  { %v550_v32 = vpop.permute.xlu2 %549 }
 0x2d2   :  { %570 = vmatpush.msrb.mxu3 %v550_v32 }
 0x348   :  { %v444_v39 = vpop.f32.mrf.mxu3 }
 0x349   :  { %v445_v40 = vadd.f32 %v444_v39, %v3062_v37 }
 0x34b   :  { %v475_v42 = vsel %vm421_vm14, %v445_v40, -inf }
 0x34c   :  { %476 = vmax.xlane.f32.xlu2 %v475_v42 }
 0x350   :  { %v472_v44 = vpop.f32.mrf.mxu3 }
 0x351   :  { %v473_v45 = vadd.f32 %v472_v44, %v3066_v43 }
 0x353   :  { %v478_v46 = vsel %vm421_vm14, %v473_v45, -inf }
 0x354   :  { %479 = vmax.xlane.f32.xlu0 %v478_v46 }
 0x364   :  { %523 = vrot.lane.b32.xlu2 %v3037_v26, %s2602_s12 }
 0x368   :  { %605 = vrot.lane.b32.xlu0 %v3041_v28, %s2603_s1 }
 0x36c   :  { %705 = vrot.lane.b32.xlu2 %v3041_v28, %s2604_s17 }
 0x374   :  { %733 = vrot.lane.b32.xlu2 %v3037_v26, %s2605_s18 }
 0x37c   :  { %761 = vrot.lane.b32.xlu2 %v3041_v28, %s2605_s18 }
 0x3bf   :  { %v477_v47 = vpop.xlane.xlu2 %476 }
 0x3c0   :  { %v481_v55 = vsub.f32 %v445_v40, %v477_v47 }
 0x3c2   :  { %v483_v57 = vmul.f32 1.442695, %v481_v55 }
 0x3c7   :  { %v480_v48 = vpop.xlane.xlu0 %479  ;;  %v524_v49 = vpop.permute.xlu2 %523 }
 0x3c8   :  { %v482_v50 = vsub.f32 %v473_v45, %v480_v48  ;;  %544 = vmatpush.msra.mxu2 %v524_v49 }
 0x3ca   :  { %v485_v51 = vmul.f32 1.442695, %v482_v50 }
 0x3cc   :  { %2475 = vpow2.f32 %v485_v51 }
 0x3cd   :  { %2477 = vpow2.f32 %v483_v57 }
 0x3cf   :  { %v3088_v60 = vpop.permute.xlu2 %705 }
 0x3d2   :  { %v2476_v52 = vpop.eup %2475 }
 0x3d3   :  { %v490_v53 = vsel %vm421_vm14, %v2476_v52, 0.0  ;;  %v2478_v58 = vpop.eup %2477 }
 0x3d4   :  { %491 = vadd.xlane.f32.xlu1 %v490_v53  ;;  %v487_v59 = vsel %vm421_vm14, %v2478_v58, 0.0 }
 0x3d7   :  { %v3090_v1 = vpop.permute.xlu2 %733 }
 0x3da   :  { %v606_v54 = vpop.permute.xlu0 %605 }
 0x3db   :  { %2354 = vmatpush.xpose.msk.msra.mxu3 %vm421_vm14, %v606_v54 }
 0x3df   :  { %v762_v12 = vpop.permute.xlu2 %761 }
 0x3ed   :  { %603 = vrot.lane.b32.xlu1 %v417_v31, %s2606_s19 }
 0x417   :  { %488 = vadd.xlane.f32.xlu1 %v487_v59 }
 0x430   :  { %575 = vrot.lane.b32.xlu1 %v3049_v29, %s2606_s19 }
 0x438   :  { %759 = vrot.lane.b32.xlu1 %v417_v31, %s2607_s20 }
 0x440   :  { %915 = vrot.lane.b32.xlu1 %v417_v31, %s2608_s21 }
 0x447   :  { %v492_v61 = vpop.xlane.xlu1 %491 }
 0x448   :  { %2479 = vrcp.f32 %v492_v61  ;;  %v518_v3 = vand.u32 2147483648, %v492_v61  ;;  %v516_v5 = vand.u32 2147483647, %v492_v61  ;;  %vm512_vm1 = vweird.f32 %v492_v61 }
 0x44a   :  { %v519_v8 = vor.u32 1.1754944e-38, %v518_v3  ;;  %vm517_vm3 = vcmp.eq.f32.partialorder %v516_v5, 8.507059e+37 }
 0x44e   :  { %v2480_v62 = vpop.eup %2479 }
 0x44f   :  { %v508_v0 = vmul.f32 %v2480_v62, %v492_v61  ;;  %vm513_vm15 = vweird.f32 %v2480_v62 }
 0x450   :  { %vm514_vm2 = vmor %vm512_vm1, %vm513_vm15 }
 0x451   :  { %v509_v2 = vsub.f32 1.0, %v508_v0 }
 0x453   :  { %v510_v4 = vmul.f32 %v2480_v62, %v509_v2 }
 0x455   :  { %v511_v7 = vadd.f32 %v2480_v62, %v510_v4 }
 0x457   :  { %v515_v9 = vsel %vm514_vm2, %v2480_v62, %v511_v7 }
 0x458   :  { %v520_v10 = vsel %vm517_vm3, %v519_v8, %v515_v9 }
 0x459   :  { %v522_v11 = vmul.f32 %v2476_v52, %v520_v10 }
 0x45b   :  { %2351 = vmatmul.msk.f32.vlgmr.msrb.gmra.mxu3 %vm421_vm14, %v522_v11 }
 0x45c   :  { %2360 = vmatpush.xpose.msk.msrb.mxu3 %vm421_vm14, %v762_v12 }
 0x45f   :  { %v604_v13 = vpop.permute.xlu1 %603 }
 0x463   :  { %2355 = vmatmul.msk.f32.vlgmr.msra.gmra.mxu3 %vm421_vm14, %v604_v13 }
 0x48a   :  { %v489_v15 = vpop.xlane.xlu1 %488 }
 0x48b   :  { %2481 = vrcp.f32 %v489_v15  ;;  %v504_v19 = vand.u32 2147483648, %v489_v15  ;;  %v502_v21 = vand.u32 2147483647, %v489_v15  ;;  %vm498_vm5 = vweird.f32 %v489_v15 }
 0x48d   :  { %v505_v24 = vor.u32 1.1754944e-38, %v504_v19  ;;  %vm503_vm7 = vcmp.eq.f32.partialorder %v502_v21, 8.507059e+37 }
 0x491   :  { %v2482_v16 = vpop.eup %2481 }
 0x492   :  { %v494_v17 = vmul.f32 %v2482_v16, %v489_v15  ;;  %vm499_vm4 = vweird.f32 %v2482_v16 }
 0x493   :  { %vm500_vm6 = vmor %vm498_vm5, %vm499_vm4 }
 0x494   :  { %v495_v18 = vsub.f32 1.0, %v494_v17 }
 0x496   :  { %v496_v20 = vmul.f32 %v2482_v16, %v495_v18 }
 0x498   :  { %v497_v23 = vadd.f32 %v2482_v16, %v496_v20 }
 0x49a   :  { %v501_v25 = vsel %vm500_vm6, %v2482_v16, %v497_v23 }
 0x49b   :  { %v506_v27 = vsel %vm503_vm7, %v505_v24, %v501_v25 }
 0x49c   :  { %v521_v22 = vmul.f32 %v2478_v58, %v506_v27 }
 0x49e   :  { %2350 = vmatmul.msk.f32.vlgmr.msra.gmra.mxu2 %vm421_vm14, %v521_v22 }
 0x4a2   :  { %v576_v30 = vpop.permute.xlu1 %575 }
 0x4aa   :  { %v760_v31 = vpop.permute.xlu1 %759 }
 0x4ab   :  { %2361 = vmatmul.msk.f32.vlgmr.msrb.gmra.mxu3 %vm421_vm14, %v760_v31 }
 0x4b2   :  { %v916_v50 = vpop.permute.xlu1 %915 }
 0x4de   :  { %v3097_v32 = vpop.f32.mrf.mxu3 }
 0x4e6   :  { %v628_v33 = vpop.f32.mrf.mxu3 }
 0x4e7   :  { %v629_v34 = vadd.f32 %v628_v33, %v3066_v43 }
 0x4e9   :  { %v634_v35 = vsel %vm421_vm14, %v629_v34, -inf }
 0x4ea   :  { %635 = vmax.xlane.f32.xlu0 %v634_v35 }
 0x4fe   :  { %577 = vrot.lane.b32.xlu0 %v3037_v26, %s2603_s1 }
 0x506   :  { %731 = vrot.lane.b32.xlu0 %v3049_v29, %s2607_s20 }
 0x50e   :  { %889 = vrot.lane.b32.xlu0 %v3037_v26, %s2609_s2 }
 0x516   :  { %917 = vrot.lane.b32.xlu0 %v3041_v28, %s2609_s2 }
 0x521   :  { %v3124_v62 = vpop.f32.mrf.mxu2 }
 0x52e   :  { %v784_v36 = vpop.f32.mrf.mxu3 }
 0x52f   :  { %v3110_v38 = vadd.f32 %v784_v36, %v3066_v43 }
 0x531   :  { %v790_v39 = vsel %vm421_vm14, %v3110_v38, -inf }
 0x532   :  { %791 = vmax.xlane.f32.xlu1 %v790_v39 }
 0x55d   :  { %v636_v40 = vpop.xlane.xlu0 %635 }
 0x55e   :  { %v638_v41 = vsub.f32 %v629_v34, %v636_v40 }
 0x560   :  { %v641_v42 = vmul.f32 1.442695, %v638_v41 }
 0x562   :  { %2483 = vpow2.f32 %v641_v42 }
 0x568   :  { %v2484_v44 = vpop.eup %2483 }
 0x569   :  { %v646_v45 = vsel %vm421_vm14, %v2484_v44, 0.0 }
 0x56a   :  { %647 = vadd.xlane.f32.xlu2 %v646_v45 }
 0x570   :  { %v578_v46 = vpop.permute.xlu0 %577 }
 0x571   :  { %2352 = vmatpush.xpose.msk.msrb.mxu2 %vm421_vm14, %v578_v46 }
 0x574   :  { %2353 = vmatmul.msk.f32.vlgmr.msrb.gmra.mxu2 %vm421_vm14, %v576_v30 }
 0x575   :  { %726 = vmatpush.msra.mxu2 %v3088_v60 }
 0x577   :  { %2358 = vmatpush.xpose.msk.msrb.mxu2 %vm421_vm14, %v3090_v1 }
 0x578   :  { %v732_v47 = vpop.permute.xlu0 %731 }
 0x580   :  { %v890_v48 = vpop.permute.xlu0 %889 }
 0x582   :  { %887 = vrot.lane.b32.xlu2 %v3049_v29, %s2608_s21 }
 0x588   :  { %v918_v49 = vpop.permute.xlu0 %917 }
 0x589   :  { %2366 = vmatpush.xpose.msk.msra.mxu3 %vm421_vm14, %v918_v49 }
 0x58c   :  { %2367 = vmatmul.msk.f32.vlgmr.msra.gmra.mxu3 %vm421_vm14, %v916_v50 }
 0x5a5   :  { %v792_v12 = vpop.xlane.xlu1 %791 }
 0x5a6   :  { %v794_v16 = vsub.f32 %v3110_v38, %v792_v12 }
 0x5a8   :  { %v797_v19 = vmul.f32 1.442695, %v794_v16 }
 0x5dd   :  { %v648_v51 = vpop.xlane.xlu2 %647 }
 0x5de   :  { %2485 = vrcp.f32 %v648_v51  ;;  %v674_v55 = vand.u32 2147483648, %v648_v51  ;;  %v672_v58 = vand.u32 2147483647, %v648_v51  ;;  %vm668_vm9 = vweird.f32 %v648_v51 }
 0x5e0   :  { %v675_v60 = vor.u32 1.1754944e-38, %v674_v55  ;;  %vm673_vm11 = vcmp.eq.f32.partialorder %v672_v58, 8.507059e+37 }
 0x5e4   :  { %v2486_v52 = vpop.eup %2485 }
 0x5e5   :  { %v664_v53 = vmul.f32 %v2486_v52, %v648_v51  ;;  %vm669_vm8 = vweird.f32 %v2486_v52  ;;  %v888_v4 = vpop.permute.xlu2 %887 }
 0x5e6   :  { %vm670_vm10 = vmor %vm668_vm9, %vm669_vm8 }
 0x5e7   :  { %v665_v54 = vsub.f32 1.0, %v664_v53 }
 0x5e9   :  { %v666_v57 = vmul.f32 %v2486_v52, %v665_v54 }
 0x5eb   :  { %v667_v59 = vadd.f32 %v2486_v52, %v666_v57 }
 0x5ed   :  { %v671_v29 = vsel %vm670_vm10, %v2486_v52, %v667_v59 }
 0x5ee   :  { %v676_v61 = vsel %vm673_vm11, %v675_v60, %v671_v29 }
 0x5ef   :  { %v678_v0 = vmul.f32 %v2484_v44, %v676_v61 }
 0x5f1   :  { %2357 = vmatmul.msk.f32.vlgmr.msra.gmra.mxu2 %vm421_vm14, %v678_v0 }
 0x5f2   :  { %2364 = vmatpush.xpose.msk.msra.mxu2 %vm421_vm14, %v890_v48 }
 0x5f7   :  { %v600_v1 = vpop.f32.mrf.mxu2 }
 0x5f8   :  { %v601_v2 = vadd.f32 %v600_v1, %v3062_v37 }
 0x5f9   :  { %2359 = vmatmul.msk.f32.vlgmr.msrb.gmra.mxu2 %vm421_vm14, %v732_v47 }
 0x5fa   :  { %v631_v3 = vsel %vm421_vm14, %v601_v2, -inf }
 0x5fb   :  { %632 = vmax.xlane.f32.xlu2 %v631_v3 }
 0x601   :  { %2365 = vmatmul.msk.f32.vlgmr.msra.gmra.mxu2 %vm421_vm14, %v888_v4 }
 0x60f   :  { %v940_v18 = vpop.f32.mrf.mxu3 }
 0x610   :  { %v941_v20 = vadd.f32 %v940_v18, %v3066_v43 }
 0x612   :  { %v946_v24 = vsel %vm421_vm14, %v941_v20, -inf }
 0x66e   :  { %v633_v5 = vpop.xlane.xlu2 %632 }
 0x66f   :  { %v637_v7 = vsub.f32 %v601_v2, %v633_v5 }
 0x671   :  { %v639_v8 = vmul.f32 1.442695, %v637_v7 }
 0x673   :  { %2487 = vpow2.f32 %v639_v8 }
 0x674   :  { %v3132_v9 = vpop.f32.mrf.mxu2  ;;  %2489 = vpow2.f32 %v797_v19 }
 0x679   :  { %v2488_v10 = vpop.eup %2487 }
 0x67a   :  { %v643_v11 = vsel %vm421_vm14, %v2488_v10, 0.0  ;;  %v3142_v27 = vpop.eup %2489 }
 0x67b   :  { %644 = vadd.xlane.f32.xlu1 %v643_v11  ;;  %v802_v22 = vsel %vm421_vm14, %v3142_v27, 0.0 }
 0x67c   :  { %v756_v13 = vpop.f32.mrf.mxu2 }
 0x67d   :  { %v757_v15 = vadd.f32 %v756_v13, %v3062_v37 }
 0x67f   :  { %v787_v17 = vsel %vm421_vm14, %v757_v15, -inf }
 0x680   :  { %788 = vmax.xlane.f32.xlu0 %v787_v17 }
 0x684   :  { %v912_v21 = vpop.f32.mrf.mxu2 }
 0x685   :  { %v913_v23 = vadd.f32 %v912_v21, %v3062_v37 }
 0x687   :  { %v943_v25 = vsel %vm421_vm14, %v913_v23, -inf }
 0x688   :  { %947 = vmax.xlane.f32.xlu0 %v946_v24  ;;  %944 = vmax.xlane.f32.xlu2 %v943_v25 }
 0x690   :  { %803 = vadd.xlane.f32.xlu0 %v802_v22 }
 0x694   :  { %835 = vrot.lane.b32.xlu1 %v3037_v26, %s2610_s22 }
 0x6a0   :  { %679 = vrot.lane.b32.xlu2 %v3037_v26, %s2604_s17 }
 0x6ee   :  { %v645_v30 = vpop.xlane.xlu1 %644 }
 0x6ef   :  { %2491 = vrcp.f32 %v645_v30  ;;  %v660_v40 = vand.u32 2147483648, %v645_v30  ;;  %v658_v41 = vand.u32 2147483647, %v645_v30  ;;  %vm654_vm13 = vweird.f32 %v645_v30 }
 0x6f1   :  { %v661_v50 = vor.u32 1.1754944e-38, %v660_v40  ;;  %vm659_vm1 = vcmp.eq.f32.partialorder %v658_v41, 8.507059e+37 }
 0x6f3   :  { %v789_v31 = vpop.xlane.xlu0 %788 }
 0x6f4   :  { %v793_v33 = vsub.f32 %v757_v15, %v789_v31 }
 0x6f5   :  { %v2492_v34 = vpop.eup %2491 }
 0x6f6   :  { %v650_v35 = vmul.f32 %v2492_v34, %v645_v30  ;;  %v795_v36 = vmul.f32 1.442695, %v793_v33  ;;  %vm655_vm12 = vweird.f32 %v2492_v34 }
 0x6f7   :  { %vm656_vm15 = vmor %vm654_vm13, %vm655_vm12 }
 0x6f8   :  { %v651_v38 = vsub.f32 1.0, %v650_v35  ;;  %2493 = vpow2.f32 %v795_v36 }
 0x6fa   :  { %v652_v39 = vmul.f32 %v2492_v34, %v651_v38 }
 0x6fb   :  { %v948_v42 = vpop.xlane.xlu0 %947  ;;  %v945_v44 = vpop.xlane.xlu2 %944 }
 0x6fc   :  { %v653_v45 = vadd.f32 %v2492_v34, %v652_v39  ;;  %v950_v46 = vsub.f32 %v941_v20, %v948_v42  ;;  %v949_v47 = vsub.f32 %v913_v23, %v945_v44 }
 0x6fe   :  { %v3150_v48 = vpop.eup %2493  ;;  %v657_v49 = vsel %vm656_vm15, %v2492_v34, %v653_v45  ;;  %v953_v51 = vmul.f32 1.442695, %v950_v46  ;;  %v951_v52 = vmul.f32 1.442695, %v949_v47 }
 0x6ff   :  { %v799_v53 = vsel %vm421_vm14, %v3150_v48, 0.0  ;;  %v662_v54 = vsel %vm659_vm1, %v661_v50, %v657_v49 }
 0x700   :  { %2495 = vpow2.f32 %v953_v51  ;;  %800 = vadd.xlane.f32.xlu2 %v799_v53  ;;  %v677_v57 = vmul.f32 %v2488_v10, %v662_v54 }
 0x701   :  { %2497 = vpow2.f32 %v951_v52 }
 0x703   :  { %v680_v55 = vpop.permute.xlu2 %679  ;;  %v804_v0 = vpop.xlane.xlu0 %803 }
 0x704   :  { %700 = vmatpush.msra.mxu0 %v680_v55  ;;  %2499 = vrcp.f32 %v804_v0  ;;  %vm824_vm7 = vweird.f32 %v804_v0  ;;  %v830_v30 = vand.u32 2147483648, %v804_v0  ;;  %v828_v34 = vand.u32 2147483647, %v804_v0 }
 0x705   :  { %2356 = vmatmul.msk.f32.vlgmr.msra.gmra.mxu0 %vm421_vm14, %v677_v57 }
 0x706   :  { %v3155_v58 = vpop.eup %2495  ;;  %v836_v59 = vpop.permute.xlu1 %835  ;;  %v831_v42 = vor.u32 1.1754944e-38, %v830_v30  ;;  %vm829_vm10 = vcmp.eq.f32.partialorder %v828_v34, 8.507059e+37 }
 0x707   :  { %v3157_v60 = vpop.eup %2497  ;;  %856 = vmatpush.msrb.mxu0 %v836_v59  ;;  %v958_v29 = vsel %vm421_vm14, %v3155_v58, 0.0 }
 0x708   :  { %959 = vadd.xlane.f32.xlu0 %v958_v29  ;;  %v955_v61 = vsel %vm421_vm14, %v3157_v60, 0.0 }
 0x709   :  { %956 = vadd.xlane.f32.xlu1 %v955_v61 }
 0x70a   :  { %v2500_v2 = vpop.eup %2499 }
 0x70b   :  { %v820_v3 = vmul.f32 %v2500_v2, %v804_v0  ;;  %vm825_vm4 = vweird.f32 %v2500_v2 }
 0x70c   :  { %vm826_vm8 = vmor %vm824_vm7, %vm825_vm4  ;;  %vm1069_vm4 = vcmask 130048  }
 0x70d   :  { %v821_v5 = vsub.f32 1.0, %v820_v3  ;;  %v1075_v3 = vld [vmem:[%s3631_s4] sm:$0xff] }
 0x718   :  { %991 = vrot.lane.b32.xlu2 %v3037_v26, %s2611_s23 }
 0x71c   :  { %861 = vrot.lane.b32.xlu0 %v3041_v28, %s2610_s22 }
 0x722   :  { %1017 = vrot.lane.b32.xlu1 %v3041_v28, %s2611_s23  ;;  %v822_v28 = vmul.f32 %v2500_v2, %v821_v5 }
 0x724   :  { %v823_v21 = vadd.f32 %v2500_v2, %v822_v28 }
 0x726   :  { %v827_v36 = vsel %vm826_vm8, %v2500_v2, %v823_v21  ;;  %v1076_v2 = vld [vmem:[%s3631_s4 + $0x8] sm:$0xff] }
 0x727   :  { %v832_v45 = vsel %vm829_vm10, %v831_v42, %v827_v36  ;;  %v1193_v42 = vld [vmem:[%s3632_s5] sm:$0xff] }
 0x728   :  { %v834_v54 = vmul.f32 %v3142_v27, %v832_v45 }
 0x773   :  { %v801_v1 = vpop.xlane.xlu2 %800 }
 0x774   :  { %2501 = vrcp.f32 %v801_v1  ;;  %v816_v12 = vand.u32 2147483648, %v801_v1  ;;  %v814_v15 = vand.u32 2147483647, %v801_v1  ;;  %vm810_vm3 = vweird.f32 %v801_v1 }
 0x776   :  { %v817_v18 = vor.u32 1.1754944e-38, %v816_v12  ;;  %vm815_vm6 = vcmp.eq.f32.partialorder %v814_v15, 8.507059e+37 }
 0x77a   :  { %v2502_v4 = vpop.eup %2501 }
 0x77b   :  { %v806_v7 = vmul.f32 %v2502_v4, %v801_v1  ;;  %v3169_v8 = vpop.xlane.xlu0 %959  ;;  %v992_v10 = vpop.permute.xlu2 %991  ;;  %vm811_vm2 = vweird.f32 %v2502_v4  ;;  %v1077_v1 = vld [vmem:[%s3631_s4 + $0x10] sm:$0xff] }
 0x77c   :  { %2503 = vrcp.f32 %v3169_v8  ;;  %v957_v26 = vpop.xlane.xlu1 %956  ;;  %1012 = vmatpush.msra.mxu0 %v992_v10  ;;  %vm812_vm5 = vmor %vm810_vm3, %vm811_vm2  ;;  %v986_v49 = vand.u32 2147483648, %v3169_v8  ;;  %vm980_vm1 = vweird.f32 %v3169_v8  ;;  %v984_v51 = vand.u32 2147483647, %v3169_v8 }
 0x77d   :  { %v807_v11 = vsub.f32 1.0, %v806_v7  ;;  %2505 = vrcp.f32 %v957_v26  ;;  %v972_v38 = vand.u32 2147483648, %v957_v26  ;;  %v970_v41 = vand.u32 2147483647, %v957_v26 }
 0x77e   :  { %vm966_vm11 = vweird.f32 %v957_v26  ;;  %vm985_vm3 = vcmp.eq.f32.partialorder %v984_v51, 8.507059e+37 }
 0x77f   :  { %v808_v13 = vmul.f32 %v2502_v4, %v807_v11  ;;  %v973_v46 = vor.u32 1.1754944e-38, %v972_v38  ;;  %vm971_vm15 = vcmp.eq.f32.partialorder %v970_v41, 8.507059e+37  ;;  %v1196_v38 = vld [vmem:[%s3632_s5 + $0x18] sm:$0xff] }
 0x780   :  { %1216 = vmatpush.msrb.mxu3 %v1196_v38 }
 0x781   :  { %v809_v16 = vadd.f32 %v2502_v4, %v808_v13 }
 0x782   :  { %v2504_v17 = vpop.eup %2503  ;;  %v702_v19 = vpop.f32.mrf.mxu0 }
 0x783   :  { %v2506_v20 = vpop.eup %2505  ;;  %v813_v23 = vsel %vm812_vm5, %v2502_v4, %v809_v16  ;;  %v976_v24 = vmul.f32 %v2504_v17, %v3169_v8  ;;  %1045 = vrot.lane.b32.xlu0 %v702_v19, %s2612_s0  ;;  %vm981_vm13 = vweird.f32 %v2504_v17  ;;  %vm1072_vm5 = vcmask 195584  }
 0x784   :  { %v818_v25 = vsel %vm815_vm6, %v817_v18, %v813_v23  ;;  %v962_v22 = vmul.f32 %v2506_v20, %v957_v26  ;;  %vm967_vm9 = vweird.f32 %v2506_v20  ;;  %vm982_vm2 = vmor %vm980_vm1, %vm981_vm13 }
 0x785   :  { %v977_v31 = vsub.f32 1.0, %v976_v24  ;;  %v833_v33 = vmul.f32 %v3150_v48, %v818_v25  ;;  %vm968_vm12 = vmor %vm966_vm11, %vm967_vm9 }
 0x786   :  { %v963_v35 = vsub.f32 1.0, %v962_v22 }
 0x787   :  { %2362 = vmatmul.msk.f32.vlgmr.msrb.gmra.mxu0 %vm421_vm14, %v833_v33  ;;  %v978_v39 = vmul.f32 %v2504_v17, %v977_v31 }
 0x788   :  { %v964_v40 = vmul.f32 %v2506_v20, %v963_v35 }
 0x789   :  { %v979_v47 = vadd.f32 %v2504_v17, %v978_v39  ;;  %v1195_v39 = vld [vmem:[%s3632_s5 + $0x10] sm:$0xff] }
 0x78a   :  { %v965_v44 = vadd.f32 %v2506_v20, %v964_v40  ;;  %v1194_v40 = vld [vmem:[%s3632_s5 + $0x8] sm:$0xff]  ;;  %1217 = vmatpush.msrb.mxu3 %v1195_v39 }
 0x78b   :  { %1047 = vrot.lane.b32.xlu0 %v3132_v9, %s2612_s0  ;;  %v983_v55 = vsel %vm982_vm2, %v2504_v17, %v979_v47  ;;  %v987_v9 = vor.u32 1.1754944e-38, %v986_v49 }
 0x78c   :  { %v969_v48 = vsel %vm968_vm12, %v2506_v20, %v965_v44  ;;  %1218 = vmatpush.msrb.mxu3 %v1194_v40 }
 0x78d   :  { %v974_v50 = vsel %vm971_vm15, %v973_v46, %v969_v48  ;;  %v988_v57 = vsel %vm985_vm3, %v987_v9, %v983_v55 }
 0x78e   :  { %v862_v52 = vpop.permute.xlu0 %861  ;;  %v989_v53 = vmul.f32 %v3157_v60, %v974_v50  ;;  %v990_v29 = vmul.f32 %v3155_v58, %v988_v57  ;;  %v1078_v58 = vld [vmem:[%s3631_s4 + $0x18] sm:$0xff]  ;;  %1219 = vmatpush.msrb.mxu3 %v1193_v42 }
 0x78f   :  { %882 = vmatpush.msra.mxu1 %v862_v52  ;;  %1098 = vmatpush.msrb.mxu2 %v1078_v58 }
 0x790   :  { %2368 = vmatmul.msk.f32.vlgmr.msra.gmra.mxu0 %vm421_vm14, %v989_v53  ;;  %2363 = vmatmul.msk.f32.vlgmr.msra.gmra.mxu1 %vm421_vm14, %v834_v54 }
 0x791   :  { %1099 = vmatpush.msrb.mxu2 %v1077_v1  ;;  %v1234_v1 = vld [vmem:[%s3633_s6 + $0x28] sm:$0xff] }
 0x793   :  { %1100 = vmatpush.msrb.mxu2 %v1076_v2 }
 0x794   :  { %v1018_v59 = vpop.permute.xlu1 %1017 }
 0x795   :  { %1038 = vmatpush.msrb.mxu1 %v1018_v59  ;;  %1101 = vmatpush.msrb.mxu2 %v1075_v3  ;;  %v1233_v3 = vld [vmem:[%s3633_s6 + $0x20] sm:$0xff] }
 0x798   :  { %2369 = vmatmul.msk.f32.vlgmr.msrb.gmra.mxu1 %vm421_vm14, %v990_v29 }
 0x7f5   :  { %v1046_v4 = vpop.permute.xlu0 %1045 }
 0x7f6   :  { %v1067_v7 = vsel %vm421_vm14, %v3124_v62, %v1046_v4  ;;  %v1079_v62 = vperm.slane %v3028_v56, 1 }
 0x7fd   :  { %v1048_v11 = vpop.permute.xlu0 %1047 }
 0x7fe   :  { %v1068_v28 = vsel %vm421_vm14, %v3097_v32, %v1048_v11 }
 0x804   :  { %v858_v61 = vpop.f32.mrf.mxu0 }
 0x805   :  { %1053 = vrot.lane.b32.xlu2 %v858_v61, %s2613_s24 }
 0x80d   :  { %v1014_v27 = vpop.f32.mrf.mxu0  ;;  %v884_v60 = vpop.f32.mrf.mxu1 }
 0x80e   :  { %1061 = vrot.lane.b32.xlu1 %v1014_v27, %s2614_s25  ;;  %1055 = vrot.lane.b32.xlu2 %v884_v60, %s2613_s24  ;;  %v1236_v27 = vld [vmem:[%s3633_s6 + $0x38] sm:$0xff]  ;;  %v1235_v60 = vld [vmem:[%s3633_s6 + $0x30] sm:$0xff] }
 0x80f   :  { %1253 = vmatpush.msrb.mxu0 %v1236_v27 }
 0x811   :  { %1254 = vmatpush.msrb.mxu0 %v1235_v60 }
 0x813   :  { %1255 = vmatpush.msrb.mxu0 %v1234_v1 }
 0x815   :  { %v1040_v0 = vpop.f32.mrf.mxu1  ;;  %1256 = vmatpush.msrb.mxu0 %v1233_v3 }
 0x816   :  { %1063 = vrot.lane.b32.xlu1 %v1040_v0, %s2614_s25 }
 0x85f   :  { %v1054_v5 = vpop.permute.xlu2 %1053 }
 0x860   :  { %v1070_v8 = vsel %vm1069_vm4, %v1067_v7, %v1054_v5  ;;  %v1232_v7 = vld [vmem:[%s3633_s6 + $0x18] sm:$0xff] }
 0x861   :  { %1257 = vmatpush.msrb.mxu0 %v1232_v7 }
 0x868   :  { %v1056_v12 = vpop.permute.xlu2 %1055 }
 0x869   :  { %v1071_v13 = vsel %vm1069_vm4, %v1068_v28, %v1056_v12 }
 0x880   :  { %v1062_v10 = vpop.permute.xlu1 %1061 }
 0x881   :  { %v1073_v26 = vsel %vm1072_vm5, %v1070_v8, %v1062_v10 }
 0x882   :  { %2370 = vmatmul.msk.f32.vlgmr.msrb.gmra.mxu2 %vm292_vm0, %v1073_v26 }
 0x888   :  { %v1064_v15 = vpop.permute.xlu1 %1063 }
 0x889   :  { %v1074_v16 = vsel %vm1072_vm5, %v1071_v13, %v1064_v15  ;;  %v1185_v13 = vperm.slane %v3028_v56, 4 }
 0x88a   :  { %2371 = vmatmul.msk.f32.gmra.mxu2 %vm292_vm0, %v1074_v16 }
 0x905   :  { %v1103_v17 = vpop.f32.mrf.mxu2 }
 0x906   :  { %v1104_v18 = vadd.f32 %v1103_v17, %v1079_v62 }
 0x908   :  { %v3216_v19 = vadd.f32 %v1104_v18, %v2989_v63 }
 0x90a   :  { %v1111_v20 = vsel %vm292_vm0, %v3216_v19, 0.0 }
 0x90b   :  { %1112 = vadd.xlane.f32.xlu0 %v1111_v20 }
 0x90d   :  { %v1106_v21 = vpop.f32.mrf.mxu2 }
 0x90e   :  { %v1107_v32 = vadd.f32 %v1106_v21, %v1079_v62 }
 0x910   :  { %v3221_v23 = vadd.f32 %v1107_v32, %v2993_v6 }
 0x912   :  { %v1114_v24 = vsel %vm292_vm0, %v3221_v23, 0.0 }
 0x913   :  { %1115 = vadd.xlane.f32.xlu2 %v1114_v24  ;;  %v1190_v24 = vperm.slane %v3028_v56, 5 }
 0x97e   :  { %v1113_v25 = vpop.xlane.xlu0 %1112 }
 0x97f   :  { %v1117_v22 = vmul.f32 %v1113_v25, %v2997_v14 }
 0x981   :  { %v3227_v30 = vsub.f32 %v3216_v19, %v1117_v22 }
 0x983   :  { %v1121_v63 = vmul.f32 %v3227_v30, %v3227_v30  ;;  %v1186_v20 = vmul.f32 %v1185_v13, %v3227_v30 }
 0x985   :  { %v1123_v31 = vsel %vm292_vm0, %v1121_v63, 0.0 }
 0x986   :  { %1124 = vadd.xlane.f32.xlu1 %v1123_v31  ;;  %v1116_v33 = vpop.xlane.xlu2 %1115 }
 0x987   :  { %v1118_v6 = vmul.f32 %v1116_v33, %v2997_v14 }
 0x989   :  { %v3234_v34 = vsub.f32 %v3221_v23, %v1118_v6 }
 0x98b   :  { %v1122_v35 = vmul.f32 %v3234_v34, %v3234_v34  ;;  %v1187_v39 = vmul.f32 %v1185_v13, %v3234_v34  ;;  %v1229_v34 = vld [vmem:[%s3633_s6] sm:$0xff] }
 0x98d   :  { %v1126_v36 = vsel %vm292_vm0, %v1122_v35, 0.0 }
 0x98e   :  { %1127 = vadd.xlane.f32.xlu0 %v1126_v36 }
 0x9f9   :  { %v1125_v41 = vpop.xlane.xlu1 %1124 }
 0x9fa   :  { %v1129_v44 = vmul.f32 0.032258064, %v1125_v41 }
 0x9fc   :  { %2507 = vrsqrt.f32 %v1129_v44  ;;  %vm1138_vm6 = vcmp.eq.f32.partialorder %v1129_v44, inf  ;;  %v1141_v57 = vand.u32 2147483648, %v1129_v44  ;;  %vm1140_vm7 = vcmp.eq.f32.partialorder %v1129_v44, 0.0 }
 0xa01   :  { %v1128_v45 = vpop.xlane.xlu0 %1127 }
 0xa02   :  { %v2508_v46 = vpop.eup %2507  ;;  %v1130_v47 = vmul.f32 0.032258064, %v1128_v45  ;;  %v1230_v45 = vld [vmem:[%s3633_s6 + $0x8] sm:$0xff] }
 0xa03   :  { %v1132_v48 = vmul.f32 %v2508_v46, %v1129_v44 }
 0xa04   :  { %2509 = vrsqrt.f32 %v1130_v47  ;;  %vm1150_vm8 = vcmp.eq.f32.partialorder %v1130_v47, inf  ;;  %v1153_v5 = vand.u32 2147483648, %v1130_v47  ;;  %vm1152_vm9 = vcmp.eq.f32.partialorder %v1130_v47, 0.0 }
 0xa05   :  { %v1133_v49 = vmul.f32 %v2508_v46, %v1132_v48 }
 0xa07   :  { %v1134_v50 = vmul.f32 0.5, %v1133_v49 }
 0xa09   :  { %v1135_v51 = vsub.f32 1.5, %v1134_v50 }
 0xa0a   :  { %v2510_v52 = vpop.eup %2509 }
 0xa0b   :  { %v1136_v53 = vmul.f32 %v2508_v46, %v1135_v51  ;;  %v1144_v54 = vmul.f32 %v2510_v52, %v1130_v47  ;;  %v2571_v46 = vld [vmem:[%s3634_s7] sm:$0xff] }
 0xa0d   :  { %v1137_v55 = vmul.f32 %v1136_v53, %v1129_v44  ;;  %v1145_v9 = vmul.f32 %v2510_v52, %v1144_v54  ;;  %v1237_v54 = vperm.slane %v2571_v46, 7 }
 0xa0f   :  { %v1139_v59 = vsel %vm1138_vm6, %v1129_v44, %v1137_v55  ;;  %v1146_v29 = vmul.f32 0.5, %v1145_v9  ;;  %v1231_v44 = vld [vmem:[%s3633_s6 + $0x10] sm:$0xff]  ;;  %vm1238_vm6 = vcmask 523264  }
 0xa10   :  { %v1142_v61 = vsel %vm1140_vm7, %v1141_v57, %v1139_v59  ;;  %1258 = vmatpush.msrb.mxu0 %v1231_v44  ;;  %v3325_v44 = vld [vmem:[%s3634_s7 + $0x8] sm:$0xff] }
 0xa11   :  { %v1155_v0 = vadd.f32 1e-06, %v1142_v61  ;;  %v1147_v58 = vsub.f32 1.5, %v1146_v29 }
 0xa12   :  { %1259 = vmatpush.msrb.mxu0 %v1230_v45 }
 0xa13   :  { %2511 = vrcp.f32 %v1155_v0  ;;  %v1148_v2 = vmul.f32 %v2510_v52, %v1147_v58  ;;  %v1168_v15 = vand.u32 2147483648, %v1155_v0  ;;  %v1166_v62 = vand.u32 2147483647, %v1155_v0 }
 0xa14   :  { %vm1162_vm11 = vweird.f32 %v1155_v0  ;;  %1260 = vmatpush.msrb.mxu0 %v1229_v34 }
 0xa15   :  { %v1149_v4 = vmul.f32 %v1148_v2, %v1130_v47  ;;  %v1169_v21 = vor.u32 1.1754944e-38, %v1168_v15  ;;  %vm1167_vm13 = vcmp.eq.f32.partialorder %v1166_v62, 8.507059e+37 }
 0xa17   :  { %v1151_v8 = vsel %vm1150_vm8, %v1130_v47, %v1149_v4  ;;  %v1197_v47 = vperm.slane %v2571_v46, 6  ;;  %v1344_v46 = vperm.slane %v3325_v44, 2 }
 0xa18   :  { %v1154_v10 = vsel %vm1152_vm9, %v1153_v5, %v1151_v8  ;;  %v2379_v8 = vld [vmem:[%s3630_s3 + $0x38] sm:$0xff] }
 0xa19   :  { %v2512_v26 = vpop.eup %2511  ;;  %v1156_v11 = vadd.f32 1e-06, %v1154_v10  ;;  %v2378_v10 = vld [vmem:[%s3630_s3 + $0x30] sm:$0xff]  ;;  %1376 = vmatpush.msra.mxu1 %v2379_v8 }
 0xa1a   :  { %v1158_v12 = vmul.f32 %v2512_v26, %v1155_v0  ;;  %vm1163_vm10 = vweird.f32 %v2512_v26 }
 0xa1b   :  { %2513 = vrcp.f32 %v1156_v11  ;;  %vm1164_vm12 = vmor %vm1162_vm11, %vm1163_vm10  ;;  %v1182_v33 = vand.u32 2147483648, %v1156_v11  ;;  %v1180_v36 = vand.u32 2147483647, %v1156_v11  ;;  %vm1176_vm1 = vweird.f32 %v1156_v11  ;;  %1377 = vmatpush.msra.mxu1 %v2378_v10 }
 0xa1c   :  { %v1159_v28 = vsub.f32 1.0, %v1158_v12  ;;  %v2376_v12 = vld [vmem:[%s3630_s3 + $0x20] sm:$0xff]  ;;  %v1357_v10 = vperm.slane %v3325_v44, 0 }
 0xa1d   :  { %v1183_v30 = vor.u32 1.1754944e-38, %v1182_v33  ;;  %vm1181_vm3 = vcmp.eq.f32.partialorder %v1180_v36, 8.507059e+37 }
 0xa1e   :  { %v1160_v16 = vmul.f32 %v2512_v26, %v1159_v28 }
 0xa20   :  { %v1161_v17 = vadd.f32 %v2512_v26, %v1160_v16 }
 0xa21   :  { %v2514_v18 = vpop.eup %2513 }
 0xa22   :  { %v1165_v32 = vsel %vm1164_vm12, %v2512_v26, %v1161_v17  ;;  %v1172_v25 = vmul.f32 %v2514_v18, %v1156_v11  ;;  %vm1177_vm15 = vweird.f32 %v2514_v18  ;;  %v2377_v26 = vld [vmem:[%s3630_s3 + $0x28] sm:$0xff] }
 0xa23   :  { %v1170_v22 = vsel %vm1167_vm13, %v1169_v21, %v1165_v32  ;;  %vm1178_vm2 = vmor %vm1176_vm1, %vm1177_vm15  ;;  %1378 = vmatpush.msra.mxu1 %v2377_v26 }
 0xa24   :  { %v1188_v63 = vmul.f32 %v1186_v20, %v1170_v22  ;;  %v1173_v31 = vsub.f32 1.0, %v1172_v25 }
 0xa25   :  { %1379 = vmatpush.msra.mxu1 %v2376_v12 }
 0xa26   :  { %v1191_v6 = vadd.f32 %v1190_v24, %v1188_v63  ;;  %v1174_v35 = vmul.f32 %v2514_v18, %v1173_v31 }
 0xa28   :  { %2372 = vmatmul.msk.f32.vlgmr.msrb.gmra.mxu3 %vm292_vm0, %v1191_v6  ;;  %v1175_v38 = vadd.f32 %v2514_v18, %v1174_v35 }
 0xa2a   :  { %v1179_v40 = vsel %vm1178_vm2, %v2514_v18, %v1175_v38 }
 0xa2b   :  { %v1184_v56 = vsel %vm1181_vm3, %v1183_v30, %v1179_v40 }
 0xa2c   :  { %v1189_v41 = vmul.f32 %v1187_v39, %v1184_v56 }
 0xa2e   :  { %v1192_v42 = vadd.f32 %v1190_v24, %v1189_v41 }
 0xa30   :  { %2373 = vmatmul.msk.f32.gmra.mxu3 %vm292_vm0, %v1192_v42 }
 0xaab   :  { %v1221_v48 = vpop.f32.mrf.mxu3 }
 0xaac   :  { %v1222_v49 = vadd.f32 %v1221_v48, %v1197_v47 }
 0xaae   :  { %v1227_v50 = vmax.f32 %v1222_v49, 0.0 }
 0xab0   :  { %2374 = vmatmul.msk.f32.vlgmr.msrb.gmra.mxu0 %vm1238_vm6, %v1227_v50 }
 0xab3   :  { %v1224_v51 = vpop.f32.mrf.mxu3 }
 0xab4   :  { %v1225_v52 = vadd.f32 %v1224_v51, %v1197_v47 }
 0xab6   :  { %v1228_v53 = vmax.f32 %v1225_v52, 0.0 }
 0xab8   :  { %2375 = vmatmul.msk.f32.gmra.mxu0 %vm1238_vm6, %v1228_v53 }
 0xb2d   :  { %v1262_v55 = vpop.f32.mrf.mxu0 }
 0xb2e   :  { %v1263_v9 = vadd.f32 %v1262_v55, %v1237_v54  ;;  %v1349_v55 = vperm.slane %v3325_v44, 3 }
 0xb30   :  { %v3287_v57 = vadd.f32 %v1263_v9, %v3216_v19 }
 0xb32   :  { %v1270_v59 = vsel %vm292_vm0, %v3287_v57, 0.0 }
 0xb33   :  { %1271 = vadd.xlane.f32.xlu2 %v1270_v59 }
 0xb35   :  { %v1265_v29 = vpop.f32.mrf.mxu0 }
 0xb36   :  { %v1266_v61 = vadd.f32 %v1265_v29, %v1237_v54 }
 0xb38   :  { %v3292_v27 = vadd.f32 %v1266_v61, %v3221_v23 }
 0xb3a   :  { %v1273_v60 = vsel %vm292_vm0, %v3292_v27, 0.0 }
 0xb3b   :  { %1274 = vadd.xlane.f32.xlu1 %v1273_v60 }
 0xba6   :  { %v1272_v0 = vpop.xlane.xlu2 %1271 }
 0xba7   :  { %v1276_v58 = vmul.f32 %v1272_v0, %v2997_v14 }
 0xba9   :  { %v3298_v1 = vsub.f32 %v3287_v57, %v1276_v58 }
 0xbab   :  { %v1280_v19 = vmul.f32 %v3298_v1, %v3298_v1  ;;  %v1345_v52 = vmul.f32 %v1344_v46, %v3298_v1 }
 0xbad   :  { %v1282_v2 = vsel %vm292_vm0, %v1280_v19, 0.0 }
 0xbae   :  { %1283 = vadd.xlane.f32.xlu0 %v1282_v2  ;;  %v1275_v3 = vpop.xlane.xlu1 %1274 }
 0xbaf   :  { %v1277_v23 = vmul.f32 %v1275_v3, %v2997_v14 }
 0xbb1   :  { %v3305_v4 = vsub.f32 %v3292_v27, %v1277_v23 }
 0xbb3   :  { %v1281_v5 = vmul.f32 %v3305_v4, %v3305_v4  ;;  %v1346_v3 = vmul.f32 %v1344_v46, %v3305_v4 }
 0xbb5   :  { %v1285_v7 = vsel %vm292_vm0, %v1281_v5, 0.0 }
 0xbb6   :  { %1286 = vadd.xlane.f32.xlu2 %v1285_v7 }
 0xc21   :  { %v1284_v11 = vpop.xlane.xlu0 %1283 }
 0xc22   :  { %v1288_v28 = vmul.f32 0.032258064, %v1284_v11 }
 0xc24   :  { %2515 = vrsqrt.f32 %v1288_v28  ;;  %vm1297_vm7 = vcmp.eq.f32.partialorder %v1288_v28, inf  ;;  %v1300_v63 = vand.u32 2147483648, %v1288_v28  ;;  %vm1299_vm8 = vcmp.eq.f32.partialorder %v1288_v28, 0.0 }
 0xc29   :  { %v1287_v13 = vpop.xlane.xlu2 %1286 }
 0xc2a   :  { %v2516_v15 = vpop.eup %2515  ;;  %v1289_v16 = vmul.f32 0.032258064, %v1287_v13 }
 0xc2b   :  { %v1291_v62 = vmul.f32 %v2516_v15, %v1288_v28 }
 0xc2c   :  { %2517 = vrsqrt.f32 %v1289_v16  ;;  %vm1309_vm9 = vcmp.eq.f32.partialorder %v1289_v16, inf  ;;  %v1312_v39 = vand.u32 2147483648, %v1289_v16  ;;  %vm1311_vm10 = vcmp.eq.f32.partialorder %v1289_v16, 0.0 }
 0xc2d   :  { %v1292_v17 = vmul.f32 %v2516_v15, %v1291_v62 }
 0xc2f   :  { %v1293_v18 = vmul.f32 0.5, %v1292_v17 }
 0xc31   :  { %v1294_v20 = vsub.f32 1.5, %v1293_v18 }
 0xc32   :  { %v2518_v21 = vpop.eup %2517 }
 0xc33   :  { %v1295_v32 = vmul.f32 %v2516_v15, %v1294_v20  ;;  %v1303_v24 = vmul.f32 %v2518_v21, %v1289_v16 }
 0xc35   :  { %v1296_v25 = vmul.f32 %v1295_v32, %v1288_v28  ;;  %v1304_v22 = vmul.f32 %v2518_v21, %v1303_v24 }
 0xc37   :  { %v1298_v31 = vsel %vm1297_vm7, %v1288_v28, %v1296_v25  ;;  %v1305_v33 = vmul.f32 0.5, %v1304_v22 }
 0xc38   :  { %v1301_v6 = vsel %vm1299_vm8, %v1300_v63, %v1298_v31 }
 0xc39   :  { %v1314_v35 = vadd.f32 1e-06, %v1301_v6  ;;  %v1306_v36 = vsub.f32 1.5, %v1305_v33 }
 0xc3b   :  { %2519 = vrcp.f32 %v1314_v35  ;;  %v1307_v38 = vmul.f32 %v2518_v21, %v1306_v36  ;;  %v1327_v47 = vand.u32 2147483648, %v1314_v35  ;;  %v1325_v49 = vand.u32 2147483647, %v1314_v35 }
 0xc3c   :  { %vm1321_vm12 = vweird.f32 %v1314_v35 }
 0xc3d   :  { %v1308_v30 = vmul.f32 %v1307_v38, %v1289_v16  ;;  %v1328_v53 = vor.u32 1.1754944e-38, %v1327_v47  ;;  %vm1326_vm15 = vcmp.eq.f32.partialorder %v1325_v49, 8.507059e+37 }
 0xc3f   :  { %v1310_v40 = vsel %vm1309_vm9, %v1289_v16, %v1308_v30 }
 0xc40   :  { %v1313_v56 = vsel %vm1311_vm10, %v1312_v39, %v1310_v40 }
 0xc41   :  { %v2520_v41 = vpop.eup %2519  ;;  %v1315_v42 = vadd.f32 1e-06, %v1313_v56 }
 0xc42   :  { %v1317_v45 = vmul.f32 %v2520_v41, %v1314_v35  ;;  %vm1322_vm11 = vweird.f32 %v2520_v41 }
 0xc43   :  { %2521 = vrcp.f32 %v1315_v42  ;;  %vm1323_vm13 = vmor %vm1321_vm12, %vm1322_vm11  ;;  %v1341_v60 = vand.u32 2147483648, %v1315_v42  ;;  %v1339_v19 = vand.u32 2147483647, %v1315_v42  ;;  %vm1335_vm2 = vweird.f32 %v1315_v42 }
 0xc44   :  { %v1318_v34 = vsub.f32 1.0, %v1317_v45 }
 0xc45   :  { %v1342_v1 = vor.u32 1.1754944e-38, %v1341_v60  ;;  %vm1340_vm7 = vcmp.eq.f32.partialorder %v1339_v19, 8.507059e+37 }
 0xc46   :  { %v1319_v48 = vmul.f32 %v2520_v41, %v1318_v34 }
 0xc48   :  { %v1320_v50 = vadd.f32 %v2520_v41, %v1319_v48 }
 0xc49   :  { %v2522_v51 = vpop.eup %2521 }
 0xc4a   :  { %v1324_v54 = vsel %vm1323_vm13, %v2520_v41, %v1320_v50  ;;  %v1331_v9 = vmul.f32 %v2522_v51, %v1315_v42  ;;  %vm1336_vm1 = vweird.f32 %v2522_v51 }
 0xc4b   :  { %v1329_v59 = vsel %vm1326_vm15, %v1328_v53, %v1324_v54  ;;  %vm1337_vm3 = vmor %vm1335_vm2, %vm1336_vm1 }
 0xc4c   :  { %v1347_v29 = vmul.f32 %v1345_v52, %v1329_v59  ;;  %v1332_v61 = vsub.f32 1.0, %v1331_v9 }
 0xc4e   :  { %v1350_v0 = vadd.f32 %v1349_v55, %v1347_v29  ;;  %v1333_v58 = vmul.f32 %v2522_v51, %v1332_v61 }
 0xc50   :  { %2380 = vmatmul.msk.f32.vlgmr.msra.gmra.mxu1 %vm292_vm0, %v1350_v0  ;;  %v1334_v2 = vadd.f32 %v2522_v51, %v1333_v58 }
 0xc52   :  { %v1338_v23 = vsel %vm1337_vm3, %v2522_v51, %v1334_v2 }
 0xc53   :  { %v1343_v5 = vsel %vm1340_vm7, %v1342_v1, %v1338_v23 }
 0xc54   :  { %v1348_v7 = vmul.f32 %v1346_v3, %v1343_v5 }
 0xc56   :  { %v1351_v8 = vadd.f32 %v1349_v55, %v1348_v7 }
 0xc58   :  { %2381 = vmatmul.msk.f32.gmra.mxu1 %vm292_vm0, %v1351_v8 }
 0xccd   :  { %v1381_v26 = vpop.f32.mrf.mxu1 }
 0xcce   :  { %v1382_v11 = vadd.f32 %v1381_v26, %v1357_v10 }
 0xcd0   :  { %1547 = vrot.lane.b32.xlu2 %v1382_v11, %s2603_s1  ;;  %1390 = vrot.lane.b32.xlu1 %v1382_v11, %s2601_s11  ;;  %v1387_v13 = vmul.f32 0.35355338, %v1382_v11 }
 0xcd5   :  { %v1384_v12 = vpop.f32.mrf.mxu1 }
 0xcd6   :  { %v1385_v28 = vadd.f32 %v1384_v12, %v1357_v10 }
 0xcd8   :  { %1703 = vrot.lane.b32.xlu2 %v1382_v11, %s2605_s18  ;;  %1575 = vrot.lane.b32.xlu1 %v1385_v28, %s2603_s1  ;;  %v3338_v4 = vpack.i.bf16 %v1385_v28, %v1382_v11  ;;  %v1388_v15 = vmul.f32 0.35355338, %v1385_v28 }
 0xcd9   :  { %1418 = vrot.lane.b32.xlu0 %v1385_v28, %s2601_s11 }
 0xce0   :  { %1731 = vrot.lane.b32.xlu2 %v1385_v28, %s2605_s18  ;;  %1701 = vrot.lane.b32.xlu1 %v1387_v13, %s2607_s20 }
 0xce1   :  { %1545 = vrot.lane.b32.xlu0 %v1387_v13, %s2606_s19 }
 0xce8   :  { %1857 = vrot.lane.b32.xlu2 %v1387_v13, %s2608_s21  ;;  %1729 = vrot.lane.b32.xlu1 %v1388_v15, %s2607_s20 }
 0xce9   :  { %1573 = vrot.lane.b32.xlu0 %v1388_v15, %s2606_s19 }
 0xcf0   :  { %1885 = vrot.lane.b32.xlu1 %v1388_v15, %s2608_s21 }
 0xcf1   :  { %1859 = vrot.lane.b32.xlu0 %v1382_v11, %s2609_s2 }
 0xcf9   :  { %1887 = vrot.lane.b32.xlu0 %v1385_v28, %s2609_s2  ;;  %s2330_s2 = sshll.u32 %s3635_s8, 4  ;;  %s2331_s2 = int_to_ptr.hbm [resolvable:$true] %s2330_s2 }
 0xd2a   :  { %v1548_v16 = vpop.permute.xlu2 %1547 }
 0xd32   :  { %v1704_v62 = vpop.permute.xlu2 %1703 }
 0xd3a   :  { %v1732_v20 = vpop.permute.xlu2 %1731 }
 0xd42   :  { %v1391_v17 = vpop.permute.xlu1 %1390  ;;  %v1858_v31 = vpop.permute.xlu2 %1857 }
 0xd43   :  { %2382 = vmatpush.xpose.msk.msra.mxu2 %vm421_vm14, %v1391_v17 }
 0xd46   :  { %2383 = vmatmul.msk.f32.vlgmr.msra.gmra.mxu2 %vm421_vm14, %v1387_v13 }
 0xd4a   :  { %v1576_v18 = vpop.permute.xlu1 %1575 }
 0xd4b   :  { %v1419_v21 = vpop.permute.xlu0 %1418  ;;  %2390 = vmatpush.xpose.msk.msra.mxu0 %vm421_vm14, %v1576_v18 }
 0xd4c   :  { %2384 = vmatpush.xpose.msk.msra.mxu3 %vm421_vm14, %v1419_v21 }
 0xd4f   :  { %2396 = vmatpush.xpose.msk.msrb.mxu0 %vm421_vm14, %v1732_v20  ;;  %2385 = vmatmul.msk.f32.vlgmr.msra.gmra.mxu3 %vm421_vm14, %v1388_v15 }
 0xd50   :  { %2388 = vmatpush.xpose.msk.msrb.mxu3 %vm421_vm14, %v1548_v16 }
 0xd52   :  { %v1702_v24 = vpop.permute.xlu1 %1701 }
 0xd53   :  { %v1546_v32 = vpop.permute.xlu0 %1545 }
 0xd54   :  { %2394 = vmatpush.xpose.msk.msra.mxu3 %vm421_vm14, %v1704_v62 }
 0xd57   :  { %2389 = vmatmul.msk.f32.vlgmr.msrb.gmra.mxu3 %vm421_vm14, %v1546_v32 }
 0xd5a   :  { %v1730_v22 = vpop.permute.xlu1 %1729 }
 0xd5b   :  { %v1574_v25 = vpop.permute.xlu0 %1573 }
 0xd5c   :  { %2391 = vmatmul.msk.f32.vlgmr.msra.gmra.mxu0 %vm421_vm14, %v1574_v25 }
 0xd5f   :  { %2395 = vmatmul.msk.f32.vlgmr.msra.gmra.mxu3 %vm421_vm14, %v1702_v24 }
 0xd62   :  { %v1886_v6 = vpop.permute.xlu1 %1885 }
 0xd63   :  { %v1860_v63 = vpop.permute.xlu0 %1859 }
 0xd64   :  { %2397 = vmatmul.msk.f32.vlgmr.msrb.gmra.mxu0 %vm421_vm14, %v1730_v22  ;;  %2400 = vmatpush.xpose.msk.msrb.mxu3 %vm421_vm14, %v1860_v63 }
 0xd67   :  { %2401 = vmatmul.msk.f32.vlgmr.msrb.gmra.mxu3 %vm421_vm14, %v1858_v31 }
 0xd6b   :  { %v1888_v33 = vpop.permute.xlu0 %1887 }
 0xd6c   :  { %2402 = vmatpush.xpose.msk.msra.mxu0 %vm421_vm14, %v1888_v33 }
 0xd6f   :  { %2403 = vmatmul.msk.f32.vlgmr.msra.gmra.mxu0 %vm421_vm14, %v1886_v6 }
 0xdc9   :  { %v1414_v35 = vpop.f32.mrf.mxu2 }
 0xdca   :  { %v1415_v36 = vadd.f32 %v1414_v35, %v3062_v37 }
 0xdcc   :  { %v1445_v38 = vsel %vm421_vm14, %v1415_v36, -inf }
 0xdcd   :  { %1446 = vmax.xlane.f32.xlu2 %v1445_v38 }
 0xdd2   :  { %v1442_v30 = vpop.f32.mrf.mxu3 }
 0xdd3   :  { %v1443_v39 = vadd.f32 %v1442_v30, %v3066_v43 }
 0xdd5   :  { %v1448_v40 = vsel %vm421_vm14, %v1443_v39, -inf }
 0xdd6   :  { %1449 = vmax.xlane.f32.xlu0 %v1448_v40 }
 0xdd9   :  { %v1598_v56 = vpop.f32.mrf.mxu0 }
 0xdda   :  { %v1599_v41 = vadd.f32 %v1598_v56, %v3066_v43  ;;  %v1570_v42 = vpop.f32.mrf.mxu3 }
 0xddb   :  { %v1571_v51 = vadd.f32 %v1570_v42, %v3062_v37 }
 0xddc   :  { %v1604_v45 = vsel %vm421_vm14, %v1599_v41, -inf }
 0xddd   :  { %1605 = vmax.xlane.f32.xlu2 %v1604_v45  ;;  %v1601_v55 = vsel %vm421_vm14, %v1571_v51, -inf }
 0xde1   :  { %v1754_v34 = vpop.f32.mrf.mxu0 }
 0xde2   :  { %v1755_v46 = vadd.f32 %v1754_v34, %v3066_v43  ;;  %v1726_v47 = vpop.f32.mrf.mxu3 }
 0xde3   :  { %v1727_v48 = vadd.f32 %v1726_v47, %v3062_v37 }
 0xde4   :  { %v1760_v49 = vsel %vm421_vm14, %v1755_v46, -inf }
 0xde5   :  { %1761 = vmax.xlane.f32.xlu1 %v1760_v49  ;;  %v1757_v50 = vsel %vm421_vm14, %v1727_v48, -inf }
 0xde6   :  { %1758 = vmax.xlane.f32.xlu0 %v1757_v50 }
 0xdea   :  { %v1882_v52 = vpop.f32.mrf.mxu3 }
 0xdeb   :  { %v1883_v53 = vadd.f32 %v1882_v52, %v3062_v37 }
 0xdec   :  { %v1910_v54 = vpop.f32.mrf.mxu0 }
 0xded   :  { %v1911_v9 = vadd.f32 %v1910_v54, %v3066_v43  ;;  %1602 = vmax.xlane.f32.xlu1 %v1601_v55  ;;  %v1913_v59 = vsel %vm421_vm14, %v1883_v53, -inf }
 0xdee   :  { %1914 = vmax.xlane.f32.xlu2 %v1913_v59 }
 0xdef   :  { %v1916_v29 = vsel %vm421_vm14, %v1911_v9, -inf }
 0xdf0   :  { %1917 = vmax.xlane.f32.xlu0 %v1916_v29 }
 0xe06   :  { %2446 = vrot.lane.b32.xlu1 %v3338_v4, %s2602_s12 }
 0xe40   :  { %v1447_v61 = vpop.xlane.xlu2 %1446 }
 0xe41   :  { %v1451_v60 = vsub.f32 %v1415_v36, %v1447_v61 }
 0xe43   :  { %v1453_v0 = vmul.f32 1.442695, %v1451_v60 }
 0xe45   :  { %2523 = vpow2.f32 %v1453_v0 }
 0xe49   :  { %v1450_v37 = vpop.xlane.xlu0 %1449 }
 0xe4a   :  { %v1452_v58 = vsub.f32 %v1443_v39, %v1450_v37 }
 0xe4b   :  { %v3384_v19 = vpop.eup %2523 }
 0xe4c   :  { %v1455_v2 = vmul.f32 1.442695, %v1452_v58  ;;  %v1457_v43 = vsel %vm421_vm14, %v3384_v19, 0.0 }
 0xe4d   :  { %1458 = vadd.xlane.f32.xlu1 %v1457_v43 }
 0xe4e   :  { %2525 = vpow2.f32 %v1455_v2 }
 0xe50   :  { %v1606_v1 = vpop.xlane.xlu2 %1605 }
 0xe51   :  { %v1608_v3 = vsub.f32 %v1599_v41, %v1606_v1 }
 0xe53   :  { %v1611_v23 = vmul.f32 1.442695, %v1608_v3 }
 0xe54   :  { %v3388_v5 = vpop.eup %2525 }
 0xe55   :  { %2527 = vpow2.f32 %v1611_v23  ;;  %v1460_v7 = vsel %vm421_vm14, %v3388_v5, 0.0 }
 0xe56   :  { %1461 = vadd.xlane.f32.xlu2 %v1460_v7 }
 0xe58   :  { %v1762_v8 = vpop.xlane.xlu1 %1761 }
 0xe59   :  { %v1764_v10 = vsub.f32 %v1755_v46, %v1762_v8  ;;  %v1759_v26 = vpop.xlane.xlu0 %1758 }
 0xe5a   :  { %v1763_v11 = vsub.f32 %v1727_v48, %v1759_v26 }
 0xe5b   :  { %v3392_v12 = vpop.eup %2527  ;;  %v1767_v28 = vmul.f32 1.442695, %v1764_v10 }
 0xe5c   :  { %v1765_v13 = vmul.f32 1.442695, %v1763_v11  ;;  %v1616_v15 = vsel %vm421_vm14, %v3392_v12, 0.0 }
 0xe5d   :  { %2529 = vpow2.f32 %v1767_v28  ;;  %1617 = vadd.xlane.f32.xlu1 %v1616_v15 }
 0xe5e   :  { %2531 = vpow2.f32 %v1765_v13 }
 0xe60   :  { %v1603_v16 = vpop.xlane.xlu1 %1602 }
 0xe61   :  { %v1607_v62 = vsub.f32 %v1571_v51, %v1603_v16  ;;  %v1915_v17 = vpop.xlane.xlu2 %1914 }
 0xe62   :  { %v1919_v18 = vsub.f32 %v1883_v53, %v1915_v17 }
 0xe63   :  { %v3396_v20 = vpop.eup %2529  ;;  %v1609_v21 = vmul.f32 1.442695, %v1607_v62  ;;  %v1918_v32 = vpop.xlane.xlu0 %1917 }
 0xe64   :  { %v3398_v24 = vpop.eup %2531  ;;  %v1921_v25 = vmul.f32 1.442695, %v1919_v18  ;;  %v1920_v22 = vsub.f32 %v1911_v9, %v1918_v32  ;;  %v1772_v63 = vsel %vm421_vm14, %v3396_v20, 0.0 }
 0xe65   :  { %2533 = vpow2.f32 %v1609_v21  ;;  %1773 = vadd.xlane.f32.xlu0 %v1772_v63  ;;  %v1769_v31 = vsel %vm421_vm14, %v3398_v24, 0.0 }
 0xe66   :  { %2535 = vpow2.f32 %v1921_v25  ;;  %1770 = vadd.xlane.f32.xlu2 %v1769_v31  ;;  %v1923_v33 = vmul.f32 1.442695, %v1920_v22 }
 0xe68   :  { %2537 = vpow2.f32 %v1923_v33 }
 0xe6b   :  { %v3404_v6 = vpop.eup %2533 }
 0xe6c   :  { %v3406_v35 = vpop.eup %2535  ;;  %v1613_v36 = vsel %vm421_vm14, %v3404_v6, 0.0 }
 0xe6d   :  { %1614 = vadd.xlane.f32.xlu0 %v1613_v36  ;;  %v1925_v38 = vsel %vm421_vm14, %v3406_v35, 0.0 }
 0xe6e   :  { %1926 = vadd.xlane.f32.xlu2 %v1925_v38  ;;  %v3412_v30 = vpop.eup %2537 }
 0xe6f   :  { %v1928_v39 = vsel %vm421_vm14, %v3412_v30, 0.0 }
 0xe75   :  { %1929 = vadd.xlane.f32.xlu0 %v1928_v39 }
 0xe76   :  { %2461 = vrot.lane.b32.xlu1 %v3338_v4, %s2611_s23 }
 0xe78   :  { %v2447_v40 = vpop.permute.xlu1 %2446 }
 0xe79   :  { %v2449_v56 = vunpack.i.h.bf16 %v2447_v40  ;;  %v2448_v41 = vunpack.i.l.bf16 %v2447_v40 }
 0xe7b   :  { %1514 = vmatpush.msrb.mxu1 %v2448_v41  ;;  %1540 = vmatpush.msrb.mxu2 %v2449_v56 }
 0xe86   :  { %2451 = vrot.lane.b32.xlu2 %v3338_v4, %s2604_s17 }
 0xe89   :  { %2456 = vrot.lane.b32.xlu0 %v3338_v4, %s2610_s22  ;;  %s2615_s22 = smov [#allocation2]  }
 0xe8a   :  { %s2328_s23 = sshll.u32 %s2615_s22, 4  ;;  %s2329_s23 = int_to_ptr.vmem [resolvable:$true] %s2328_s23 }
 0xec0   :  { %v1459_v42 = vpop.xlane.xlu1 %1458 }
 0xec1   :  { %2539 = vrcp.f32 %v1459_v42  ;;  %v1474_v48 = vand.u32 2147483648, %v1459_v42  ;;  %v1472_v50 = vand.u32 2147483647, %v1459_v42  ;;  %vm1468_vm9 = vweird.f32 %v1459_v42 }
 0xec3   :  { %v1475_v52 = vor.u32 1.1754944e-38, %v1474_v48  ;;  %vm1473_vm11 = vcmp.eq.f32.partialorder %v1472_v50, 8.507059e+37 }
 0xec7   :  { %v2540_v45 = vpop.eup %2539 }
 0xec8   :  { %v1464_v34 = vmul.f32 %v2540_v45, %v1459_v42  ;;  %vm1469_vm8 = vweird.f32 %v2540_v45 }
 0xec9   :  { %v1462_v46 = vpop.xlane.xlu2 %1461  ;;  %vm1470_vm10 = vmor %vm1468_vm9, %vm1469_vm8 }
 0xeca   :  { %v1465_v47 = vsub.f32 1.0, %v1464_v34  ;;  %2541 = vrcp.f32 %v1462_v46  ;;  %v1488_v61 = vand.u32 2147483648, %v1462_v46  ;;  %v1486_v0 = vand.u32 2147483647, %v1462_v46 }
 0xecb   :  { %vm1482_vm13 = vweird.f32 %v1462_v46 }
 0xecc   :  { %v1466_v49 = vmul.f32 %v2540_v45, %v1465_v47  ;;  %v1489_v2 = vor.u32 1.1754944e-38, %v1488_v61  ;;  %vm1487_vm1 = vcmp.eq.f32.partialorder %v1486_v0, 8.507059e+37 }
 0xece   :  { %v1467_v51 = vadd.f32 %v2540_v45, %v1466_v49 }
 0xed0   :  { %v2542_v53 = vpop.eup %2541  ;;  %v1471_v54 = vsel %vm1470_vm10, %v2540_v45, %v1467_v51  ;;  %v1618_v55 = vpop.xlane.xlu1 %1617 }
 0xed1   :  { %v1476_v4 = vsel %vm1473_vm11, %v1475_v52, %v1471_v54  ;;  %v1478_v9 = vmul.f32 %v2542_v53, %v1462_v46  ;;  %2543 = vrcp.f32 %v1618_v55  ;;  %vm1483_vm12 = vweird.f32 %v2542_v53 }
 0xed2   :  { %v1491_v59 = vmul.f32 %v3384_v19, %v1476_v4  ;;  %vm1484_vm15 = vmor %vm1482_vm13, %vm1483_vm12  ;;  %v1644_v16 = vand.u32 2147483648, %v1618_v55  ;;  %vm1638_vm3 = vweird.f32 %v1618_v55 }
 0xed3   :  { %v1479_v29 = vsub.f32 1.0, %v1478_v9 }
 0xed4   :  { %2386 = vmatmul.msk.f32.vlgmr.msrb.gmra.mxu1 %vm421_vm14, %v1491_v59  ;;  %v1645_v32 = vor.u32 1.1754944e-38, %v1644_v16 }
 0xed5   :  { %v1480_v60 = vmul.f32 %v2542_v53, %v1479_v29 }
 0xed7   :  { %v2544_v37 = vpop.eup %2543  ;;  %v1481_v58 = vadd.f32 %v2542_v53, %v1480_v60 }
 0xed8   :  { %v1634_v43 = vmul.f32 %v2544_v37, %v1618_v55  ;;  %v3424_v1 = vpop.xlane.xlu0 %1773  ;;  %vm1639_vm2 = vweird.f32 %v2544_v37 }
 0xed9   :  { %v1485_v3 = vsel %vm1484_vm15, %v2542_v53, %v1481_v58  ;;  %v3426_v23 = vpop.xlane.xlu2 %1770  ;;  %2545 = vrcp.f32 %v3424_v1  ;;  %vm1640_vm7 = vmor %vm1638_vm3, %vm1639_vm2  ;;  %v1800_v29 = vand.u32 2147483648, %v3424_v1  ;;  %v1798_v60 = vand.u32 2147483647, %v3424_v1 }
 0xeda   :  { %v1490_v19 = vsel %vm1487_vm1, %v1489_v2, %v1485_v3  ;;  %v1635_v7 = vsub.f32 1.0, %v1634_v43  ;;  %2547 = vrcp.f32 %v3426_v23  ;;  %vm1794_vm1 = vweird.f32 %v3424_v1 }
 0xedb   :  { %v1492_v8 = vmul.f32 %v3388_v5, %v1490_v19  ;;  %v1642_v5 = vand.u32 2147483647, %v1618_v55  ;;  %v1786_v61 = vand.u32 2147483648, %v3426_v23  ;;  %vm1780_vm3 = vweird.f32 %v3426_v23 }
 0xedc   :  { %v1636_v10 = vmul.f32 %v2544_v37, %v1635_v7  ;;  %v1801_v43 = vor.u32 1.1754944e-38, %v1800_v29  ;;  %v2048_v29 = vperm.slane %v3325_v44, 1 }
 0xedd   :  { %2387 = vmatmul.msk.f32.vlgmr.msrb.gmra.mxu2 %vm421_vm14, %v1492_v8  ;;  %vm1643_vm8 = vcmp.eq.f32.partialorder %v1642_v5, 8.507059e+37  ;;  %v1787_v3 = vor.u32 1.1754944e-38, %v1786_v61  ;;  %v2412_v5 = vld [vmem:[%s3632_s5 + $0x20] sm:$0xff] }
 0xede   :  { %v1637_v13 = vadd.f32 %v2544_v37, %v1636_v10 }
 0xedf   :  { %v3434_v28 = vpop.eup %2545 }
 0xee0   :  { %v1615_v26 = vpop.xlane.xlu0 %1614  ;;  %v3436_v15 = vpop.eup %2547  ;;  %v1641_v17 = vsel %vm1640_vm7, %v2544_v37, %v1637_v13  ;;  %v1790_v18 = vmul.f32 %v3434_v28, %v3424_v1  ;;  %vm1795_vm13 = vweird.f32 %v3434_v28 }
 0xee1   :  { %2549 = vrcp.f32 %v1615_v26  ;;  %v3432_v11 = vpop.xlane.xlu2 %1926  ;;  %v1776_v21 = vmul.f32 %v3436_v15, %v3426_v23  ;;  %v1646_v31 = vsel %vm1643_vm8, %v1645_v32, %v1641_v17  ;;  %v1628_v39 = vand.u32 2147483647, %v1615_v26  ;;  %vm1796_vm2 = vmor %vm1794_vm1, %vm1795_vm13 }
 0xee2   :  { %2551 = vrcp.f32 %v3432_v11  ;;  %v1791_v36 = vsub.f32 1.0, %v1790_v18  ;;  %v1630_v40 = vand.u32 2147483648, %v1615_v26  ;;  %v1648_v34 = vmul.f32 %v3392_v12, %v1646_v31 }
 0xee3   :  { %v1777_v38 = vsub.f32 1.0, %v1776_v21  ;;  %vm1624_vm10 = vweird.f32 %v1615_v26  ;;  %vm1629_vm12 = vcmp.eq.f32.partialorder %v1628_v39, 8.507059e+37  ;;  %vm1781_vm15 = vweird.f32 %v3436_v15 }
 0xee4   :  { %v1792_v48 = vmul.f32 %v3434_v28, %v1791_v36  ;;  %v1631_v50 = vor.u32 1.1754944e-38, %v1630_v40  ;;  %vm1782_vm7 = vmor %vm1780_vm3, %vm1781_vm15  ;;  %vm1799_vm8 = vcmp.eq.f32.partialorder %v1798_v60, 8.507059e+37 }
 0xee5   :  { %v1778_v49 = vmul.f32 %v3436_v15, %v1777_v38 }
 0xee6   :  { %v1793_v55 = vadd.f32 %v3434_v28, %v1792_v48 }
 0xee7   :  { %v2550_v62 = vpop.eup %2549  ;;  %v1779_v4 = vadd.f32 %v3436_v15, %v1778_v49 }
 0xee8   :  { %v1620_v25 = vmul.f32 %v2550_v62, %v1615_v26  ;;  %v3443_v22 = vpop.xlane.xlu0 %1929  ;;  %v3446_v56 = vpop.eup %2551  ;;  %vm1625_vm9 = vweird.f32 %v2550_v62  ;;  %v1797_v0 = vsel %vm1796_vm2, %v3434_v28, %v1793_v55  ;;  %v1942_v28 = vand.u32 2147483648, %v3432_v11 }
 0xee9   :  { %2553 = vrcp.f32 %v3443_v22  ;;  %v2452_v63 = vpop.permute.xlu2 %2451  ;;  %vm1626_vm11 = vmor %vm1624_vm10, %vm1625_vm9  ;;  %v1932_v51 = vmul.f32 %v3446_v56, %v3432_v11  ;;  %v1783_v37 = vsel %vm1782_vm7, %v3436_v15, %v1779_v4  ;;  %v1802_v19 = vsel %vm1799_vm8, %v1801_v43, %v1797_v0  ;;  %v2462_v10 = vpop.permute.xlu1 %2461 }
 0xeea   :  { %v1621_v33 = vsub.f32 1.0, %v1620_v25  ;;  %v2454_v42 = vunpack.i.h.bf16 %v2452_v63  ;;  %v2453_v45 = vunpack.i.l.bf16 %v2452_v63  ;;  %vm1936_vm10 = vweird.f32 %v3432_v11 }
 0xeeb   :  { %v1933_v9 = vsub.f32 1.0, %v1932_v51  ;;  %v1956_v13 = vand.u32 2147483648, %v3443_v22  ;;  %vm1950_vm15 = vweird.f32 %v3443_v22  ;;  %v1804_v18 = vmul.f32 %v3396_v20, %v1802_v19 }
 0xeec   :  { %v1622_v41 = vmul.f32 %v2550_v62, %v1621_v33  ;;  %1670 = vmatpush.msra.mxu1 %v2453_v45  ;;  %1696 = vmatpush.msra.mxu2 %v2454_v42  ;;  %v2463_v32 = vunpack.i.l.bf16 %v2462_v10  ;;  %v1943_v20 = vor.u32 1.1754944e-38, %v1942_v28  ;;  %v2415_v28 = vld [vmem:[%s3632_s5 + $0x38] sm:$0xff] }
 0xeed   :  { %2393 = vmatmul.msk.f32.vlgmr.msra.gmra.mxu2 %vm421_vm14, %v1648_v34  ;;  %v1934_v58 = vmul.f32 %v3446_v56, %v1933_v9  ;;  %v2408_v34 = vld [vmem:[%s3631_s4 + $0x30] sm:$0xff]  ;;  %2186 = vmatpush.msrb.mxu0 %v2415_v28 }
 0xeee   :  { %v1623_v46 = vadd.f32 %v2550_v62, %v1622_v41 }
 0xeef   :  { %v3449_v47 = vpop.eup %2553  ;;  %v1935_v1 = vadd.f32 %v3446_v56, %v1934_v58 }
 0xef0   :  { %v1627_v52 = vsel %vm1626_vm11, %v2550_v62, %v1623_v46  ;;  %v1946_v12 = vmul.f32 %v3449_v47, %v3443_v22  ;;  %vm1937_vm11 = vweird.f32 %v3446_v56  ;;  %v1954_v62 = vand.u32 2147483647, %v3443_v22  ;;  %v2407_v46 = vld [vmem:[%s3631_s4 + $0x28] sm:$0xff] }
 0xef1   :  { %v1632_v53 = vsel %vm1629_vm12, %v1631_v50, %v1627_v52  ;;  %vm1951_vm12 = vweird.f32 %v3449_v47  ;;  %vm3482_vm13 = vmor %vm1936_vm10, %vm1937_vm11 }
 0xef2   :  { %v1647_v54 = vmul.f32 %v3404_v6, %v1632_v53  ;;  %v1947_v59 = vsub.f32 1.0, %v1946_v12  ;;  %v1784_v6 = vand.u32 2147483647, %v3426_v23  ;;  %v1940_v23 = vand.u32 2147483647, %v3432_v11  ;;  %vm3490_vm1 = vmor %vm1950_vm15, %vm1951_vm12 }
 0xef3   :  { %v2464_v11 = vunpack.i.h.bf16 %v2462_v10  ;;  %v1939_v25 = vsel %vm3482_vm13, %v3446_v56, %v1935_v1  ;;  %vm1955_vm3 = vcmp.eq.f32.partialorder %v1954_v62, 8.507059e+37 }
 0xef4   :  { %2392 = vmatmul.msk.f32.vlgmr.msra.gmra.mxu1 %vm421_vm14, %v1647_v54  ;;  %v1948_v2 = vmul.f32 %v3449_v47, %v1947_v59  ;;  %vm1785_vm9 = vcmp.eq.f32.partialorder %v1784_v6, 8.507059e+37  ;;  %vm1941_vm2 = vcmp.eq.f32.partialorder %v1940_v23, 8.507059e+37 }
 0xef5   :  { %v1788_v7 = vsel %vm1785_vm9, %v1787_v3, %v1783_v37  ;;  %v1944_v63 = vsel %vm1941_vm2, %v1943_v20, %v1939_v25 }
 0xef6   :  { %v1949_v8 = vadd.f32 %v3449_v47, %v1948_v2  ;;  %v1803_v17 = vmul.f32 %v3398_v24, %v1788_v7  ;;  %v1957_v24 = vor.u32 1.1754944e-38, %v1956_v13  ;;  %v1959_v33 = vmul.f32 %v3406_v35, %v1944_v63  ;;  %v2414_v13 = vld [vmem:[%s3632_s5 + $0x30] sm:$0xff] }
 0xef7   :  { %2187 = vmatpush.msrb.mxu0 %v2414_v13 }
 0xef8   :  { %v1953_v22 = vsel %vm3490_vm1, %v3449_v47, %v1949_v8  ;;  %v2406_v47 = vld [vmem:[%s3631_s4 + $0x20] sm:$0xff] }
 0xef9   :  { %v1958_v31 = vsel %vm1955_vm3, %v1957_v24, %v1953_v22 }
 0xefa   :  { %v1960_v36 = vmul.f32 %v3412_v30, %v1958_v31  ;;  %v2409_v30 = vld [vmem:[%s3631_s4 + $0x38] sm:$0xff] }
 0xefb   :  { %v2457_v26 = vpop.permute.xlu0 %2456  ;;  %2067 = vmatpush.msra.mxu3 %v2409_v30 }
 0xefc   :  { %v2459_v15 = vunpack.i.h.bf16 %v2457_v26  ;;  %v2458_v16 = vunpack.i.l.bf16 %v2457_v26 }
 0xefd   :  { %2068 = vmatpush.msra.mxu3 %v2408_v34  ;;  %v2422_v34 = vld [vmem:[%s3633_s6 + $0x60] sm:$0xff] }
 0xefe   :  { %1826 = vmatpush.msrb.mxu1 %v2458_v16  ;;  %1852 = vmatpush.msrb.mxu2 %v2459_v15  ;;  %v2413_v15 = vld [vmem:[%s3632_s5 + $0x28] sm:$0xff] }
 0xeff   :  { %2398 = vmatmul.msk.f32.vlgmr.msrb.gmra.mxu1 %vm421_vm14, %v1803_v17  ;;  %2399 = vmatmul.msk.f32.vlgmr.msrb.gmra.mxu2 %vm421_vm14, %v1804_v18 }
 0xf00   :  { %1982 = vmatpush.msra.mxu1 %v2463_v32  ;;  %2008 = vmatpush.msra.mxu2 %v2464_v11 }
 0xf01   :  { %2069 = vmatpush.msra.mxu3 %v2407_v46  ;;  %2188 = vmatpush.msrb.mxu0 %v2413_v15 }
 0xf03   :  { %2070 = vmatpush.msra.mxu3 %v2406_v47  ;;  %2189 = vmatpush.msrb.mxu0 %v2412_v5  ;;  %v2420_v5 = vld [vmem:[%s3633_s6 + $0x50] sm:$0xff] }
 0xf07   :  { %2404 = vmatmul.msk.f32.vlgmr.msra.gmra.mxu1 %vm421_vm14, %v1959_v33  ;;  %2405 = vmatmul.msk.f32.vlgmr.msra.gmra.mxu2 %vm421_vm14, %v1960_v36 }
 0xf51   :  { %v1516_v38 = vpop.f32.mrf.mxu1 }
 0xf60   :  { %v1542_v39 = vpop.f32.mrf.mxu2 }
 0xf70   :  { %v1698_v56 = vpop.f32.mrf.mxu2 }
 0xf71   :  { %v1672_v40 = vpop.f32.mrf.mxu1 }
 0xf72   :  { %2015 = vrot.lane.b32.xlu0 %v1672_v40, %s2612_s0 }
 0xf7a   :  { %2017 = vrot.lane.b32.xlu0 %v1698_v56, %s2612_s0  ;;  %v2425_v56 = vld [vmem:[%s3633_s6 + $0x78] sm:$0xff] }
 0xf7b   :  { %2223 = vmatpush.msrb.mxu1 %v2425_v56 }
 0xf7c   :  { %v1828_v41 = vpop.f32.mrf.mxu1 }
 0xf7d   :  { %2023 = vrot.lane.b32.xlu2 %v1828_v41, %s2613_s24  ;;  %v2424_v41 = vld [vmem:[%s3633_s6 + $0x70] sm:$0xff] }
 0xf7e   :  { %2224 = vmatpush.msrb.mxu1 %v2424_v41 }
 0xf82   :  { %v1854_v42 = vpop.f32.mrf.mxu2 }
 0xf84   :  { %v1984_v45 = vpop.f32.mrf.mxu1 }
 0xf85   :  { %2025 = vrot.lane.b32.xlu2 %v1854_v42, %s2613_s24  ;;  %2031 = vrot.lane.b32.xlu1 %v1984_v45, %s2614_s25  ;;  %s2616_s24 = smov 128  }
 0xf8a   :  { %v2010_v35 = vpop.f32.mrf.mxu2 }
 0xf8d   :  { %2033 = vrot.lane.b32.xlu1 %v2010_v35, %s2614_s25  ;;  %v2423_v35 = vld [vmem:[%s3633_s6 + $0x68] sm:$0xff] }
 0xf8e   :  { %2225 = vmatpush.msrb.mxu1 %v2423_v35 }
 0xf90   :  { %2226 = vmatpush.msrb.mxu1 %v2422_v34 }
 0xfd7   :  { %v2024_v49 = vpop.permute.xlu2 %2023 }
 0xfdf   :  { %v2026_v55 = vpop.permute.xlu2 %2025 }
 0xfe4   :  { %v2016_v48 = vpop.permute.xlu0 %2015 }
 0xfe5   :  { %v2037_v50 = vsel %vm421_vm14, %v1516_v38, %v2016_v48  ;;  %v2421_v48 = vld [vmem:[%s3633_s6 + $0x58] sm:$0xff] }
 0xfe6   :  { %v2039_v51 = vsel %vm1069_vm4, %v2037_v50, %v2024_v49  ;;  %2227 = vmatpush.msrb.mxu1 %v2421_v48 }
 0xfe8   :  { %2228 = vmatpush.msrb.mxu1 %v2420_v5 }
 0xfec   :  { %v2018_v53 = vpop.permute.xlu0 %2017 }
 0xfed   :  { %v2038_v54 = vsel %vm421_vm14, %v1542_v39, %v2018_v53 }
 0xfee   :  { %v2040_v9 = vsel %vm1069_vm4, %v2038_v54, %v2026_v55  ;;  %v2154_v54 = vperm.slane %v3325_v44, 4 }
 0xff7   :  { %v2032_v52 = vpop.permute.xlu1 %2031 }
 0xff8   :  { %v2041_v12 = vsel %vm1072_vm5, %v2039_v51, %v2032_v52 }
 0xff9   :  { %2410 = vmatmul.msk.f32.vlgmr.msra.gmra.mxu3 %vm292_vm0, %v2041_v12 }
 0xfff   :  { %v2034_v4 = vpop.permute.xlu1 %2033 }
0x1000   :  { %v2042_v59 = vsel %vm1072_vm5, %v2040_v9, %v2034_v4 }
0x1001   :  { %2411 = vmatmul.msk.f32.gmra.mxu3 %vm292_vm0, %v2042_v59 }
0x107c   :  { %v2072_v61 = vpop.f32.mrf.mxu3 }
0x107d   :  { %v2073_v60 = vadd.f32 %v2072_v61, %v2048_v29 }
0x107f   :  { %v3534_v6 = vadd.f32 %v2073_v60, %v3287_v57 }
0x1081   :  { %v2080_v0 = vsel %vm292_vm0, %v3534_v6, 0.0 }
0x1082   :  { %2081 = vadd.xlane.f32.xlu0 %v2080_v0 }
0x1084   :  { %v2075_v37 = vpop.f32.mrf.mxu3 }
0x1085   :  { %v2076_v58 = vadd.f32 %v2075_v37, %v2048_v29  ;;  %v2159_v37 = vperm.slane %v3325_v44, 5 }
0x1087   :  { %v3539_v2 = vadd.f32 %v2076_v58, %v3292_v27 }
0x1089   :  { %v2083_v43 = vsel %vm292_vm0, %v3539_v2, 0.0 }
0x108a   :  { %2084 = vadd.xlane.f32.xlu2 %v2083_v43 }
0x10f5   :  { %v2082_v3 = vpop.xlane.xlu0 %2081 }
0x10f6   :  { %v2086_v19 = vmul.f32 %v2082_v3, %v2997_v14 }
0x10f8   :  { %v3545_v7 = vsub.f32 %v3534_v6, %v2086_v19 }
0x10fa   :  { %v2090_v57 = vmul.f32 %v3545_v7, %v3545_v7  ;;  %v2155_v61 = vmul.f32 %v2154_v54, %v3545_v7 }
0x10fc   :  { %v2092_v1 = vsel %vm292_vm0, %v2090_v57, 0.0 }
0x10fd   :  { %2093 = vadd.xlane.f32.xlu1 %v2092_v1  ;;  %v2085_v23 = vpop.xlane.xlu2 %2084 }
0x10fe   :  { %v2087_v27 = vmul.f32 %v2085_v23, %v2997_v14 }
0x1100   :  { %v3552_v8 = vsub.f32 %v3539_v2, %v2087_v27 }
0x1102   :  { %v2091_v10 = vmul.f32 %v3552_v8, %v3552_v8 }
0x1104   :  { %v2095_v26 = vsel %vm292_vm0, %v2091_v10, 0.0 }
0x1105   :  { %2096 = vadd.xlane.f32.xlu2 %v2095_v26  ;;  %v2156_v26 = vmul.f32 %v2154_v54, %v3552_v8  ;;  %v2418_v8 = vld [vmem:[%s3633_s6 + $0x40] sm:$0xff] }
0x1170   :  { %v2094_v16 = vpop.xlane.xlu1 %2093 }
0x1171   :  { %v2098_v62 = vmul.f32 0.032258064, %v2094_v16 }
0x1173   :  { %2555 = vrsqrt.f32 %v2098_v62  ;;  %vm2107_vm14 = vcmp.eq.f32.partialorder %v2098_v62, inf  ;;  %v2110_v36 = vand.u32 2147483648, %v2098_v62  ;;  %vm2109_vm4 = vcmp.eq.f32.partialorder %v2098_v62, 0.0 }
0x1178   :  { %v2097_v17 = vpop.xlane.xlu2 %2096 }
0x1179   :  { %v2556_v18 = vpop.eup %2555  ;;  %v2099_v21 = vmul.f32 0.032258064, %v2097_v17  ;;  %v2167_v17 = vperm.slane %v3325_v44, 6 }
0x117a   :  { %v2101_v11 = vmul.f32 %v2556_v18, %v2098_v62 }
0x117b   :  { %2557 = vrsqrt.f32 %v2099_v21  ;;  %vm2119_vm5 = vcmp.eq.f32.partialorder %v2099_v21, inf  ;;  %v2122_v47 = vand.u32 2147483648, %v2099_v21  ;;  %vm2121_vm7 = vcmp.eq.f32.partialorder %v2099_v21, 0.0 }
0x117c   :  { %v2102_v32 = vmul.f32 %v2556_v18, %v2101_v11 }
0x117e   :  { %v2103_v25 = vmul.f32 0.5, %v2102_v32 }
0x1180   :  { %v2104_v22 = vsub.f32 1.5, %v2103_v25 }
0x1181   :  { %v2558_v20 = vpop.eup %2557 }
0x1182   :  { %v2105_v24 = vmul.f32 %v2556_v18, %v2104_v22  ;;  %v2113_v63 = vmul.f32 %v2558_v20, %v2099_v21 }
0x1184   :  { %v2106_v31 = vmul.f32 %v2105_v24, %v2098_v62  ;;  %v2114_v33 = vmul.f32 %v2558_v20, %v2113_v63 }
0x1186   :  { %v2108_v38 = vsel %vm2107_vm14, %v2098_v62, %v2106_v31  ;;  %v2115_v39 = vmul.f32 0.5, %v2114_v33  ;;  %v2419_v62 = vld [vmem:[%s3633_s6 + $0x48] sm:$0xff] }
0x1187   :  { %v2111_v40 = vsel %vm2109_vm4, %v2110_v36, %v2108_v38  ;;  %2229 = vmatpush.msrb.mxu1 %v2419_v62 }
0x1188   :  { %v2124_v42 = vadd.f32 1e-06, %v2111_v40  ;;  %v2116_v45 = vsub.f32 1.5, %v2115_v39 }
0x1189   :  { %2230 = vmatpush.msrb.mxu1 %v2418_v8 }
0x118a   :  { %2559 = vrcp.f32 %v2124_v42  ;;  %v2117_v30 = vmul.f32 %v2558_v20, %v2116_v45  ;;  %v2137_v55 = vand.u32 2147483648, %v2124_v42  ;;  %v2135_v9 = vand.u32 2147483647, %v2124_v42  ;;  %v2572_v20 = vld [vmem:[%s3634_s7 + $0x8] sm:$0xff] }
0x118b   :  { %vm2131_vm9 = vweird.f32 %v2124_v42  ;;  %v2208_v24 = vperm.slane %v2572_v20, 7 }
0x118c   :  { %v2118_v46 = vmul.f32 %v2117_v30, %v2099_v21  ;;  %v2138_v60 = vor.u32 1.1754944e-38, %v2137_v55  ;;  %vm2136_vm11 = vcmp.eq.f32.partialorder %v2135_v9, 8.507059e+37 }
0x118e   :  { %v2120_v49 = vsel %vm2119_vm5, %v2099_v21, %v2118_v46 }
0x118f   :  { %v2123_v50 = vsel %vm2121_vm7, %v2122_v47, %v2120_v49 }
0x1190   :  { %v2560_v51 = vpop.eup %2559  ;;  %v2125_v52 = vadd.f32 1e-06, %v2123_v50 }
0x1191   :  { %v2127_v12 = vmul.f32 %v2560_v51, %v2124_v42  ;;  %vm2132_vm8 = vweird.f32 %v2560_v51 }
0x1192   :  { %2561 = vrcp.f32 %v2125_v52  ;;  %vm2133_vm10 = vmor %vm2131_vm9, %vm2132_vm8  ;;  %v2151_v57 = vand.u32 2147483648, %v2125_v52  ;;  %v2149_v27 = vand.u32 2147483647, %v2125_v52  ;;  %vm2145_vm13 = vweird.f32 %v2125_v52 }
0x1193   :  { %v2128_v53 = vsub.f32 1.0, %v2127_v12 }
0x1194   :  { %v2152_v7 = vor.u32 1.1754944e-38, %v2151_v57  ;;  %vm2150_vm1 = vcmp.eq.f32.partialorder %v2149_v27, 8.507059e+37 }
0x1195   :  { %v2129_v4 = vmul.f32 %v2560_v51, %v2128_v53 }
0x1197   :  { %v2130_v59 = vadd.f32 %v2560_v51, %v2129_v4 }
0x1198   :  { %v2562_v29 = vpop.eup %2561 }
0x1199   :  { %v2134_v0 = vsel %vm2133_vm10, %v2560_v51, %v2130_v59  ;;  %v2141_v58 = vmul.f32 %v2562_v29, %v2125_v52  ;;  %vm2146_vm12 = vweird.f32 %v2562_v29 }
0x119a   :  { %v2139_v43 = vsel %vm2136_vm11, %v2138_v60, %v2134_v0  ;;  %vm2147_vm15 = vmor %vm2145_vm13, %vm2146_vm12 }
0x119b   :  { %v2157_v3 = vmul.f32 %v2155_v61, %v2139_v43  ;;  %v2142_v19 = vsub.f32 1.0, %v2141_v58 }
0x119d   :  { %v2160_v1 = vadd.f32 %v2159_v37, %v2157_v3  ;;  %v2143_v23 = vmul.f32 %v2562_v29, %v2142_v19 }
0x119f   :  { %2416 = vmatmul.msk.f32.vlgmr.msrb.gmra.mxu0 %vm292_vm0, %v2160_v1  ;;  %v2144_v10 = vadd.f32 %v2562_v29, %v2143_v23 }
0x11a1   :  { %v2148_v28 = vsel %vm2147_vm15, %v2562_v29, %v2144_v10 }
0x11a2   :  { %v2153_v13 = vsel %vm2150_vm1, %v2152_v7, %v2148_v28  ;;  %v2573_v28 = vld [vmem:[%s3634_s7 + $0x10] sm:$0x7] }
0x11a3   :  { %v2158_v15 = vmul.f32 %v2156_v26, %v2153_v13  ;;  %v2314_v13 = vperm.slane %v2573_v28, 1  ;;  %v2319_v8 = vperm.slane %v2573_v28, 2 }
0x11a5   :  { %v2161_v16 = vadd.f32 %v2159_v37, %v2158_v15 }
0x11a7   :  { %2417 = vmatmul.msk.f32.gmra.mxu0 %vm292_vm0, %v2161_v16 }
0x121c   :  { %v2191_v18 = vpop.f32.mrf.mxu0 }
0x121d   :  { %v2192_v21 = vadd.f32 %v2191_v18, %v2167_v17 }
0x121f   :  { %v2197_v11 = vmax.f32 %v2192_v21, 0.0 }
0x1221   :  { %2426 = vmatmul.msk.f32.vlgmr.msrb.gmra.mxu1 %vm1238_vm6, %v2197_v11 }
0x1224   :  { %v2194_v32 = vpop.f32.mrf.mxu0 }
0x1225   :  { %v2195_v25 = vadd.f32 %v2194_v32, %v2167_v17 }
0x1227   :  { %v2198_v22 = vmax.f32 %v2195_v25, 0.0 }
0x1229   :  { %2427 = vmatmul.msk.f32.gmra.mxu1 %vm1238_vm6, %v2198_v22 }
0x129e   :  { %v2232_v63 = vpop.f32.mrf.mxu1 }
0x129f   :  { %v2233_v31 = vadd.f32 %v2232_v63, %v2208_v24 }
0x12a1   :  { %v2238_v33 = vadd.f32 %v2233_v31, %v3534_v6 }
0x12a3   :  { %v2240_v44 = vsel %vm292_vm0, %v2238_v33, 0.0 }
0x12a4   :  { %2241 = vadd.xlane.f32.xlu0 %v2240_v44 }
0x12a6   :  { %v2235_v36 = vpop.f32.mrf.mxu1 }
0x12a7   :  { %v2236_v38 = vadd.f32 %v2235_v36, %v2208_v24 }
0x12a9   :  { %v2239_v39 = vadd.f32 %v2236_v38, %v3539_v2 }
0x12ab   :  { %v2243_v40 = vsel %vm292_vm0, %v2239_v39, 0.0 }
0x12ac   :  { %2244 = vadd.xlane.f32.xlu1 %v2243_v40 }
0x1317   :  { %v2242_v56 = vpop.xlane.xlu0 %2241 }
0x1318   :  { %v2246_v41 = vmul.f32 %v2242_v56, %v2997_v14 }
0x131a   :  { %v2248_v42 = vsub.f32 %v2238_v33, %v2246_v41 }
0x131c   :  { %v2250_v45 = vmul.f32 %v2248_v42, %v2248_v42  ;;  %v2315_v18 = vmul.f32 %v2314_v13, %v2248_v42 }
0x131e   :  { %v2252_v35 = vsel %vm292_vm0, %v2250_v45, 0.0 }
0x131f   :  { %v2245_v30 = vpop.xlane.xlu1 %2244  ;;  %2253 = vadd.xlane.f32.xlu2 %v2252_v35 }
0x1320   :  { %v2247_v6 = vmul.f32 %v2245_v30, %v2997_v14 }
0x1322   :  { %v3612_v34 = vsub.f32 %v2239_v39, %v2247_v6 }
0x1324   :  { %v2251_v46 = vmul.f32 %v3612_v34, %v3612_v34  ;;  %v2316_v36 = vmul.f32 %v2314_v13, %v3612_v34 }
0x1326   :  { %v2255_v2 = vsel %vm292_vm0, %v2251_v46, 0.0 }
0x1327   :  { %2256 = vadd.xlane.f32.xlu0 %v2255_v2 }
0x1392   :  { %v2254_v47 = vpop.xlane.xlu2 %2253 }
0x1393   :  { %v2258_v48 = vmul.f32 0.032258064, %v2254_v47 }
0x1395   :  { %2563 = vrsqrt.f32 %v2258_v48  ;;  %vm2267_vm6 = vcmp.eq.f32.partialorder %v2258_v48, inf  ;;  %v2270_v29 = vand.u32 2147483648, %v2258_v48  ;;  %vm2269_vm2 = vcmp.eq.f32.partialorder %v2258_v48, 0.0 }
0x139a   :  { %v2257_v49 = vpop.xlane.xlu0 %2256 }
0x139b   :  { %v2564_v50 = vpop.eup %2563  ;;  %v2259_v51 = vmul.f32 0.032258064, %v2257_v49 }
0x139c   :  { %v2261_v52 = vmul.f32 %v2564_v50, %v2258_v48 }
0x139d   :  { %2565 = vrsqrt.f32 %v2259_v51  ;;  %vm2279_vm3 = vcmp.eq.f32.partialorder %v2259_v51, inf  ;;  %v2282_v19 = vand.u32 2147483648, %v2259_v51  ;;  %vm2281_vm14 = vcmp.eq.f32.partialorder %v2259_v51, 0.0 }
0x139e   :  { %v2262_v12 = vmul.f32 %v2564_v50, %v2261_v52 }
0x13a0   :  { %v2263_v53 = vmul.f32 0.5, %v2262_v12 }
0x13a2   :  { %v2264_v54 = vsub.f32 1.5, %v2263_v53 }
0x13a3   :  { %v2566_v14 = vpop.eup %2565 }
0x13a4   :  { %v2265_v55 = vmul.f32 %v2564_v50, %v2264_v54  ;;  %v2273_v4 = vmul.f32 %v2566_v14, %v2259_v51 }
0x13a6   :  { %v2266_v9 = vmul.f32 %v2265_v55, %v2258_v48  ;;  %v2274_v59 = vmul.f32 %v2566_v14, %v2273_v4 }
0x13a8   :  { %v2268_v61 = vsel %vm2267_vm6, %v2258_v48, %v2266_v9  ;;  %v2275_v60 = vmul.f32 0.5, %v2274_v59 }
0x13a9   :  { %v2271_v0 = vsel %vm2269_vm2, %v2270_v29, %v2268_v61 }
0x13aa   :  { %v2284_v37 = vadd.f32 1e-06, %v2271_v0  ;;  %v2276_v58 = vsub.f32 1.5, %v2275_v60 }
0x13ac   :  { %2567 = vrcp.f32 %v2284_v37  ;;  %v2277_v43 = vmul.f32 %v2566_v14, %v2276_v58  ;;  %v2297_v26 = vand.u32 2147483648, %v2284_v37  ;;  %v2295_v16 = vand.u32 2147483647, %v2284_v37 }
0x13ad   :  { %vm2291_vm5 = vweird.f32 %v2284_v37 }
0x13ae   :  { %v2278_v3 = vmul.f32 %v2277_v43, %v2259_v51  ;;  %v2298_v17 = vor.u32 1.1754944e-38, %v2297_v26  ;;  %vm2296_vm8 = vcmp.eq.f32.partialorder %v2295_v16, 8.507059e+37 }
0x13b0   :  { %v2280_v57 = vsel %vm2279_vm3, %v2259_v51, %v2278_v3 }
0x13b1   :  { %v2283_v1 = vsel %vm2281_vm14, %v2282_v19, %v2280_v57 }
0x13b2   :  { %v2568_v23 = vpop.eup %2567  ;;  %v2285_v27 = vadd.f32 1e-06, %v2283_v1 }
0x13b3   :  { %v2287_v10 = vmul.f32 %v2568_v23, %v2284_v37  ;;  %vm2292_vm4 = vweird.f32 %v2568_v23 }
0x13b4   :  { %2569 = vrcp.f32 %v2285_v27  ;;  %vm2293_vm7 = vmor %vm2291_vm5, %vm2292_vm4  ;;  %v2311_v20 = vand.u32 2147483648, %v2285_v27  ;;  %v2309_v63 = vand.u32 2147483647, %v2285_v27  ;;  %vm2305_vm10 = vweird.f32 %v2285_v27 }
0x13b5   :  { %v2288_v7 = vsub.f32 1.0, %v2287_v10 }
0x13b6   :  { %v2312_v44 = vor.u32 1.1754944e-38, %v2311_v20  ;;  %vm2310_vm12 = vcmp.eq.f32.partialorder %v2309_v63, 8.507059e+37 }
0x13b7   :  { %v2289_v15 = vmul.f32 %v2568_v23, %v2288_v7 }
0x13b9   :  { %v2290_v5 = vadd.f32 %v2568_v23, %v2289_v15 }
0x13ba   :  { %v2570_v62 = vpop.eup %2569 }
0x13bb   :  { %v2294_v21 = vsel %vm2293_vm7, %v2568_v23, %v2290_v5  ;;  %v2301_v11 = vmul.f32 %v2570_v62, %v2285_v27  ;;  %vm2306_vm9 = vweird.f32 %v2570_v62 }
0x13bc   :  { %v2299_v32 = vsel %vm2296_vm8, %v2298_v17, %v2294_v21  ;;  %vm2307_vm11 = vmor %vm2305_vm10, %vm2306_vm9 }
0x13bd   :  { %v2302_v25 = vsub.f32 1.0, %v2301_v11  ;;  %v2317_v22 = vmul.f32 %v2315_v18, %v2299_v32 }
0x13bf   :  { %v2303_v24 = vmul.f32 %v2570_v62, %v2302_v25  ;;  %v2320_v31 = vadd.f32 %v2319_v8, %v2317_v22 }
0x13c1   :  { %v2304_v33 = vadd.f32 %v2570_v62, %v2303_v24  ;;  %2322 = vst.msk [vmem:[#allocation2] sm:$0xff] %vm292_vm0, %v2320_v31 }
0x13c3   :  { %v2308_v38 = vsel %vm2307_vm11, %v2570_v62, %v2304_v33 }
0x13c4   :  { %v2313_v39 = vsel %vm2310_vm12, %v2312_v44, %v2308_v38 }
0x13c5   :  { %v2318_v40 = vmul.f32 %v2316_v36, %v2313_v39 }
0x13c7   :  { %v2321_v56 = vadd.f32 %v2319_v8, %v2318_v40 }
0x13c9   :  { %2323 = vst.msk [vmem:[#allocation2 + $0x8] sm:$0xff] %vm292_vm0, %v2321_v56 }
0x13ca   :  { %2336 = dma.vmem_to_hbm [thread:$0]  %s2329_s23, 256, %s2331_s2, [#allocation3], %s2616_s24, %s2616_s24, %s2612_s0  }
0x13cb   :  { %2598 = dma.done.wait [#allocation3], 256  }
0x13cc   :  { %2599 = vsyncadd [#allocation3], 4294967040 }
0x13cd   :  { %2341 = vsyncpa [#allocation3], 1 }

</bundles_post_ra>
